<compile_context>
chip_gen: v7x
topology: tpu7x:2x2x1
jax: 0.10.0
libtpu: 0.0.40
codegen_flags: <defaults>
</compile_context>

<pallas_src>
import functools

import jax
import jax.numpy as jnp
import numpy as np
from jax import lax
from jax.experimental import pallas as pl
from jax.experimental.pallas import tpu as pltpu

EPS = 1e-5  # nn.BatchNorm2d default eps

# Transposed-conv taps per output phase: tuples of (kernel index, padded offset).
#   phase 0: k=1 -> padded offset 1, k=3 -> offset 0
#   phase 1: k=0 -> padded offset 2, k=2 -> offset 1
_TAPS = {0: ((1, 1), (3, 0)),
         1: ((0, 2), (2, 1))}


def _pick_tile_m(H, W, ci, co, itemsize, tile_m):
    """Largest multiple-of-8 divisor of H whose tile comfortably fits VMEM."""
    if tile_m is not None:
        if H % tile_m != 0:
            raise ValueError(f"tile_m={tile_m} must divide H={H}")
        return tile_m
    cands = [d for d in range(8, H + 1, 8) if H % d == 0]
    if not cands:
        return H
    budget = 8 * 1024 * 1024  # conservative per-step budget (v7x has 64 MiB VMEM)

    def est(d):
        out_tile = 4 * d * W * co * 4 * 2          # 4 phases, f32, double-buffered
        xcat_tmp = 4 * d * W * 4 * ci * itemsize   # fused-K operand temporaries
        return out_tile + xcat_tmp

    fitting = [d for d in cands if est(d) <= budget]
    return max(fitting) if fitting else min(cands)


def _convt_phase_kernel(x_ref, w_ref, b_ref, out_ref, stats_ref, *,
                        tile_m, outermost):
    # x_ref:     (1, H+2, W+2, Ci)   zero-padded NHWC input (whole sample)
    # w_ref:     (4, 4*Ci, Co)       per-phase fused tap weights
    # b_ref:     (1, Co)             conv bias (only used when outermost)
    # out_ref:   (1, 4, TILE_M, W, Co)  raw conv (BN path) or tanh(conv+bias)
    # stats_ref: (1, 1, 2, Co)       per-(sample, row-block) [sum, sumsq]
    i = pl.program_id(1)
    W = out_ref.shape[3]
    Co = out_ref.shape[4]
    Ci = x_ref.shape[3]

    row0 = i * tile_m
    if tile_m % 8 == 0:
        row0 = pl.multiple_of(row0, 8)
    xt = x_ref[0, pl.ds(row0, tile_m + 2)]        # (tile_m+2, W+2, Ci)
    xt = jnp.maximum(xt, 0)                       # ReLU (pad zeros unaffected)

    # Nine shifted views (shared by the 4 phases), flattened to (tile_m*W, Ci).
    views = {}
    for ah in (0, 1, 2):
        for aw in (0, 1, 2):
            views[(ah, aw)] = xt[ah:ah + tile_m, aw:aw + W, :].reshape(
                tile_m * W, Ci)

    acc_sum = jnp.zeros((1, Co), jnp.float32)
    acc_sq = jnp.zeros((1, Co), jnp.float32)
    p = 0
    for ph in (0, 1):
        for pw in (0, 1):
            # Fuse the 2x2 taps of this phase into one K = 4*Ci matmul.
            xcat = jnp.concatenate(
                [views[(ah, aw)]
                 for (_, ah) in _TAPS[ph] for (_, aw) in _TAPS[pw]],
                axis=-1)                                        # (tile_m*W, 4*Ci)
            y = jnp.dot(xcat, w_ref[p],
                        preferred_element_type=jnp.float32)     # (tile_m*W, Co)
            if outermost:
                y = jnp.tanh(y + b_ref[...])
            else:
                # conv bias dropped: it cancels under BatchNorm mean subtraction
                acc_sum = acc_sum + jnp.sum(y, axis=0, keepdims=True)
                acc_sq = acc_sq + jnp.sum(y * y, axis=0, keepdims=True)
            out_ref[0, p] = y.reshape(tile_m, W, Co).astype(out_ref.dtype)
            p += 1

    if outermost:
        stats_ref[...] = jnp.zeros_like(stats_ref)
    else:
        stats_ref[0, 0] = jnp.concatenate([acc_sum, acc_sq], axis=0)


def _bn_apply_kernel(y_ref, scale_ref, shift_ref, out_ref):
    y = y_ref[...].astype(jnp.float32)
    s = scale_ref[...].reshape(1, 1, 1, 1, -1)
    t = shift_ref[...].reshape(1, 1, 1, 1, -1)
    out_ref[...] = y * s + t


@functools.partial(jax.jit, static_argnames=("outermost", "compute_dtype",
                                             "tile_m"))
def unet_skip_connection_dblock(x_nchw, weight, bias, gamma, beta, *,
                                outermost=False,
                                compute_dtype=jnp.bfloat16,
                                tile_m=None):
    """x_nchw: (N, Ci, H, W); weight: (Ci, Co, 4, 4) PyTorch layout."""
    N, Ci, H, W = x_nchw.shape
    Co = weight.shape[1]
    cdt = jnp.dtype(compute_dtype)
    tm = _pick_tile_m(H, W, Ci, Co, cdt.itemsize, tile_m)
    n_rb = H // tm

    # NCHW -> padded NHWC in the compute dtype (one XLA transpose+pad pass).
    # TODO(synk): fold the zero padding into the kernel via masked index_map
    # loads to drop this extra HBM pass entirely.
    x_nhwc = jnp.transpose(x_nchw, (0, 2, 3, 1)).astype(cdt)
    xpad = jnp.pad(x_nhwc, ((0, 0), (1, 1), (1, 1), (0, 0)))

    # Per-phase fused tap weights: (4, 4*Ci, Co); K ordered [h-tap, w-tap, ci]
    # to match the kernel's concatenation order.
    wk = jnp.transpose(weight, (2, 3, 0, 1)).astype(cdt)        # (kh, kw, Ci, Co)
    w_phase = jnp.stack(
        [jnp.concatenate(
            [wk[kh, kw] for (kh, _) in _TAPS[ph] for (kw, _) in _TAPS[pw]],
            axis=0)
         for ph in (0, 1) for pw in (0, 1)], axis=0)            # (4, 4*Ci, Co)
    b2 = bias.reshape(1, Co).astype(jnp.float32)

    inter_dtype = jnp.float32 if outermost else cdt
    cparams = pltpu.CompilerParams(
        dimension_semantics=("parallel", "parallel"),
        vmem_limit_bytes=48 * 1024 * 1024)

    kernel = functools.partial(_convt_phase_kernel, tile_m=tm,
                               outermost=outermost)
    conv_out, stats = pl.pallas_call(
        kernel,
        grid=(N, n_rb),
        in_specs=[
            pl.BlockSpec((1, H + 2, W + 2, Ci), lambda n, i: (n, 0, 0, 0)),
            pl.BlockSpec((4, 4 * Ci, Co), lambda n, i: (0, 0, 0)),
            pl.BlockSpec((1, Co), lambda n, i: (0, 0)),
        ],
        out_specs=[
            pl.BlockSpec((1, 4, tm, W, Co), lambda n, i: (n, 0, i, 0, 0)),
            pl.BlockSpec((1, 1, 2, Co), lambda n, i: (n, i, 0, 0)),
        ],
        out_shape=[
            jax.ShapeDtypeStruct((N, 4, H, W, Co), inter_dtype),
            jax.ShapeDtypeStruct((N, n_rb, 2, Co), jnp.float32),
        ],
        compiler_params=cparams,
    )(xpad, w_phase, b2)

    if outermost:
        y_planar = conv_out                       # tanh(conv + bias), f32
    else:
        # Tiny cross-tile reduction of the BN partials (E[y^2] - E[y]^2).
        cnt = jnp.float32(4 * N * H * W)
        tot = jnp.sum(stats[:, :, 0, :], axis=(0, 1))           # (Co,)
        tot2 = jnp.sum(stats[:, :, 1, :], axis=(0, 1))
        mean = tot / cnt
        var = tot2 / cnt - mean * mean                          # biased variance
        scale = (gamma.astype(jnp.float32) * lax.rsqrt(var + EPS)).reshape(1, Co)
        shift = (beta.astype(jnp.float32) - mean * scale[0]).reshape(1, Co)

        y_planar = pl.pallas_call(
            _bn_apply_kernel,
            grid=(N, n_rb),
            in_specs=[
                pl.BlockSpec((1, 4, tm, W, Co), lambda n, i: (n, 0, i, 0, 0)),
                pl.BlockSpec((1, Co), lambda n, i: (0, 0)),
                pl.BlockSpec((1, Co), lambda n, i: (0, 0)),
            ],
            out_specs=pl.BlockSpec((1, 4, tm, W, Co),
                                   lambda n, i: (n, 0, i, 0, 0)),
            out_shape=jax.ShapeDtypeStruct((N, 4, H, W, Co), jnp.float32),
            compiler_params=cparams,
        )(conv_out, scale, shift)

    # Phase-planar (N, ph*2+pw, H, W, Co) -> NCHW (N, Co, 2H, 2W): one transpose.
    y6 = y_planar.reshape(N, 2, 2, H, W, Co)
    return jnp.transpose(y6, (0, 5, 3, 1, 4, 2)).reshape(N, Co, 2 * H, 2 * W)


# ---------------------------------------------------------------------------
# Pure-JAX references
# ---------------------------------------------------------------------------
def _reference_conv(x, weight, bias):
    """ReLU -> ConvTranspose2d(k=4, s=2, p=1) + bias (f32)."""
    xr = jnp.maximum(x, 0.0)
    w_flip = jnp.transpose(weight, (1, 0, 2, 3))[:, :, ::-1, ::-1]  # (Co,Ci,4,4)
    y = lax.conv_general_dilated(
        xr, w_flip, window_strides=(1, 1), padding=((2, 2), (2, 2)),
        lhs_dilation=(2, 2), dimension_numbers=('NCHW', 'OIHW', 'NCHW'))
    return y + bias.reshape(1, -1, 1, 1)


def _reference_bn(x, weight, bias, gamma, beta):
    y = _reference_conv(x, weight, bias)
    mean = jnp.mean(y, axis=(0, 2, 3), keepdims=True)
    var = jnp.mean((y - mean) ** 2, axis=(0, 2, 3), keepdims=True)
    return ((y - mean) * lax.rsqrt(var + EPS) * gamma.reshape(1, -1, 1, 1)
            + beta.reshape(1, -1, 1, 1))


def _reference_tanh(x, weight, bias):
    return jnp.tanh(_reference_conv(x, weight, bias))


if __name__ == "__main__":
    N, inner_nc, outer_nc, H, W = 2, 8, 4, 16, 16

    key = jax.random.PRNGKey(0)
    kx, kw, kb, kg, kbe = jax.random.split(key, 5)
    x = jax.random.normal(kx, (N, inner_nc, H, W), dtype=jnp.float32)
    weight = 0.1 * jax.random.normal(kw, (inner_nc, outer_nc, 4, 4), jnp.float32)
    bias = 0.1 * jax.random.normal(kb, (outer_nc,), jnp.float32)
    gamma = 1.0 + 0.1 * jax.random.normal(kg, (outer_nc,), jnp.float32)
    beta = 0.1 * jax.random.normal(kbe, (outer_nc,), jnp.float32)

    ref_bn = jax.block_until_ready(_reference_bn(x, weight, bias, gamma, beta))
    ref_tanh = jax.block_until_ready(_reference_tanh(x, weight, bias))

    # 1) BN path, f32 compute: tight tolerance.
    out_f32 = jax.block_until_ready(
        unet_skip_connection_dblock(x, weight, bias, gamma, beta,
                                    compute_dtype=jnp.float32, tile_m=8))
    assert out_f32.shape == (N, outer_nc, 2 * H, 2 * W), out_f32.shape
    np.testing.assert_allclose(np.asarray(out_f32), np.asarray(ref_bn),
                               rtol=1e-3, atol=1e-3)

    # 2) BN path, bf16 matmul operands: deliberately loosened tolerance.
    out_bf16 = jax.block_until_ready(
        unet_skip_connection_dblock(x, weight, bias, gamma, beta,
                                    compute_dtype=jnp.bfloat16, tile_m=8))
    np.testing.assert_allclose(np.asarray(out_bf16), np.asarray(ref_bn),
                               rtol=5e-2, atol=5e-2)

    # 3) Outermost path (ReLU -> ConvTranspose -> Tanh), bf16 operands.
    out_tanh = jax.block_until_ready(
        unet_skip_connection_dblock(x, weight, bias, gamma, beta,
                                    outermost=True,
                                    compute_dtype=jnp.bfloat16, tile_m=8))
    assert out_tanh.shape == (N, outer_nc, 2 * H, 2 * W), out_tanh.shape
    np.testing.assert_allclose(np.asarray(out_tanh), np.asarray(ref_tanh),
                               rtol=5e-2, atol=5e-2)

    print("KERNEL_OK")
</pallas_src>

<mosaic_0001>
module attributes {stable_mosaic.version = 11 : i64} {
  func.func @_convt_phase_kernel(%arg0: i32, %arg1: i32, %arg2: memref<1x18x18x8xf32, #tpu.memory_space<vmem>>, %arg3: memref<4x32x4xf32, #tpu.memory_space<vmem>>, %arg4: memref<1x4xf32, #tpu.memory_space<vmem>>, %arg5: memref<1x4x8x16x4xf32, #tpu.memory_space<vmem>>, %arg6: memref<1x1x2x4xf32, #tpu.memory_space<vmem>>) attributes {dimension_semantics = [#tpu.dimension_semantics<parallel>, #tpu.dimension_semantics<parallel>], iteration_bounds = array<i64: 2, 2>, scalar_prefetch = 0 : i64, scratch_operands = 0 : i64, tpu.core_type = #tpu.core_type<tc>, window_params = [{transform_indices = @transform_0, window_bounds = array<i64: 1, 18, 18, 8>}, {pipeline_mode = #tpu.pipeline_mode<synchronous>, transform_indices = @transform_1, window_bounds = array<i64: 4, 32, 4>}, {pipeline_mode = #tpu.pipeline_mode<synchronous>, transform_indices = @transform_2, window_bounds = array<i64: 1, 4>}, {transform_indices = @transform_3, window_bounds = array<i64: 1, 4, 8, 16, 4>}, {transform_indices = @transform_4, window_bounds = array<i64: 1, 1, 2, 4>}]} {
    %c8_i32 = arith.constant 8 : i32
    %0 = arith.muli %arg1, %c8_i32 : i32
    %1 = tpu.assume_multiple %0, 8 : i32
    %c0 = arith.constant 0 : index
    %2 = arith.index_cast %1 : i32 to index
    %c0_0 = arith.constant 0 : index
    %c0_1 = arith.constant 0 : index
    %3 = vector.load %arg2[%c0, %2, %c0_0, %c0_1] : memref<1x18x18x8xf32, #tpu.memory_space<vmem>>, vector<1x10x18x8xf32>
    %4 = vector.shape_cast %3 : vector<1x10x18x8xf32> to vector<10x18x8xf32>
    %cst = arith.constant 0.000000e+00 : f32
    %5 = vector.broadcast %cst : f32 to vector<10x18x8xf32>
    %6 = arith.maximumf %4, %5 : vector<10x18x8xf32>
    %7 = vector.extract_strided_slice %6 {offsets = [0, 0, 0], sizes = [8, 16, 8], strides = [1, 1, 1]} : vector<10x18x8xf32> to vector<8x16x8xf32>
    %8 = vector.shape_cast %7 : vector<8x16x8xf32> to vector<128x8xf32>
    %9 = vector.extract_strided_slice %6 {offsets = [0, 1, 0], sizes = [8, 16, 8], strides = [1, 1, 1]} : vector<10x18x8xf32> to vector<8x16x8xf32>
    %10 = vector.shape_cast %9 : vector<8x16x8xf32> to vector<128x8xf32>
    %11 = vector.extract_strided_slice %6 {offsets = [0, 2, 0], sizes = [8, 16, 8], strides = [1, 1, 1]} : vector<10x18x8xf32> to vector<8x16x8xf32>
    %12 = vector.shape_cast %11 : vector<8x16x8xf32> to vector<128x8xf32>
    %13 = vector.extract_strided_slice %6 {offsets = [1, 0, 0], sizes = [8, 16, 8], strides = [1, 1, 1]} : vector<10x18x8xf32> to vector<8x16x8xf32>
    %14 = vector.shape_cast %13 : vector<8x16x8xf32> to vector<128x8xf32>
    %15 = vector.extract_strided_slice %6 {offsets = [1, 1, 0], sizes = [8, 16, 8], strides = [1, 1, 1]} : vector<10x18x8xf32> to vector<8x16x8xf32>
    %16 = vector.shape_cast %15 : vector<8x16x8xf32> to vector<128x8xf32>
    %17 = vector.extract_strided_slice %6 {offsets = [1, 2, 0], sizes = [8, 16, 8], strides = [1, 1, 1]} : vector<10x18x8xf32> to vector<8x16x8xf32>
    %18 = vector.shape_cast %17 : vector<8x16x8xf32> to vector<128x8xf32>
    %19 = vector.extract_strided_slice %6 {offsets = [2, 0, 0], sizes = [8, 16, 8], strides = [1, 1, 1]} : vector<10x18x8xf32> to vector<8x16x8xf32>
    %20 = vector.shape_cast %19 : vector<8x16x8xf32> to vector<128x8xf32>
    %21 = vector.extract_strided_slice %6 {offsets = [2, 1, 0], sizes = [8, 16, 8], strides = [1, 1, 1]} : vector<10x18x8xf32> to vector<8x16x8xf32>
    %22 = vector.shape_cast %21 : vector<8x16x8xf32> to vector<128x8xf32>
    %23 = vector.extract_strided_slice %6 {offsets = [2, 2, 0], sizes = [8, 16, 8], strides = [1, 1, 1]} : vector<10x18x8xf32> to vector<8x16x8xf32>
    %24 = vector.shape_cast %23 : vector<8x16x8xf32> to vector<128x8xf32>
    %cst_2 = arith.constant 0.000000e+00 : f32
    %25 = vector.broadcast %cst_2 : f32 to vector<1x4xf32>
    %cst_3 = arith.constant 0.000000e+00 : f32
    %26 = vector.broadcast %cst_3 : f32 to vector<1x4xf32>
    %27 = tpu.concatenate %16, %14, %10, %8 in 1 : vector<128x8xf32>, vector<128x8xf32>, vector<128x8xf32>, vector<128x8xf32> -> vector<128x32xf32>
    %c0_4 = arith.constant 0 : index
    %c0_5 = arith.constant 0 : index
    %c0_6 = arith.constant 0 : index
    %28 = vector.load %arg3[%c0_4, %c0_5, %c0_6] : memref<4x32x4xf32, #tpu.memory_space<vmem>>, vector<1x32x4xf32>
    %29 = vector.shape_cast %28 : vector<1x32x4xf32> to vector<32x4xf32>
    %cst_7 = arith.constant dense<0.000000e+00> : vector<128x4xf32>
    %30 = tpu.matmul %27, %29, %cst_7 {dimension_numbers = #tpu.dot_dimension_numbers<[1], [0], [0], [1], [0, 0, 1, 1], [], []>} : vector<128x32xf32>, vector<32x4xf32>, vector<128x4xf32> -> vector<128x4xf32>
    %cst_8 = arith.constant dense<0.000000e+00> : vector<4xf32>
    %31 = vector.multi_reduction <add>, %30, %cst_8 [0] : vector<128x4xf32> to vector<4xf32>
    %32 = vector.shape_cast %31 : vector<4xf32> to vector<1x4xf32>
    %33 = arith.addf %25, %32 : vector<1x4xf32>
    %34 = arith.mulf %30, %30 : vector<128x4xf32>
    %cst_9 = arith.constant dense<0.000000e+00> : vector<4xf32>
    %35 = vector.multi_reduction <add>, %34, %cst_9 [0] : vector<128x4xf32> to vector<4xf32>
    %36 = vector.shape_cast %35 : vector<4xf32> to vector<1x4xf32>
    %37 = arith.addf %26, %36 : vector<1x4xf32>
    %38 = vector.shape_cast %30 : vector<128x4xf32> to vector<8x16x4xf32>
    %c0_10 = arith.constant 0 : index
    %c0_11 = arith.constant 0 : index
    %c0_12 = arith.constant 0 : index
    %c0_13 = arith.constant 0 : index
    %c0_14 = arith.constant 0 : index
    %39 = vector.load %arg5[%c0_10, %c0_11, %c0_12, %c0_13, %c0_14] : memref<1x4x8x16x4xf32, #tpu.memory_space<vmem>>, vector<1x1x8x16x4xf32>
    %40 = vector.shape_cast %39 : vector<1x1x8x16x4xf32> to vector<8x16x4xf32>
    %41 = vector.shape_cast %38 : vector<8x16x4xf32> to vector<1x1x8x16x4xf32>
    tpu.vector_store %arg5[%c0_10, %c0_11, %c0_12, %c0_13, %c0_14], %41 {strides = array<i32>} : memref<1x4x8x16x4xf32, #tpu.memory_space<vmem>>, vector<1x1x8x16x4xf32>,
    %42 = tpu.concatenate %18, %16, %12, %10 in 1 : vector<128x8xf32>, vector<128x8xf32>, vector<128x8xf32>, vector<128x8xf32> -> vector<128x32xf32>
    %c1 = arith.constant 1 : index
    %c0_15 = arith.constant 0 : index
    %c0_16 = arith.constant 0 : index
    %43 = vector.load %arg3[%c1, %c0_15, %c0_16] : memref<4x32x4xf32, #tpu.memory_space<vmem>>, vector<1x32x4xf32>
    %44 = vector.shape_cast %43 : vector<1x32x4xf32> to vector<32x4xf32>
    %cst_17 = arith.constant dense<0.000000e+00> : vector<128x4xf32>
    %45 = tpu.matmul %42, %44, %cst_17 {dimension_numbers = #tpu.dot_dimension_numbers<[1], [0], [0], [1], [0, 0, 1, 1], [], []>} : vector<128x32xf32>, vector<32x4xf32>, vector<128x4xf32> -> vector<128x4xf32>
    %cst_18 = arith.constant dense<0.000000e+00> : vector<4xf32>
    %46 = vector.multi_reduction <add>, %45, %cst_18 [0] : vector<128x4xf32> to vector<4xf32>
    %47 = vector.shape_cast %46 : vector<4xf32> to vector<1x4xf32>
    %48 = arith.addf %33, %47 : vector<1x4xf32>
    %49 = arith.mulf %45, %45 : vector<128x4xf32>
    %cst_19 = arith.constant dense<0.000000e+00> : vector<4xf32>
    %50 = vector.multi_reduction <add>, %49, %cst_19 [0] : vector<128x4xf32> to vector<4xf32>
    %51 = vector.shape_cast %50 : vector<4xf32> to vector<1x4xf32>
    %52 = arith.addf %37, %51 : vector<1x4xf32>
    %53 = vector.shape_cast %45 : vector<128x4xf32> to vector<8x16x4xf32>
    %c0_20 = arith.constant 0 : index
    %c1_21 = arith.constant 1 : index
    %c0_22 = arith.constant 0 : index
    %c0_23 = arith.constant 0 : index
    %c0_24 = arith.constant 0 : index
    %54 = vector.load %arg5[%c0_20, %c1_21, %c0_22, %c0_23, %c0_24] : memref<1x4x8x16x4xf32, #tpu.memory_space<vmem>>, vector<1x1x8x16x4xf32>
    %55 = vector.shape_cast %54 : vector<1x1x8x16x4xf32> to vector<8x16x4xf32>
    %56 = vector.shape_cast %53 : vector<8x16x4xf32> to vector<1x1x8x16x4xf32>
    tpu.vector_store %arg5[%c0_20, %c1_21, %c0_22, %c0_23, %c0_24], %56 {strides = array<i32>} : memref<1x4x8x16x4xf32, #tpu.memory_space<vmem>>, vector<1x1x8x16x4xf32>,
    %57 = tpu.concatenate %22, %20, %16, %14 in 1 : vector<128x8xf32>, vector<128x8xf32>, vector<128x8xf32>, vector<128x8xf32> -> vector<128x32xf32>
    %c2 = arith.constant 2 : index
    %c0_25 = arith.constant 0 : index
    %c0_26 = arith.constant 0 : index
    %58 = vector.load %arg3[%c2, %c0_25, %c0_26] : memref<4x32x4xf32, #tpu.memory_space<vmem>>, vector<1x32x4xf32>
    %59 = vector.shape_cast %58 : vector<1x32x4xf32> to vector<32x4xf32>
    %cst_27 = arith.constant dense<0.000000e+00> : vector<128x4xf32>
    %60 = tpu.matmul %57, %59, %cst_27 {dimension_numbers = #tpu.dot_dimension_numbers<[1], [0], [0], [1], [0, 0, 1, 1], [], []>} : vector<128x32xf32>, vector<32x4xf32>, vector<128x4xf32> -> vector<128x4xf32>
    %cst_28 = arith.constant dense<0.000000e+00> : vector<4xf32>
    %61 = vector.multi_reduction <add>, %60, %cst_28 [0] : vector<128x4xf32> to vector<4xf32>
    %62 = vector.shape_cast %61 : vector<4xf32> to vector<1x4xf32>
    %63 = arith.addf %48, %62 : vector<1x4xf32>
    %64 = arith.mulf %60, %60 : vector<128x4xf32>
    %cst_29 = arith.constant dense<0.000000e+00> : vector<4xf32>
    %65 = vector.multi_reduction <add>, %64, %cst_29 [0] : vector<128x4xf32> to vector<4xf32>
    %66 = vector.shape_cast %65 : vector<4xf32> to vector<1x4xf32>
    %67 = arith.addf %52, %66 : vector<1x4xf32>
    %68 = vector.shape_cast %60 : vector<128x4xf32> to vector<8x16x4xf32>
    %c0_30 = arith.constant 0 : index
    %c2_31 = arith.constant 2 : index
    %c0_32 = arith.constant 0 : index
    %c0_33 = arith.constant 0 : index
    %c0_34 = arith.constant 0 : index
    %69 = vector.load %arg5[%c0_30, %c2_31, %c0_32, %c0_33, %c0_34] : memref<1x4x8x16x4xf32, #tpu.memory_space<vmem>>, vector<1x1x8x16x4xf32>
    %70 = vector.shape_cast %69 : vector<1x1x8x16x4xf32> to vector<8x16x4xf32>
    %71 = vector.shape_cast %68 : vector<8x16x4xf32> to vector<1x1x8x16x4xf32>
    tpu.vector_store %arg5[%c0_30, %c2_31, %c0_32, %c0_33, %c0_34], %71 {strides = array<i32>} : memref<1x4x8x16x4xf32, #tpu.memory_space<vmem>>, vector<1x1x8x16x4xf32>,
    %72 = tpu.concatenate %24, %22, %18, %16 in 1 : vector<128x8xf32>, vector<128x8xf32>, vector<128x8xf32>, vector<128x8xf32> -> vector<128x32xf32>
    %c3 = arith.constant 3 : index
    %c0_35 = arith.constant 0 : index
    %c0_36 = arith.constant 0 : index
    %73 = vector.load %arg3[%c3, %c0_35, %c0_36] : memref<4x32x4xf32, #tpu.memory_space<vmem>>, vector<1x32x4xf32>
    %74 = vector.shape_cast %73 : vector<1x32x4xf32> to vector<32x4xf32>
    %cst_37 = arith.constant dense<0.000000e+00> : vector<128x4xf32>
    %75 = tpu.matmul %72, %74, %cst_37 {dimension_numbers = #tpu.dot_dimension_numbers<[1], [0], [0], [1], [0, 0, 1, 1], [], []>} : vector<128x32xf32>, vector<32x4xf32>, vector<128x4xf32> -> vector<128x4xf32>
    %cst_38 = arith.constant dense<0.000000e+00> : vector<4xf32>
    %76 = vector.multi_reduction <add>, %75, %cst_38 [0] : vector<128x4xf32> to vector<4xf32>
    %77 = vector.shape_cast %76 : vector<4xf32> to vector<1x4xf32>
    %78 = arith.addf %63, %77 : vector<1x4xf32>
    %79 = arith.mulf %75, %75 : vector<128x4xf32>
    %cst_39 = arith.constant dense<0.000000e+00> : vector<4xf32>
    %80 = vector.multi_reduction <add>, %79, %cst_39 [0] : vector<128x4xf32> to vector<4xf32>
    %81 = vector.shape_cast %80 : vector<4xf32> to vector<1x4xf32>
    %82 = arith.addf %67, %81 : vector<1x4xf32>
    %83 = vector.shape_cast %75 : vector<128x4xf32> to vector<8x16x4xf32>
    %c0_40 = arith.constant 0 : index
    %c3_41 = arith.constant 3 : index
    %c0_42 = arith.constant 0 : index
    %c0_43 = arith.constant 0 : index
    %c0_44 = arith.constant 0 : index
    %84 = vector.load %arg5[%c0_40, %c3_41, %c0_42, %c0_43, %c0_44] : memref<1x4x8x16x4xf32, #tpu.memory_space<vmem>>, vector<1x1x8x16x4xf32>
    %85 = vector.shape_cast %84 : vector<1x1x8x16x4xf32> to vector<8x16x4xf32>
    %86 = vector.shape_cast %83 : vector<8x16x4xf32> to vector<1x1x8x16x4xf32>
    tpu.vector_store %arg5[%c0_40, %c3_41, %c0_42, %c0_43, %c0_44], %86 {strides = array<i32>} : memref<1x4x8x16x4xf32, #tpu.memory_space<vmem>>, vector<1x1x8x16x4xf32>,
    %87 = tpu.concatenate %78, %82 in 0 : vector<1x4xf32>, vector<1x4xf32> -> vector<2x4xf32>
    %c0_45 = arith.constant 0 : index
    %c0_46 = arith.constant 0 : index
    %c0_47 = arith.constant 0 : index
    %c0_48 = arith.constant 0 : index
    %88 = vector.load %arg6[%c0_45, %c0_46, %c0_47, %c0_48] : memref<1x1x2x4xf32, #tpu.memory_space<vmem>>, vector<1x1x2x4xf32>
    %89 = vector.shape_cast %88 : vector<1x1x2x4xf32> to vector<2x4xf32>
    %90 = vector.shape_cast %87 : vector<2x4xf32> to vector<1x1x2x4xf32>
    tpu.vector_store %arg6[%c0_45, %c0_46, %c0_47, %c0_48], %90 {strides = array<i32>} : memref<1x1x2x4xf32, #tpu.memory_space<vmem>>, vector<1x1x2x4xf32>,
    return
  }
  func.func @transform_0(%arg0: i32, %arg1: i32) -> (i32, i32, i32, i32) {
    %c0_i32 = arith.constant 0 : i32
    %c0_i32_0 = arith.constant 0 : i32
    %c0_i32_1 = arith.constant 0 : i32
    %c0_i32_2 = arith.constant 0 : i32
    return %arg0, %c0_i32, %c0_i32_0, %c0_i32_1 : i32, i32, i32, i32
  }
  func.func @transform_1(%arg0: i32, %arg1: i32) -> (i32, i32, i32) {
    %c0_i32 = arith.constant 0 : i32
    %c0_i32_0 = arith.constant 0 : i32
    %c0_i32_1 = arith.constant 0 : i32
    %c0_i32_2 = arith.constant 0 : i32
    return %c0_i32, %c0_i32_0, %c0_i32_1 : i32, i32, i32
  }
  func.func @transform_2(%arg0: i32, %arg1: i32) -> (i32, i32) {
    %c0_i32 = arith.constant 0 : i32
    %c0_i32_0 = arith.constant 0 : i32
    %c0_i32_1 = arith.constant 0 : i32
    return %c0_i32, %c0_i32_0 : i32, i32
  }
  func.func @transform_3(%arg0: i32, %arg1: i32) -> (i32, i32, i32, i32, i32) {
    %c0_i32 = arith.constant 0 : i32
    %c0_i32_0 = arith.constant 0 : i32
    %c0_i32_1 = arith.constant 0 : i32
    %c0_i32_2 = arith.constant 0 : i32
    return %arg0, %c0_i32, %arg1, %c0_i32_0, %c0_i32_1 : i32, i32, i32, i32, i32
  }
  func.func @transform_4(%arg0: i32, %arg1: i32) -> (i32, i32, i32, i32) {
    %c0_i32 = arith.constant 0 : i32
    %c0_i32_0 = arith.constant 0 : i32
    %c0_i32_1 = arith.constant 0 : i32
    return %arg0, %arg1, %c0_i32, %c0_i32_0 : i32, i32, i32, i32
  }
}

module attributes {stable_mosaic.version = 11 : i64} {
  func.func @_bn_apply_kernel(%arg0: i32, %arg1: i32, %arg2: memref<1x4x8x16x4xf32, #tpu.memory_space<vmem>>, %arg3: memref<1x4xf32, #tpu.memory_space<vmem>>, %arg4: memref<1x4xf32, #tpu.memory_space<vmem>>, %arg5: memref<1x4x8x16x4xf32, #tpu.memory_space<vmem>>) attributes {dimension_semantics = [#tpu.dimension_semantics<parallel>, #tpu.dimension_semantics<parallel>], iteration_bounds = array<i64: 2, 2>, scalar_prefetch = 0 : i64, scratch_operands = 0 : i64, tpu.core_type = #tpu.core_type<tc>, window_params = [{transform_indices = @transform_0, window_bounds = array<i64: 1, 4, 8, 16, 4>}, {pipeline_mode = #tpu.pipeline_mode<synchronous>, transform_indices = @transform_1, window_bounds = array<i64: 1, 4>}, {pipeline_mode = #tpu.pipeline_mode<synchronous>, transform_indices = @transform_2, window_bounds = array<i64: 1, 4>}, {transform_indices = @transform_3, window_bounds = array<i64: 1, 4, 8, 16, 4>}]} {
    %c0 = arith.constant 0 : index
    %c0_0 = arith.constant 0 : index
    %c0_1 = arith.constant 0 : index
    %c0_2 = arith.constant 0 : index
    %c0_3 = arith.constant 0 : index
    %0 = vector.load %arg2[%c0, %c0_0, %c0_1, %c0_2, %c0_3] : memref<1x4x8x16x4xf32, #tpu.memory_space<vmem>>, vector<1x4x8x16x4xf32>
    %c0_4 = arith.constant 0 : index
    %c0_5 = arith.constant 0 : index
    %1 = vector.load %arg3[%c0_4, %c0_5] : memref<1x4xf32, #tpu.memory_space<vmem>>, vector<1x4xf32>
    %2 = vector.shape_cast %1 : vector<1x4xf32> to vector<1x1x1x1x4xf32>
    %c0_6 = arith.constant 0 : index
    %c0_7 = arith.constant 0 : index
    %3 = vector.load %arg4[%c0_6, %c0_7] : memref<1x4xf32, #tpu.memory_space<vmem>>, vector<1x4xf32>
    %4 = vector.shape_cast %3 : vector<1x4xf32> to vector<1x1x1x1x4xf32>
    %5 = vector.broadcast %2 : vector<1x1x1x1x4xf32> to vector<1x4x8x16x4xf32>
    %6 = arith.mulf %0, %5 : vector<1x4x8x16x4xf32>
    %7 = vector.broadcast %4 : vector<1x1x1x1x4xf32> to vector<1x4x8x16x4xf32>
    %8 = arith.addf %6, %7 : vector<1x4x8x16x4xf32>
    %c0_8 = arith.constant 0 : index
    %c0_9 = arith.constant 0 : index
    %c0_10 = arith.constant 0 : index
    %c0_11 = arith.constant 0 : index
    %c0_12 = arith.constant 0 : index
    %9 = vector.load %arg5[%c0_8, %c0_9, %c0_10, %c0_11, %c0_12] : memref<1x4x8x16x4xf32, #tpu.memory_space<vmem>>, vector<1x4x8x16x4xf32>
    tpu.vector_store %arg5[%c0_8, %c0_9, %c0_10, %c0_11, %c0_12], %8 {strides = array<i32>} : memref<1x4x8x16x4xf32, #tpu.memory_space<vmem>>, vector<1x4x8x16x4xf32>,
    return
  }
  func.func @transform_0(%arg0: i32, %arg1: i32) -> (i32, i32, i32, i32, i32) {
    %c0_i32 = arith.constant 0 : i32
    %c0_i32_0 = arith.constant 0 : i32
    %c0_i32_1 = arith.constant 0 : i32
    %c0_i32_2 = arith.constant 0 : i32
    return %arg0, %c0_i32, %arg1, %c0_i32_0, %c0_i32_1 : i32, i32, i32, i32, i32
  }
  func.func @transform_1(%arg0: i32, %arg1: i32) -> (i32, i32) {
    %c0_i32 = arith.constant 0 : i32
    %c0_i32_0 = arith.constant 0 : i32
    %c0_i32_1 = arith.constant 0 : i32
    return %c0_i32, %c0_i32_0 : i32, i32
  }
  func.func @transform_2(%arg0: i32, %arg1: i32) -> (i32, i32) {
    %c0_i32 = arith.constant 0 : i32
    %c0_i32_0 = arith.constant 0 : i32
    %c0_i32_1 = arith.constant 0 : i32
    return %c0_i32, %c0_i32_0 : i32, i32
  }
  func.func @transform_3(%arg0: i32, %arg1: i32) -> (i32, i32, i32, i32, i32) {
    %c0_i32 = arith.constant 0 : i32
    %c0_i32_0 = arith.constant 0 : i32
    %c0_i32_1 = arith.constant 0 : i32
    %c0_i32_2 = arith.constant 0 : i32
    return %arg0, %c0_i32, %arg1, %c0_i32_0, %c0_i32_1 : i32, i32, i32, i32, i32
  }
}

</mosaic_0001>

<bundles_post_ra>
// kernel: unet_skip_connection_dblock.3
= control target key start
LH: loop header
LB: loop body
LE: loop exit
PB: predicated region body
PF: predicated region fallthrough
CT: control target
= control target key end

     0   :  { %s1270_s12 = smov 0   ;;  %s1272_s13 = smov 0   ;;  %s1966_s0 = inlined_call_operand.vmem [shape: f32[2,4,16,16,4], index: 0, kind: input, shape index: {}]   ;;  %s1967_s1 = inlined_call_operand.vmem [shape: f32[1,4], index: 1, kind: input, shape index: {}]   ;;  %s1968_s2 = inlined_call_operand.vmem [shape: f32[1,4], index: 2, kind: input, shape index: {}]   ;;  %s1969_s3 = inlined_call_operand.vmem [shape: f32[2,4,16,16,4], index: 3, kind: output, shape index: {}]  }
   0x1   :  { %s1274_s14 = smov 0   ;;  %s1276_s15 = smov 0  }
   0x2   :  { %s1278_s16 = smov 0   ;;  %s1280_s17 = smov 0  }
   0x3   :  { %s1282_s18 = smov 0  }
   0x4 LB: > { %s22_s19 = sadd.s32 1, %s1240_s16  ;;  %s25_s20 = sadd.s32 1, %s1244_s17  ;;  %s1248_s18 = sphi %s1282_s18, %s13_s18   ;;  %s1244_s17 = sphi %s1280_s17, %s1976_s17   ;;  %s1240_s16 = sphi %s1278_s16, %s1975_s16   ;;  %s1236_s15 = sphi %s1276_s15, %s1974_s15   ;;  %s1232_s14 = sphi %s1274_s14, %s1973_s14   ;;  %s1228_s13 = sphi %s1272_s13, %s1972_s13   ;;  %s1224_s12 = sphi %s1270_s12, %s1971_s12  }
   0x5   : > { %p23_p0 = scmp.ge.s32.totalorder %s22_s19, 2  ;;  %s1115_s21 = sadd.s32 4294967295, %s1248_s18  }
   0x6   : > { %p41_p1 = scmp.ne.s32.totalorder %s1228_s13, %s1224_s12  ;;  %p42_p2 = scmp.eq.s32.totalorder %s1248_s18, 0 }
   0x7   : > { %s1978_s19 = smov (%p23_p0, %s22_s19), 0  ;;  %s1980_s20 = smov (!%p23_p0, %s25_s20), %s1244_s17 }
   0x8   : > { %p27_p3 = scmp.ge.s32.totalorder %s1980_s20, 2  ;;  %p115_p4 = scmp.eq.s32.totalorder %s1115_s21, 3 }
   0x9   : > { %s30_s22 = ssub.s32 %s1240_s16, %s1978_s19  ;;  %p43_p5 = por %p42_p2, %p41_p1 }
   0xa   : > { %s1982_s20 = smov (%p27_p3, %s1980_s20), 0  ;;  %p1318_p6 = por %p115_p4, %p41_p1 }
   0xb   : > { %s29_s24 = ssub.s32 %s1244_s17, %s1982_s20  ;;  %s34_s26 = sadd.s32 1, %s1228_s13 }
   0xc   : > { %s31_s25 = sor.u32 %s30_s22, %s29_s24  ;;  %p1118_p8 = scmp.ge.s32.totalorder %s1248_s18, 4 }
   0xd   : > { %p32_p7 = scmp.eq.s32.totalorder %s31_s25, 0 }
   0xe   : > { %143 = sbr.rel (%p1118_p8) target bundleno = 60 (0x3c), region = 24 }
   0xf   : > { %s1326_s27 = scalar_select %p32_p7, %s1228_s13, %s34_s26  }
  0x15   : > { %146 = sbr.rel (!%p43_p5) target bundleno = 60 (0x3c), region = 28  ;;  %s148_s28 = sand.u32 (%p43_p5), 1, %s1228_s13  }
  0x16   : > { %s1136_s29 = sshll.u32 (%p43_p5), %s1240_s16, 4  ;;  %s1119_s30 = sshll.u32 (%p43_p5), %s148_s28, 9 }
  0x17   : > { %s1122_s4 = sshll.u32 (%p43_p5), %s1244_s17, 7  ;;  %s1340_s10 = scalar_lea.vmem (%p43_p5), [#allocation2], %s1119_s30 }
  0x18   : > { %s154_s5 = sadd.s32 (%p43_p5), %s1136_s29, %s1122_s4 }
  0x19   : > { %s1123_s6 = sshll.u32 (%p43_p5), %s154_s5, 3 }
  0x1a   : > { %s1335_s9 = scalar_lea.vmem (%p43_p5), %s1966_s0, %s1123_s6 }
  0x1b   : > { %v310_v0 = vld [vmem:[%s1335_s9] sm:$0xff] (%p43_p5)  ;;  %v312_v1 = vld [vmem:[%s1335_s9 + $0x8] sm:$0xff] (%p43_p5)  ;;  %v314_v2 = vld [vmem:[%s1335_s9 + $0x10] sm:$0xff] (%p43_p5) }
  0x1c   : > { %311 = vst [vmem:[%s1340_s10] sm:$0xff] %v310_v0  ;;  %313 = vst [vmem:[%s1340_s10 + $0x8] sm:$0xff] %v312_v1  ;;  %v316_v3 = vld [vmem:[%s1335_s9 + $0x18] sm:$0xff]  ;;  %v318_v4 = vld [vmem:[%s1335_s9 + $0x20] sm:$0xff] }
  0x1d   : > { %315 = vst [vmem:[%s1340_s10 + $0x10] sm:$0xff] %v314_v2  ;;  %v320_v5 = vld [vmem:[%s1335_s9 + $0x28] sm:$0xff]  ;;  %317 = vst [vmem:[%s1340_s10 + $0x18] sm:$0xff] %v316_v3  ;;  %v322_v6 = vld [vmem:[%s1335_s9 + $0x30] sm:$0xff] }
  0x1e   : > { %319 = vst [vmem:[%s1340_s10 + $0x20] sm:$0xff] %v318_v4  ;;  %321 = vst [vmem:[%s1340_s10 + $0x28] sm:$0xff] %v320_v5  ;;  %v324_v7 = vld [vmem:[%s1335_s9 + $0x38] sm:$0xff]  ;;  %v326_v8 = vld [vmem:[%s1335_s9 + $0x40] sm:$0xff] }
  0x1f   : > { %323 = vst [vmem:[%s1340_s10 + $0x30] sm:$0xff] %v322_v6  ;;  %325 = vst [vmem:[%s1340_s10 + $0x38] sm:$0xff] %v324_v7  ;;  %v328_v9 = vld [vmem:[%s1335_s9 + $0x48] sm:$0xff]  ;;  %v330_v10 = vld [vmem:[%s1335_s9 + $0x50] sm:$0xff] }
  0x20   : > { %327 = vst [vmem:[%s1340_s10 + $0x40] sm:$0xff] %v326_v8  ;;  %v332_v11 = vld [vmem:[%s1335_s9 + $0x58] sm:$0xff]  ;;  %329 = vst [vmem:[%s1340_s10 + $0x48] sm:$0xff] %v328_v9  ;;  %v334_v12 = vld [vmem:[%s1335_s9 + $0x60] sm:$0xff] }
  0x21   : > { %331 = vst [vmem:[%s1340_s10 + $0x50] sm:$0xff] %v330_v10  ;;  %333 = vst [vmem:[%s1340_s10 + $0x58] sm:$0xff] %v332_v11  ;;  %v336_v13 = vld [vmem:[%s1335_s9 + $0x68] sm:$0xff]  ;;  %v338_v14 = vld [vmem:[%s1335_s9 + $0x70] sm:$0xff] }
  0x22   : > { %335 = vst [vmem:[%s1340_s10 + $0x60] sm:$0xff] %v334_v12  ;;  %337 = vst [vmem:[%s1340_s10 + $0x68] sm:$0xff] %v336_v13  ;;  %v340_v15 = vld [vmem:[%s1335_s9 + $0x78] sm:$0xff]  ;;  %v342_v16 = vld [vmem:[%s1335_s9 + $0x100] sm:$0xff] }
  0x23   : > { %339 = vst [vmem:[%s1340_s10 + $0x70] sm:$0xff] %v338_v14  ;;  %v344_v17 = vld [vmem:[%s1335_s9 + $0x108] sm:$0xff]  ;;  %341 = vst [vmem:[%s1340_s10 + $0x78] sm:$0xff] %v340_v15  ;;  %v346_v18 = vld [vmem:[%s1335_s9 + $0x110] sm:$0xff] }
  0x24   : > { %343 = vst [vmem:[%s1340_s10 + $0x80] sm:$0xff] %v342_v16  ;;  %345 = vst [vmem:[%s1340_s10 + $0x88] sm:$0xff] %v344_v17  ;;  %v348_v19 = vld [vmem:[%s1335_s9 + $0x118] sm:$0xff]  ;;  %v350_v20 = vld [vmem:[%s1335_s9 + $0x120] sm:$0xff] }
  0x25   : > { %347 = vst [vmem:[%s1340_s10 + $0x90] sm:$0xff] %v346_v18  ;;  %349 = vst [vmem:[%s1340_s10 + $0x98] sm:$0xff] %v348_v19  ;;  %v352_v21 = vld [vmem:[%s1335_s9 + $0x128] sm:$0xff]  ;;  %v354_v22 = vld [vmem:[%s1335_s9 + $0x130] sm:$0xff] }
  0x26   : > { %351 = vst [vmem:[%s1340_s10 + $0xa0] sm:$0xff] %v350_v20  ;;  %v356_v23 = vld [vmem:[%s1335_s9 + $0x138] sm:$0xff]  ;;  %353 = vst [vmem:[%s1340_s10 + $0xa8] sm:$0xff] %v352_v21  ;;  %v358_v24 = vld [vmem:[%s1335_s9 + $0x140] sm:$0xff] }
  0x27   : > { %355 = vst [vmem:[%s1340_s10 + $0xb0] sm:$0xff] %v354_v22  ;;  %357 = vst [vmem:[%s1340_s10 + $0xb8] sm:$0xff] %v356_v23  ;;  %v360_v25 = vld [vmem:[%s1335_s9 + $0x148] sm:$0xff]  ;;  %v362_v26 = vld [vmem:[%s1335_s9 + $0x150] sm:$0xff] }
  0x28   : > { %359 = vst [vmem:[%s1340_s10 + $0xc0] sm:$0xff] %v358_v24  ;;  %361 = vst [vmem:[%s1340_s10 + $0xc8] sm:$0xff] %v360_v25  ;;  %v364_v27 = vld [vmem:[%s1335_s9 + $0x158] sm:$0xff]  ;;  %v366_v28 = vld [vmem:[%s1335_s9 + $0x160] sm:$0xff] }
  0x29   : > { %363 = vst [vmem:[%s1340_s10 + $0xd0] sm:$0xff] %v362_v26  ;;  %v368_v29 = vld [vmem:[%s1335_s9 + $0x168] sm:$0xff]  ;;  %365 = vst [vmem:[%s1340_s10 + $0xd8] sm:$0xff] %v364_v27  ;;  %v370_v30 = vld [vmem:[%s1335_s9 + $0x170] sm:$0xff] }
  0x2a   : > { %367 = vst [vmem:[%s1340_s10 + $0xe0] sm:$0xff] %v366_v28  ;;  %369 = vst [vmem:[%s1340_s10 + $0xe8] sm:$0xff] %v368_v29  ;;  %v372_v31 = vld [vmem:[%s1335_s9 + $0x178] sm:$0xff]  ;;  %v374_v32 = vld [vmem:[%s1335_s9 + $0x200] sm:$0xff] }
  0x2b   : > { %371 = vst [vmem:[%s1340_s10 + $0xf0] sm:$0xff] %v370_v30  ;;  %373 = vst [vmem:[%s1340_s10 + $0xf8] sm:$0xff] %v372_v31  ;;  %v376_v33 = vld [vmem:[%s1335_s9 + $0x208] sm:$0xff]  ;;  %v378_v34 = vld [vmem:[%s1335_s9 + $0x210] sm:$0xff] }
  0x2c   : > { %375 = vst [vmem:[%s1340_s10 + $0x100] sm:$0xff] %v374_v32  ;;  %v380_v35 = vld [vmem:[%s1335_s9 + $0x218] sm:$0xff]  ;;  %377 = vst [vmem:[%s1340_s10 + $0x108] sm:$0xff] %v376_v33  ;;  %v382_v36 = vld [vmem:[%s1335_s9 + $0x220] sm:$0xff] }
  0x2d   : > { %379 = vst [vmem:[%s1340_s10 + $0x110] sm:$0xff] %v378_v34  ;;  %381 = vst [vmem:[%s1340_s10 + $0x118] sm:$0xff] %v380_v35  ;;  %v384_v37 = vld [vmem:[%s1335_s9 + $0x228] sm:$0xff]  ;;  %v386_v38 = vld [vmem:[%s1335_s9 + $0x230] sm:$0xff] }
  0x2e   : > { %383 = vst [vmem:[%s1340_s10 + $0x120] sm:$0xff] %v382_v36  ;;  %385 = vst [vmem:[%s1340_s10 + $0x128] sm:$0xff] %v384_v37  ;;  %v388_v39 = vld [vmem:[%s1335_s9 + $0x238] sm:$0xff]  ;;  %v390_v40 = vld [vmem:[%s1335_s9 + $0x240] sm:$0xff] }
  0x2f   : > { %387 = vst [vmem:[%s1340_s10 + $0x130] sm:$0xff] %v386_v38  ;;  %v392_v41 = vld [vmem:[%s1335_s9 + $0x248] sm:$0xff]  ;;  %389 = vst [vmem:[%s1340_s10 + $0x138] sm:$0xff] %v388_v39  ;;  %v394_v42 = vld [vmem:[%s1335_s9 + $0x250] sm:$0xff] }
  0x30   : > { %391 = vst [vmem:[%s1340_s10 + $0x140] sm:$0xff] %v390_v40  ;;  %393 = vst [vmem:[%s1340_s10 + $0x148] sm:$0xff] %v392_v41  ;;  %v396_v43 = vld [vmem:[%s1335_s9 + $0x258] sm:$0xff]  ;;  %v398_v44 = vld [vmem:[%s1335_s9 + $0x260] sm:$0xff] }
  0x31   : > { %395 = vst [vmem:[%s1340_s10 + $0x150] sm:$0xff] %v394_v42  ;;  %397 = vst [vmem:[%s1340_s10 + $0x158] sm:$0xff] %v396_v43  ;;  %v400_v45 = vld [vmem:[%s1335_s9 + $0x268] sm:$0xff]  ;;  %v402_v46 = vld [vmem:[%s1335_s9 + $0x270] sm:$0xff] }
  0x32   : > { %399 = vst [vmem:[%s1340_s10 + $0x160] sm:$0xff] %v398_v44  ;;  %v404_v47 = vld [vmem:[%s1335_s9 + $0x278] sm:$0xff]  ;;  %401 = vst [vmem:[%s1340_s10 + $0x168] sm:$0xff] %v400_v45  ;;  %v406_v48 = vld [vmem:[%s1335_s9 + $0x300] sm:$0xff] }
  0x33   : > { %403 = vst [vmem:[%s1340_s10 + $0x170] sm:$0xff] %v402_v46  ;;  %405 = vst [vmem:[%s1340_s10 + $0x178] sm:$0xff] %v404_v47  ;;  %v408_v49 = vld [vmem:[%s1335_s9 + $0x308] sm:$0xff]  ;;  %v410_v50 = vld [vmem:[%s1335_s9 + $0x310] sm:$0xff] }
  0x34   : > { %407 = vst [vmem:[%s1340_s10 + $0x180] sm:$0xff] %v406_v48  ;;  %409 = vst [vmem:[%s1340_s10 + $0x188] sm:$0xff] %v408_v49  ;;  %v412_v51 = vld [vmem:[%s1335_s9 + $0x318] sm:$0xff]  ;;  %v414_v52 = vld [vmem:[%s1335_s9 + $0x320] sm:$0xff] }
  0x35   : > { %411 = vst [vmem:[%s1340_s10 + $0x190] sm:$0xff] %v410_v50  ;;  %v416_v53 = vld [vmem:[%s1335_s9 + $0x328] sm:$0xff]  ;;  %413 = vst [vmem:[%s1340_s10 + $0x198] sm:$0xff] %v412_v51  ;;  %v418_v54 = vld [vmem:[%s1335_s9 + $0x330] sm:$0xff] }
  0x36   : > { %415 = vst [vmem:[%s1340_s10 + $0x1a0] sm:$0xff] %v414_v52  ;;  %417 = vst [vmem:[%s1340_s10 + $0x1a8] sm:$0xff] %v416_v53  ;;  %v420_v55 = vld [vmem:[%s1335_s9 + $0x338] sm:$0xff]  ;;  %v422_v56 = vld [vmem:[%s1335_s9 + $0x340] sm:$0xff] }
  0x37   : > { %419 = vst [vmem:[%s1340_s10 + $0x1b0] sm:$0xff] %v418_v54  ;;  %421 = vst [vmem:[%s1340_s10 + $0x1b8] sm:$0xff] %v420_v55  ;;  %v424_v57 = vld [vmem:[%s1335_s9 + $0x348] sm:$0xff]  ;;  %v426_v58 = vld [vmem:[%s1335_s9 + $0x350] sm:$0xff] }
  0x38   : > { %423 = vst [vmem:[%s1340_s10 + $0x1c0] sm:$0xff] %v422_v56  ;;  %v428_v59 = vld [vmem:[%s1335_s9 + $0x358] sm:$0xff]  ;;  %425 = vst [vmem:[%s1340_s10 + $0x1c8] sm:$0xff] %v424_v57  ;;  %v430_v60 = vld [vmem:[%s1335_s9 + $0x360] sm:$0xff] }
  0x39   : > { %427 = vst [vmem:[%s1340_s10 + $0x1d0] sm:$0xff] %v426_v58  ;;  %429 = vst [vmem:[%s1340_s10 + $0x1d8] sm:$0xff] %v428_v59  ;;  %v432_v61 = vld [vmem:[%s1335_s9 + $0x368] sm:$0xff]  ;;  %v434_v62 = vld [vmem:[%s1335_s9 + $0x370] sm:$0xff] }
  0x3a   : > { %431 = vst [vmem:[%s1340_s10 + $0x1e0] sm:$0xff] %v430_v60  ;;  %433 = vst [vmem:[%s1340_s10 + $0x1e8] sm:$0xff] %v432_v61  ;;  %v436_v63 = vld [vmem:[%s1335_s9 + $0x378] sm:$0xff] }
  0x3b   : > { %435 = vst [vmem:[%s1340_s10 + $0x1f0] sm:$0xff] %v434_v62  ;;  %437 = vst [vmem:[%s1340_s10 + $0x1f8] sm:$0xff] %v436_v63 }
  0x3c PF: > { %p1124_p9 = scmp.ge.s32.totalorder %s1248_s18, 1  ;;  %p442_p10 = scmp.lt.s32.totalorder %s1248_s18, 5 }
  0x3e   : > { %p443_p11 = pnand %p1124_p9, %p442_p10 }
  0x3f   : > { %s449_s11 = sand.u32 (!%p443_p11), 1, %s1224_s12   ;;  %v1475_v0 = vld [vmem:[%s1967_s1] ss:$0 sm:$0xff] (!%p443_p11)  ;;  %vm679_vm0 = vcmask (!%p443_p11), 31744  }
  0x40   : > { %446 = sbr.rel (%p443_p11) target bundleno = 140 (0x8c), region = 66  ;;  %s1470_s21 = sshll.u32 (!%p443_p11), %s449_s11, 9  ;;  %v1480_v1 = vld [vmem:[%s1968_s2] ss:$0 sm:$0xff] (!%p443_p11) }
  0x41   : > { %s1483_s28 = scalar_lea.vmem (!%p443_p11), [#allocation2], %s1470_s21  ;;  %s1515_s12 = scalar_lea.vmem (!%p443_p11), [#allocation3], %s1470_s21 }
  0x42   : > { %v473_v2 = vld [vmem:[%s1483_s28] sm:$0xff] (!%p443_p11)  ;;  %v474_v3 = vld [vmem:[%s1483_s28 + $0x8] sm:$0xff] (!%p443_p11)  ;;  %v475_v4 = vld [vmem:[%s1483_s28 + $0x10] sm:$0xff] (!%p443_p11) }
  0x43   : > { %v545_v5 = vmul.f32 (!%p443_p11), %v1475_v0, %v473_v2  ;;  %v546_v6 = vmul.f32 (!%p443_p11), %v1475_v0, %v474_v3  ;;  %v547_v7 = vmul.f32 (!%p443_p11), %v1475_v0, %v475_v4  ;;  %v476_v8 = vld [vmem:[%s1483_s28 + $0x18] sm:$0xff] (!%p443_p11)  ;;  %v477_v9 = vld [vmem:[%s1483_s28 + $0x20] sm:$0xff] (!%p443_p11)  ;;  %v478_v10 = vld [vmem:[%s1483_s28 + $0x28] sm:$0xff] (!%p443_p11) }
  0x44   : > { %v548_v11 = vmul.f32 (!%p443_p11), %v1475_v0, %v476_v8  ;;  %v549_v12 = vmul.f32 (!%p443_p11), %v1475_v0, %v477_v9  ;;  %v550_v13 = vmul.f32 (!%p443_p11), %v1475_v0, %v478_v10  ;;  %v479_v14 = vld [vmem:[%s1483_s28 + $0x30] sm:$0xff] (!%p443_p11)  ;;  %v480_v15 = vld [vmem:[%s1483_s28 + $0x38] sm:$0xff] (!%p443_p11)  ;;  %v481_v16 = vld [vmem:[%s1483_s28 + $0x40] sm:$0xff] (!%p443_p11) }
  0x45   : > { %v615_v17 = vadd.f32 (!%p443_p11), %v1480_v1, %v545_v5  ;;  %v616_v18 = vadd.f32 (!%p443_p11), %v1480_v1, %v546_v6  ;;  %v617_v19 = vadd.f32 (!%p443_p11), %v1480_v1, %v547_v7  ;;  %v551_v20 = vmul.f32 (!%p443_p11), %v1475_v0, %v479_v14  ;;  %v482_v21 = vld [vmem:[%s1483_s28 + $0x48] sm:$0xff] (!%p443_p11)  ;;  %v483_v22 = vld [vmem:[%s1483_s28 + $0x50] sm:$0xff] (!%p443_p11)  ;;  %v484_v23 = vld [vmem:[%s1483_s28 + $0x58] sm:$0xff] (!%p443_p11) }
  0x46   : > { %v618_v24 = vadd.f32 (!%p443_p11), %v1480_v1, %v548_v11  ;;  %v619_v25 = vadd.f32 (!%p443_p11), %v1480_v1, %v549_v12  ;;  %v620_v26 = vadd.f32 (!%p443_p11), %v1480_v1, %v550_v13  ;;  %v552_v27 = vmul.f32 (!%p443_p11), %v1475_v0, %v480_v15  ;;  %v485_v28 = vld [vmem:[%s1483_s28 + $0x60] sm:$0xff] (!%p443_p11)  ;;  %v486_v29 = vld [vmem:[%s1483_s28 + $0x68] sm:$0xff] (!%p443_p11)  ;;  %v487_v30 = vld [vmem:[%s1483_s28 + $0x70] sm:$0xff] (!%p443_p11) }
  0x47   : > { %680 = vst.msk [vmem:[%s1515_s12] sm:$0xff] %vm679_vm0, %v615_v17  ;;  %681 = vst.msk [vmem:[%s1515_s12 + $0x8] sm:$0xff] %vm679_vm0, %v616_v18  ;;  %v621_v31 = vadd.f32 %v1480_v1, %v551_v20  ;;  %v553_v32 = vmul.f32 %v1475_v0, %v481_v16  ;;  %v554_v33 = vmul.f32 %v1475_v0, %v482_v21  ;;  %v488_v35 = vld [vmem:[%s1483_s28 + $0x78] sm:$0xff]  ;;  %v489_v40 = vld [vmem:[%s1483_s28 + $0x80] sm:$0xff]  ;;  %s1137_s29 = sshll.u32 (%p1318_p6), %s1232_s14, 4  ;;  %s1132_s30 = sshll.u32 (%p1318_p6), %s1236_s15, 7 }
  0x48   : > { %682 = vst.msk [vmem:[%s1515_s12 + $0x10] sm:$0xff] %vm679_vm0, %v617_v19  ;;  %v555_v34 = vmul.f32 %v1475_v0, %v483_v22  ;;  %683 = vst.msk [vmem:[%s1515_s12 + $0x18] sm:$0xff] %vm679_vm0, %v618_v24  ;;  %v622_v36 = vadd.f32 %v1480_v1, %v552_v27  ;;  %v556_v37 = vmul.f32 %v1475_v0, %v484_v23  ;;  %v490_v41 = vld [vmem:[%s1483_s28 + $0x88] sm:$0xff]  ;;  %v491_v42 = vld [vmem:[%s1483_s28 + $0x90] sm:$0xff]  ;;  %s754_s23 = sadd.s32 (%p1318_p6), %s1137_s29, %s1132_s30 }
  0x49   : > { %684 = vst.msk [vmem:[%s1515_s12 + $0x20] sm:$0xff] %vm679_vm0, %v619_v25  ;;  %685 = vst.msk [vmem:[%s1515_s12 + $0x28] sm:$0xff] %vm679_vm0, %v620_v26  ;;  %v557_v38 = vmul.f32 %v1475_v0, %v485_v28  ;;  %v558_v39 = vmul.f32 %v1475_v0, %v486_v29  ;;  %v623_v43 = vadd.f32 %v1480_v1, %v553_v32  ;;  %v492_v47 = vld [vmem:[%s1483_s28 + $0x98] sm:$0xff]  ;;  %v493_v48 = vld [vmem:[%s1483_s28 + $0xa0] sm:$0xff]  ;;  %s1133_s4 = sshll.u32 (%p1318_p6), %s754_s23, 3 }
  0x4a   : > { %686 = vst.msk [vmem:[%s1515_s12 + $0x30] sm:$0xff] %vm679_vm0, %v621_v31  ;;  %v624_v44 = vadd.f32 %v1480_v1, %v554_v33  ;;  %v625_v45 = vadd.f32 %v1480_v1, %v555_v34  ;;  %v559_v46 = vmul.f32 %v1475_v0, %v487_v30  ;;  %v494_v49 = vld [vmem:[%s1483_s28 + $0xa8] sm:$0xff]  ;;  %687 = vst.msk [vmem:[%s1515_s12 + $0x38] sm:$0xff] %vm679_vm0, %v622_v36  ;;  %v495_v54 = vld [vmem:[%s1483_s28 + $0xb0] sm:$0xff]  ;;  %s1824_s7 = scalar_lea.vmem (%p1318_p6), %s1969_s3, %s1133_s4 }
  0x4b   : > { %v626_v50 = vadd.f32 %v1480_v1, %v556_v37  ;;  %v627_v51 = vadd.f32 %v1480_v1, %v557_v38  ;;  %v628_v52 = vadd.f32 %v1480_v1, %v558_v39  ;;  %v560_v53 = vmul.f32 %v1475_v0, %v488_v35  ;;  %688 = vst.msk [vmem:[%s1515_s12 + $0x40] sm:$0xff] %vm679_vm0, %v623_v43  ;;  %v496_v59 = vld [vmem:[%s1483_s28 + $0xb8] sm:$0xff]  ;;  %v497_v2 = vld [vmem:[%s1483_s28 + $0xc0] sm:$0xff]  ;;  %v498_v3 = vld [vmem:[%s1483_s28 + $0xc8] sm:$0xff] }
  0x4c   : > { %689 = vst.msk [vmem:[%s1515_s12 + $0x48] sm:$0xff] %vm679_vm0, %v624_v44  ;;  %690 = vst.msk [vmem:[%s1515_s12 + $0x50] sm:$0xff] %vm679_vm0, %v625_v45  ;;  %v629_v55 = vadd.f32 %v1480_v1, %v559_v46  ;;  %v561_v56 = vmul.f32 %v1475_v0, %v489_v40  ;;  %v562_v57 = vmul.f32 %v1475_v0, %v490_v41  ;;  %v499_v4 = vld [vmem:[%s1483_s28 + $0xd0] sm:$0xff]  ;;  %v500_v9 = vld [vmem:[%s1483_s28 + $0xd8] sm:$0xff] }
  0x4d   : > { %v563_v58 = vmul.f32 %v1475_v0, %v491_v42  ;;  %691 = vst.msk [vmem:[%s1515_s12 + $0x58] sm:$0xff] %vm679_vm0, %v626_v50  ;;  %692 = vst.msk [vmem:[%s1515_s12 + $0x60] sm:$0xff] %vm679_vm0, %v627_v51  ;;  %v630_v60 = vadd.f32 %v1480_v1, %v560_v53  ;;  %v564_v61 = vmul.f32 %v1475_v0, %v492_v47  ;;  %v501_v10 = vld [vmem:[%s1483_s28 + $0xe0] sm:$0xff]  ;;  %v502_v11 = vld [vmem:[%s1483_s28 + $0xe8] sm:$0xff] }
  0x4e   : > { %693 = vst.msk [vmem:[%s1515_s12 + $0x68] sm:$0xff] %vm679_vm0, %v628_v52  ;;  %v565_v62 = vmul.f32 %v1475_v0, %v493_v48  ;;  %v566_v63 = vmul.f32 %v1475_v0, %v494_v49  ;;  %694 = vst.msk [vmem:[%s1515_s12 + $0x70] sm:$0xff] %vm679_vm0, %v629_v55  ;;  %v631_v5 = vadd.f32 %v1480_v1, %v561_v56  ;;  %v503_v16 = vld [vmem:[%s1483_s28 + $0xf0] sm:$0xff]  ;;  %v504_v21 = vld [vmem:[%s1483_s28 + $0xf8] sm:$0xff] }
  0x4f   : > { %v632_v6 = vadd.f32 %v1480_v1, %v562_v57  ;;  %v633_v7 = vadd.f32 %v1480_v1, %v563_v58  ;;  %v567_v8 = vmul.f32 %v1475_v0, %v495_v54  ;;  %695 = vst.msk [vmem:[%s1515_s12 + $0x78] sm:$0xff] %vm679_vm0, %v630_v60  ;;  %v634_v12 = vadd.f32 %v1480_v1, %v564_v61  ;;  %v505_v26 = vld [vmem:[%s1483_s28 + $0x100] sm:$0xff]  ;;  %v506_v27 = vld [vmem:[%s1483_s28 + $0x108] sm:$0xff]  ;;  %v507_v28 = vld [vmem:[%s1483_s28 + $0x110] sm:$0xff] }
  0x50   : > { %v635_v13 = vadd.f32 %v1480_v1, %v565_v62  ;;  %v636_v14 = vadd.f32 %v1480_v1, %v566_v63  ;;  %v568_v15 = vmul.f32 %v1475_v0, %v496_v59  ;;  %696 = vst.msk [vmem:[%s1515_s12 + $0x80] sm:$0xff] %vm679_vm0, %v631_v5  ;;  %v569_v18 = vmul.f32 %v1475_v0, %v497_v2  ;;  %v508_v33 = vld [vmem:[%s1483_s28 + $0x118] sm:$0xff]  ;;  %v509_v34 = vld [vmem:[%s1483_s28 + $0x120] sm:$0xff]  ;;  %v510_v35 = vld [vmem:[%s1483_s28 + $0x128] sm:$0xff] }
  0x51   : > { %697 = vst.msk [vmem:[%s1515_s12 + $0x88] sm:$0xff] %vm679_vm0, %v632_v6  ;;  %698 = vst.msk [vmem:[%s1515_s12 + $0x90] sm:$0xff] %vm679_vm0, %v633_v7  ;;  %v637_v17 = vadd.f32 %v1480_v1, %v567_v8  ;;  %v570_v19 = vmul.f32 %v1475_v0, %v498_v3  ;;  %v571_v20 = vmul.f32 %v1475_v0, %v499_v4  ;;  %v511_v40 = vld [vmem:[%s1483_s28 + $0x130] sm:$0xff]  ;;  %v512_v45 = vld [vmem:[%s1483_s28 + $0x138] sm:$0xff] }
  0x52   : > { %699 = vst.msk [vmem:[%s1515_s12 + $0x98] sm:$0xff] %vm679_vm0, %v634_v12  ;;  %700 = vst.msk [vmem:[%s1515_s12 + $0xa0] sm:$0xff] %vm679_vm0, %v635_v13  ;;  %v638_v22 = vadd.f32 %v1480_v1, %v568_v15  ;;  %v572_v23 = vmul.f32 %v1475_v0, %v500_v9  ;;  %v573_v24 = vmul.f32 %v1475_v0, %v501_v10  ;;  %v513_v50 = vld [vmem:[%s1483_s28 + $0x140] sm:$0xff]  ;;  %v514_v51 = vld [vmem:[%s1483_s28 + $0x148] sm:$0xff] }
  0x53   : > { %701 = vst.msk [vmem:[%s1515_s12 + $0xa8] sm:$0xff] %vm679_vm0, %v636_v14  ;;  %v574_v25 = vmul.f32 %v1475_v0, %v502_v11  ;;  %702 = vst.msk [vmem:[%s1515_s12 + $0xb0] sm:$0xff] %vm679_vm0, %v637_v17  ;;  %v639_v29 = vadd.f32 %v1480_v1, %v569_v18  ;;  %v640_v30 = vadd.f32 %v1480_v1, %v570_v19  ;;  %v515_v52 = vld [vmem:[%s1483_s28 + $0x150] sm:$0xff]  ;;  %v516_v57 = vld [vmem:[%s1483_s28 + $0x158] sm:$0xff] }
  0x54   : > { %v641_v31 = vadd.f32 %v1480_v1, %v571_v20  ;;  %v575_v32 = vmul.f32 %v1475_v0, %v503_v16  ;;  %703 = vst.msk [vmem:[%s1515_s12 + $0xb8] sm:$0xff] %vm679_vm0, %v638_v22  ;;  %v642_v36 = vadd.f32 %v1480_v1, %v572_v23  ;;  %v643_v37 = vadd.f32 %v1480_v1, %v573_v24  ;;  %v517_v58 = vld [vmem:[%s1483_s28 + $0x160] sm:$0xff]  ;;  %v518_v59 = vld [vmem:[%s1483_s28 + $0x168] sm:$0xff]  ;;  %v519_v2 = vld [vmem:[%s1483_s28 + $0x170] sm:$0xff] }
  0x55   : > { %v644_v38 = vadd.f32 %v1480_v1, %v574_v25  ;;  %v576_v39 = vmul.f32 %v1475_v0, %v504_v21  ;;  %704 = vst.msk [vmem:[%s1515_s12 + $0xc0] sm:$0xff] %vm679_vm0, %v639_v29  ;;  %705 = vst.msk [vmem:[%s1515_s12 + $0xc8] sm:$0xff] %vm679_vm0, %v640_v30  ;;  %v577_v42 = vmul.f32 %v1475_v0, %v505_v26  ;;  %v520_v7 = vld [vmem:[%s1483_s28 + $0x178] sm:$0xff]  ;;  %v521_v12 = vld [vmem:[%s1483_s28 + $0x180] sm:$0xff] }
  0x56   : > { %706 = vst.msk [vmem:[%s1515_s12 + $0xd0] sm:$0xff] %vm679_vm0, %v641_v31  ;;  %v645_v41 = vadd.f32 %v1480_v1, %v575_v32  ;;  %v578_v43 = vmul.f32 %v1475_v0, %v506_v27  ;;  %v579_v44 = vmul.f32 %v1475_v0, %v507_v28  ;;  %707 = vst.msk [vmem:[%s1515_s12 + $0xd8] sm:$0xff] %vm679_vm0, %v642_v36  ;;  %v522_v13 = vld [vmem:[%s1483_s28 + $0x188] sm:$0xff]  ;;  %v523_v14 = vld [vmem:[%s1483_s28 + $0x190] sm:$0xff] }
  0x57   : > { %708 = vst.msk [vmem:[%s1515_s12 + $0xe0] sm:$0xff] %vm679_vm0, %v643_v37  ;;  %709 = vst.msk [vmem:[%s1515_s12 + $0xe8] sm:$0xff] %vm679_vm0, %v644_v38  ;;  %v646_v46 = vadd.f32 %v1480_v1, %v576_v39  ;;  %v580_v47 = vmul.f32 %v1475_v0, %v508_v33  ;;  %v581_v48 = vmul.f32 %v1475_v0, %v509_v34  ;;  %v524_v19 = vld [vmem:[%s1483_s28 + $0x198] sm:$0xff]  ;;  %v525_v20 = vld [vmem:[%s1483_s28 + $0x1a0] sm:$0xff] }
  0x58   : > { %v582_v49 = vmul.f32 %v1475_v0, %v510_v35  ;;  %710 = vst.msk [vmem:[%s1515_s12 + $0xf0] sm:$0xff] %vm679_vm0, %v645_v41  ;;  %v647_v53 = vadd.f32 %v1480_v1, %v577_v42  ;;  %v648_v54 = vadd.f32 %v1480_v1, %v578_v43  ;;  %v649_v55 = vadd.f32 %v1480_v1, %v579_v44  ;;  %v526_v21 = vld [vmem:[%s1483_s28 + $0x1a8] sm:$0xff]  ;;  %v527_v26 = vld [vmem:[%s1483_s28 + $0x1b0] sm:$0xff]  ;;  %v528_v31 = vld [vmem:[%s1483_s28 + $0x1b8] sm:$0xff] }
  0x59   : > { %v583_v56 = vmul.f32 %v1475_v0, %v511_v40  ;;  %711 = vst.msk [vmem:[%s1515_s12 + $0xf8] sm:$0xff] %vm679_vm0, %v646_v46  ;;  %v650_v60 = vadd.f32 %v1480_v1, %v580_v47  ;;  %v651_v61 = vadd.f32 %v1480_v1, %v581_v48  ;;  %v584_v63 = vmul.f32 %v1475_v0, %v512_v45  ;;  %v529_v36 = vld [vmem:[%s1483_s28 + $0x1c0] sm:$0xff]  ;;  %v530_v37 = vld [vmem:[%s1483_s28 + $0x1c8] sm:$0xff]  ;;  %v531_v38 = vld [vmem:[%s1483_s28 + $0x1d0] sm:$0xff] }
  0x5a   : > { %v652_v62 = vadd.f32 %v1480_v1, %v582_v49  ;;  %712 = vst.msk [vmem:[%s1515_s12 + $0x100] sm:$0xff] %vm679_vm0, %v647_v53  ;;  %713 = vst.msk [vmem:[%s1515_s12 + $0x108] sm:$0xff] %vm679_vm0, %v648_v54  ;;  %v585_v4 = vmul.f32 %v1475_v0, %v513_v50  ;;  %v586_v5 = vmul.f32 %v1475_v0, %v514_v51  ;;  %v532_v43 = vld [vmem:[%s1483_s28 + $0x1d8] sm:$0xff]  ;;  %v533_v44 = vld [vmem:[%s1483_s28 + $0x1e0] sm:$0xff] }
  0x5b   : > { %714 = vst.msk [vmem:[%s1515_s12 + $0x110] sm:$0xff] %vm679_vm0, %v649_v55  ;;  %v653_v3 = vadd.f32 %v1480_v1, %v583_v56  ;;  %v587_v6 = vmul.f32 %v1475_v0, %v515_v52  ;;  %715 = vst.msk [vmem:[%s1515_s12 + $0x118] sm:$0xff] %vm679_vm0, %v650_v60  ;;  %v654_v8 = vadd.f32 %v1480_v1, %v584_v63  ;;  %v534_v45 = vld [vmem:[%s1483_s28 + $0x1e8] sm:$0xff]  ;;  %v535_v50 = vld [vmem:[%s1483_s28 + $0x1f0] sm:$0xff] }
  0x5c   : > { %716 = vst.msk [vmem:[%s1515_s12 + $0x120] sm:$0xff] %vm679_vm0, %v651_v61  ;;  %717 = vst.msk [vmem:[%s1515_s12 + $0x128] sm:$0xff] %vm679_vm0, %v652_v62  ;;  %v588_v9 = vmul.f32 %v1475_v0, %v516_v57  ;;  %v589_v10 = vmul.f32 %v1475_v0, %v517_v58  ;;  %v590_v11 = vmul.f32 %v1475_v0, %v518_v59  ;;  %v536_v55 = vld [vmem:[%s1483_s28 + $0x1f8] sm:$0xff] }
  0x5d   : > { %718 = vst.msk [vmem:[%s1515_s12 + $0x130] sm:$0xff] %vm679_vm0, %v653_v3  ;;  %v655_v15 = vadd.f32 %v1480_v1, %v585_v4  ;;  %v656_v16 = vadd.f32 %v1480_v1, %v586_v5  ;;  %v657_v17 = vadd.f32 %v1480_v1, %v587_v6  ;;  %v591_v18 = vmul.f32 %v1475_v0, %v519_v2 }
  0x5e   : > { %719 = vst.msk [vmem:[%s1515_s12 + $0x138] sm:$0xff] %vm679_vm0, %v654_v8  ;;  %v658_v22 = vadd.f32 %v1480_v1, %v588_v9  ;;  %v659_v23 = vadd.f32 %v1480_v1, %v589_v10  ;;  %v660_v24 = vadd.f32 %v1480_v1, %v590_v11  ;;  %v592_v25 = vmul.f32 %v1475_v0, %v520_v7  ;;  %v914_v8 = vld [vmem:[%s1515_s12 + $0x10] sm:$0xff] (%p1318_p6)  ;;  %v916_v9 = vld [vmem:[%s1515_s12 + $0x18] sm:$0xff] (%p1318_p6)  ;;  %v918_v10 = vld [vmem:[%s1515_s12 + $0x20] sm:$0xff] (%p1318_p6) }
  0x5f   : > { %720 = vst.msk [vmem:[%s1515_s12 + $0x140] sm:$0xff] %vm679_vm0, %v655_v15  ;;  %721 = vst.msk [vmem:[%s1515_s12 + $0x148] sm:$0xff] %vm679_vm0, %v656_v16  ;;  %v661_v27 = vadd.f32 %v1480_v1, %v591_v18  ;;  %v593_v28 = vmul.f32 %v1475_v0, %v521_v12  ;;  %v594_v29 = vmul.f32 %v1475_v0, %v522_v13  ;;  %v920_v11 = vld [vmem:[%s1515_s12 + $0x28] sm:$0xff] (%p1318_p6)  ;;  %v922_v12 = vld [vmem:[%s1515_s12 + $0x30] sm:$0xff] (%p1318_p6) }
  0x60   : > { %722 = vst.msk [vmem:[%s1515_s12 + $0x150] sm:$0xff] %vm679_vm0, %v657_v17  ;;  %v595_v30 = vmul.f32 %v1475_v0, %v523_v14  ;;  %723 = vst.msk [vmem:[%s1515_s12 + $0x158] sm:$0xff] %vm679_vm0, %v658_v22  ;;  %v662_v32 = vadd.f32 %v1480_v1, %v592_v25  ;;  %v596_v33 = vmul.f32 %v1475_v0, %v524_v19  ;;  %v924_v13 = vld [vmem:[%s1515_s12 + $0x38] sm:$0xff] (%p1318_p6)  ;;  %v926_v14 = vld [vmem:[%s1515_s12 + $0x40] sm:$0xff] (%p1318_p6) }
  0x61   : > { %724 = vst.msk [vmem:[%s1515_s12 + $0x160] sm:$0xff] %vm679_vm0, %v659_v23  ;;  %725 = vst.msk [vmem:[%s1515_s12 + $0x168] sm:$0xff] %vm679_vm0, %v660_v24  ;;  %v597_v34 = vmul.f32 %v1475_v0, %v525_v20  ;;  %v598_v35 = vmul.f32 %v1475_v0, %v526_v21  ;;  %v663_v39 = vadd.f32 %v1480_v1, %v593_v28  ;;  %v928_v15 = vld [vmem:[%s1515_s12 + $0x48] sm:$0xff] (%p1318_p6)  ;;  %v930_v16 = vld [vmem:[%s1515_s12 + $0x50] sm:$0xff] (%p1318_p6) }
  0x62   : > { %726 = vst.msk [vmem:[%s1515_s12 + $0x170] sm:$0xff] %vm679_vm0, %v661_v27  ;;  %v664_v40 = vadd.f32 %v1480_v1, %v594_v29  ;;  %v665_v41 = vadd.f32 %v1480_v1, %v595_v30  ;;  %v599_v42 = vmul.f32 %v1475_v0, %v527_v26  ;;  %727 = vst.msk [vmem:[%s1515_s12 + $0x178] sm:$0xff] %vm679_vm0, %v662_v32  ;;  %v932_v17 = vld [vmem:[%s1515_s12 + $0x58] sm:$0xff] (%p1318_p6)  ;;  %v934_v18 = vld [vmem:[%s1515_s12 + $0x60] sm:$0xff] (%p1318_p6) }
  0x63   : > { %v666_v46 = vadd.f32 %v1480_v1, %v596_v33  ;;  %v667_v47 = vadd.f32 %v1480_v1, %v597_v34  ;;  %v668_v48 = vadd.f32 %v1480_v1, %v598_v35  ;;  %v600_v49 = vmul.f32 %v1475_v0, %v528_v31  ;;  %728 = vst.msk [vmem:[%s1515_s12 + $0x180] sm:$0xff] %vm679_vm0, %v663_v39  ;;  %v936_v19 = vld [vmem:[%s1515_s12 + $0x68] sm:$0xff] (%p1318_p6)  ;;  %v938_v20 = vld [vmem:[%s1515_s12 + $0x70] sm:$0xff] (%p1318_p6)  ;;  %v940_v21 = vld [vmem:[%s1515_s12 + $0x78] sm:$0xff] (%p1318_p6) }
  0x64   : > { %729 = vst.msk [vmem:[%s1515_s12 + $0x188] sm:$0xff] %vm679_vm0, %v664_v40  ;;  %730 = vst.msk [vmem:[%s1515_s12 + $0x190] sm:$0xff] %vm679_vm0, %v665_v41  ;;  %v669_v51 = vadd.f32 %v1480_v1, %v599_v42  ;;  %v601_v52 = vmul.f32 %v1475_v0, %v529_v36  ;;  %v602_v53 = vmul.f32 %v1475_v0, %v530_v37  ;;  %v942_v22 = vld [vmem:[%s1515_s12 + $0x80] sm:$0xff] (%p1318_p6)  ;;  %v944_v23 = vld [vmem:[%s1515_s12 + $0x88] sm:$0xff] (%p1318_p6) }
  0x65   : > { %v603_v54 = vmul.f32 %v1475_v0, %v531_v38  ;;  %731 = vst.msk [vmem:[%s1515_s12 + $0x198] sm:$0xff] %vm679_vm0, %v666_v46  ;;  %732 = vst.msk [vmem:[%s1515_s12 + $0x1a0] sm:$0xff] %vm679_vm0, %v667_v47  ;;  %v670_v56 = vadd.f32 %v1480_v1, %v600_v49  ;;  %v604_v57 = vmul.f32 %v1475_v0, %v532_v43  ;;  %v946_v24 = vld [vmem:[%s1515_s12 + $0x90] sm:$0xff] (%p1318_p6)  ;;  %v948_v25 = vld [vmem:[%s1515_s12 + $0x98] sm:$0xff] (%p1318_p6) }
  0x66   : > { %733 = vst.msk [vmem:[%s1515_s12 + $0x1a8] sm:$0xff] %vm679_vm0, %v668_v48  ;;  %v605_v58 = vmul.f32 %v1475_v0, %v533_v44  ;;  %v606_v59 = vmul.f32 %v1475_v0, %v534_v45  ;;  %734 = vst.msk [vmem:[%s1515_s12 + $0x1b0] sm:$0xff] %vm679_vm0, %v669_v51  ;;  %v671_v60 = vadd.f32 %v1480_v1, %v601_v52  ;;  %750 = sbr.rel (!%p1318_p6) target bundleno = 140 (0x8c), region = 74  ;;  %v950_v26 = vld [vmem:[%s1515_s12 + $0xa0] sm:$0xff] (%p1318_p6)  ;;  %v952_v27 = vld [vmem:[%s1515_s12 + $0xa8] sm:$0xff] (%p1318_p6) }
  0x67   : > { %v672_v61 = vadd.f32 %v1480_v1, %v602_v53  ;;  %v673_v62 = vadd.f32 %v1480_v1, %v603_v54  ;;  %v607_v63 = vmul.f32 %v1475_v0, %v535_v50  ;;  %735 = vst.msk [vmem:[%s1515_s12 + $0x1b8] sm:$0xff] %vm679_vm0, %v670_v56  ;;  %v674_v2 = vadd.f32 %v1480_v1, %v604_v57  ;;  %v954_v28 = vld [vmem:[%s1515_s12 + $0xb0] sm:$0xff] (%p1318_p6)  ;;  %v956_v29 = vld [vmem:[%s1515_s12 + $0xb8] sm:$0xff] (%p1318_p6)  ;;  %v958_v30 = vld [vmem:[%s1515_s12 + $0xc0] sm:$0xff] (%p1318_p6) }
  0x68   : > { %v675_v3 = vadd.f32 %v1480_v1, %v605_v58  ;;  %v676_v4 = vadd.f32 %v1480_v1, %v606_v59  ;;  %v608_v5 = vmul.f32 %v1475_v0, %v536_v55  ;;  %736 = vst.msk [vmem:[%s1515_s12 + $0x1c0] sm:$0xff] %vm679_vm0, %v671_v60  ;;  %v910_v0 = vld [vmem:[%s1515_s12] sm:$0xff] (%p1318_p6)  ;;  %915 = vst [vmem:[%s1824_s7 + $0x10] sm:$0xff] (%p1318_p6), %v914_v8  ;;  %v960_v31 = vld [vmem:[%s1515_s12 + $0xc8] sm:$0xff] (%p1318_p6) }
  0x69   : > { %737 = vst.msk [vmem:[%s1515_s12 + $0x1c8] sm:$0xff] %vm679_vm0, %v672_v61  ;;  %738 = vst.msk [vmem:[%s1515_s12 + $0x1d0] sm:$0xff] %vm679_vm0, %v673_v62  ;;  %v677_v6 = vadd.f32 %v1480_v1, %v607_v63  ;;  %v962_v32 = vld [vmem:[%s1515_s12 + $0xd0] sm:$0xff] (%p1318_p6)  ;;  %v964_v33 = vld [vmem:[%s1515_s12 + $0xd8] sm:$0xff] (%p1318_p6) }
  0x6a   : > { %739 = vst.msk [vmem:[%s1515_s12 + $0x1d8] sm:$0xff] %vm679_vm0, %v674_v2  ;;  %740 = vst.msk [vmem:[%s1515_s12 + $0x1e0] sm:$0xff] %vm679_vm0, %v675_v3  ;;  %v678_v7 = vadd.f32 %v1480_v1, %v608_v5  ;;  %v912_v1 = vld [vmem:[%s1515_s12 + $0x8] sm:$0xff] (%p1318_p6)  ;;  %v966_v34 = vld [vmem:[%s1515_s12 + $0xe0] sm:$0xff] (%p1318_p6) }
  0x6b   : > { %741 = vst.msk [vmem:[%s1515_s12 + $0x1e8] sm:$0xff] %vm679_vm0, %v676_v4  ;;  %742 = vst.msk [vmem:[%s1515_s12 + $0x1f0] sm:$0xff] %vm679_vm0, %v677_v6  ;;  %v968_v35 = vld [vmem:[%s1515_s12 + $0xe8] sm:$0xff] (%p1318_p6)  ;;  %v970_v36 = vld [vmem:[%s1515_s12 + $0xf0] sm:$0xff] (%p1318_p6) }
  0x6c   : > { %743 = vst.msk [vmem:[%s1515_s12 + $0x1f8] sm:$0xff] %vm679_vm0, %v678_v7  ;;  %911 = vst [vmem:[%s1824_s7] sm:$0xff] (%p1318_p6), %v910_v0  ;;  %v972_v37 = vld [vmem:[%s1515_s12 + $0xf8] sm:$0xff] (%p1318_p6)  ;;  %v974_v38 = vld [vmem:[%s1515_s12 + $0x100] sm:$0xff] (%p1318_p6) }
  0x6d   : > { %913 = vst [vmem:[%s1824_s7 + $0x8] sm:$0xff] %v912_v1  ;;  %917 = vst [vmem:[%s1824_s7 + $0x18] sm:$0xff] %v916_v9  ;;  %v976_v39 = vld [vmem:[%s1515_s12 + $0x108] sm:$0xff]  ;;  %v978_v40 = vld [vmem:[%s1515_s12 + $0x110] sm:$0xff] }
  0x6e   : > { %919 = vst [vmem:[%s1824_s7 + $0x20] sm:$0xff] %v918_v10  ;;  %921 = vst [vmem:[%s1824_s7 + $0x28] sm:$0xff] %v920_v11  ;;  %v980_v41 = vld [vmem:[%s1515_s12 + $0x118] sm:$0xff]  ;;  %v982_v42 = vld [vmem:[%s1515_s12 + $0x120] sm:$0xff] }
  0x6f   : > { %923 = vst [vmem:[%s1824_s7 + $0x30] sm:$0xff] %v922_v12  ;;  %925 = vst [vmem:[%s1824_s7 + $0x38] sm:$0xff] %v924_v13  ;;  %v984_v43 = vld [vmem:[%s1515_s12 + $0x128] sm:$0xff]  ;;  %v986_v44 = vld [vmem:[%s1515_s12 + $0x130] sm:$0xff] }
  0x70   : > { %927 = vst [vmem:[%s1824_s7 + $0x40] sm:$0xff] %v926_v14  ;;  %929 = vst [vmem:[%s1824_s7 + $0x48] sm:$0xff] %v928_v15  ;;  %v988_v45 = vld [vmem:[%s1515_s12 + $0x138] sm:$0xff]  ;;  %v990_v46 = vld [vmem:[%s1515_s12 + $0x140] sm:$0xff] }
  0x71   : > { %931 = vst [vmem:[%s1824_s7 + $0x50] sm:$0xff] %v930_v16  ;;  %933 = vst [vmem:[%s1824_s7 + $0x58] sm:$0xff] %v932_v17  ;;  %v992_v47 = vld [vmem:[%s1515_s12 + $0x148] sm:$0xff]  ;;  %v994_v48 = vld [vmem:[%s1515_s12 + $0x150] sm:$0xff] }
  0x72   : > { %935 = vst [vmem:[%s1824_s7 + $0x60] sm:$0xff] %v934_v18  ;;  %937 = vst [vmem:[%s1824_s7 + $0x68] sm:$0xff] %v936_v19  ;;  %v996_v49 = vld [vmem:[%s1515_s12 + $0x158] sm:$0xff]  ;;  %v998_v50 = vld [vmem:[%s1515_s12 + $0x160] sm:$0xff] }
  0x73   : > { %939 = vst [vmem:[%s1824_s7 + $0x70] sm:$0xff] %v938_v20  ;;  %941 = vst [vmem:[%s1824_s7 + $0x78] sm:$0xff] %v940_v21  ;;  %v1000_v51 = vld [vmem:[%s1515_s12 + $0x168] sm:$0xff]  ;;  %v1002_v52 = vld [vmem:[%s1515_s12 + $0x170] sm:$0xff] }
  0x74   : > { %943 = vst [vmem:[%s1824_s7 + $0x100] sm:$0xff] %v942_v22  ;;  %945 = vst [vmem:[%s1824_s7 + $0x108] sm:$0xff] %v944_v23  ;;  %v1004_v53 = vld [vmem:[%s1515_s12 + $0x178] sm:$0xff]  ;;  %v1006_v54 = vld [vmem:[%s1515_s12 + $0x180] sm:$0xff] }
  0x75   : > { %947 = vst [vmem:[%s1824_s7 + $0x110] sm:$0xff] %v946_v24  ;;  %949 = vst [vmem:[%s1824_s7 + $0x118] sm:$0xff] %v948_v25  ;;  %v1008_v55 = vld [vmem:[%s1515_s12 + $0x188] sm:$0xff]  ;;  %v1010_v56 = vld [vmem:[%s1515_s12 + $0x190] sm:$0xff] }
  0x76   : > { %951 = vst [vmem:[%s1824_s7 + $0x120] sm:$0xff] %v950_v26  ;;  %953 = vst [vmem:[%s1824_s7 + $0x128] sm:$0xff] %v952_v27  ;;  %v1012_v57 = vld [vmem:[%s1515_s12 + $0x198] sm:$0xff]  ;;  %v1014_v58 = vld [vmem:[%s1515_s12 + $0x1a0] sm:$0xff] }
  0x77   : > { %955 = vst [vmem:[%s1824_s7 + $0x130] sm:$0xff] %v954_v28  ;;  %957 = vst [vmem:[%s1824_s7 + $0x138] sm:$0xff] %v956_v29  ;;  %v1016_v59 = vld [vmem:[%s1515_s12 + $0x1a8] sm:$0xff]  ;;  %v1018_v60 = vld [vmem:[%s1515_s12 + $0x1b0] sm:$0xff] }
  0x78   : > { %959 = vst [vmem:[%s1824_s7 + $0x140] sm:$0xff] %v958_v30  ;;  %961 = vst [vmem:[%s1824_s7 + $0x148] sm:$0xff] %v960_v31  ;;  %v1020_v61 = vld [vmem:[%s1515_s12 + $0x1b8] sm:$0xff]  ;;  %v1022_v62 = vld [vmem:[%s1515_s12 + $0x1c0] sm:$0xff] }
  0x79   : > { %963 = vst [vmem:[%s1824_s7 + $0x150] sm:$0xff] %v962_v32  ;;  %965 = vst [vmem:[%s1824_s7 + $0x158] sm:$0xff] %v964_v33  ;;  %v1024_v63 = vld [vmem:[%s1515_s12 + $0x1c8] sm:$0xff]  ;;  %v1026_v2 = vld [vmem:[%s1515_s12 + $0x1d0] sm:$0xff] }
  0x7a   : > { %967 = vst [vmem:[%s1824_s7 + $0x160] sm:$0xff] %v966_v34  ;;  %969 = vst [vmem:[%s1824_s7 + $0x168] sm:$0xff] %v968_v35  ;;  %v1028_v3 = vld [vmem:[%s1515_s12 + $0x1d8] sm:$0xff]  ;;  %v1030_v4 = vld [vmem:[%s1515_s12 + $0x1e0] sm:$0xff] }
  0x7b   : > { %971 = vst [vmem:[%s1824_s7 + $0x170] sm:$0xff] %v970_v36  ;;  %973 = vst [vmem:[%s1824_s7 + $0x178] sm:$0xff] %v972_v37  ;;  %v1032_v5 = vld [vmem:[%s1515_s12 + $0x1e8] sm:$0xff]  ;;  %v1034_v6 = vld [vmem:[%s1515_s12 + $0x1f0] sm:$0xff] }
  0x7c   : > { %975 = vst [vmem:[%s1824_s7 + $0x200] sm:$0xff] %v974_v38  ;;  %977 = vst [vmem:[%s1824_s7 + $0x208] sm:$0xff] %v976_v39  ;;  %v1036_v7 = vld [vmem:[%s1515_s12 + $0x1f8] sm:$0xff] }
  0x7d   : > { %979 = vst [vmem:[%s1824_s7 + $0x210] sm:$0xff] %v978_v40  ;;  %981 = vst [vmem:[%s1824_s7 + $0x218] sm:$0xff] %v980_v41 }
  0x7e   : > { %983 = vst [vmem:[%s1824_s7 + $0x220] sm:$0xff] %v982_v42  ;;  %985 = vst [vmem:[%s1824_s7 + $0x228] sm:$0xff] %v984_v43 }
  0x7f   : > { %987 = vst [vmem:[%s1824_s7 + $0x230] sm:$0xff] %v986_v44  ;;  %989 = vst [vmem:[%s1824_s7 + $0x238] sm:$0xff] %v988_v45 }
  0x80   : > { %991 = vst [vmem:[%s1824_s7 + $0x240] sm:$0xff] %v990_v46  ;;  %993 = vst [vmem:[%s1824_s7 + $0x248] sm:$0xff] %v992_v47 }
  0x81   : > { %995 = vst [vmem:[%s1824_s7 + $0x250] sm:$0xff] %v994_v48  ;;  %997 = vst [vmem:[%s1824_s7 + $0x258] sm:$0xff] %v996_v49 }
  0x82   : > { %999 = vst [vmem:[%s1824_s7 + $0x260] sm:$0xff] %v998_v50  ;;  %1001 = vst [vmem:[%s1824_s7 + $0x268] sm:$0xff] %v1000_v51 }
  0x83   : > { %1003 = vst [vmem:[%s1824_s7 + $0x270] sm:$0xff] %v1002_v52  ;;  %1005 = vst [vmem:[%s1824_s7 + $0x278] sm:$0xff] %v1004_v53 }
  0x84   : > { %1007 = vst [vmem:[%s1824_s7 + $0x300] sm:$0xff] %v1006_v54  ;;  %1009 = vst [vmem:[%s1824_s7 + $0x308] sm:$0xff] %v1008_v55 }
  0x85   : > { %1011 = vst [vmem:[%s1824_s7 + $0x310] sm:$0xff] %v1010_v56  ;;  %1013 = vst [vmem:[%s1824_s7 + $0x318] sm:$0xff] %v1012_v57 }
  0x86   : > { %1015 = vst [vmem:[%s1824_s7 + $0x320] sm:$0xff] %v1014_v58  ;;  %1017 = vst [vmem:[%s1824_s7 + $0x328] sm:$0xff] %v1016_v59 }
  0x87   : > { %1019 = vst [vmem:[%s1824_s7 + $0x330] sm:$0xff] %v1018_v60  ;;  %1021 = vst [vmem:[%s1824_s7 + $0x338] sm:$0xff] %v1020_v61 }
  0x88   : > { %1023 = vst [vmem:[%s1824_s7 + $0x340] sm:$0xff] %v1022_v62  ;;  %1025 = vst [vmem:[%s1824_s7 + $0x348] sm:$0xff] %v1024_v63 }
  0x89   : > { %1027 = vst [vmem:[%s1824_s7 + $0x350] sm:$0xff] %v1026_v2  ;;  %1029 = vst [vmem:[%s1824_s7 + $0x358] sm:$0xff] %v1028_v3 }
  0x8a   : > { %1031 = vst [vmem:[%s1824_s7 + $0x360] sm:$0xff] %v1030_v4  ;;  %1033 = vst [vmem:[%s1824_s7 + $0x368] sm:$0xff] %v1032_v5 }
  0x8b   : > { %1035 = vst [vmem:[%s1824_s7 + $0x370] sm:$0xff] %v1034_v6  ;;  %1037 = vst [vmem:[%s1824_s7 + $0x378] sm:$0xff] %v1036_v7 }
  0x8c PF: > { %s13_s18 = sadd.s32 1, %s1248_s18   ;;  %s1971_s12 = smov %s1228_s13 }
  0x8d   : > { %p10_p12 = scmp.ge.s32.totalorder %s13_s18, 6   ;;  %s1972_s13 = smov %s1326_s27 }
  0x8e   : > { %s1973_s14 = smov %s1240_s16  ;;  %s1974_s15 = smov %s1244_s17 }
  0x8f   : > { %s1975_s16 = smov %s1978_s19  ;;  %s1976_s17 = smov %s1982_s20 }
  0x90   :  { %12 = sbr.rel (!%p10_p12) target bundleno = 4 (0x4), region = 143 }

// kernel: unet_skip_connection_dblock.2
= control target key start
LH: loop header
LB: loop body
LE: loop exit
PB: predicated region body
PF: predicated region fallthrough
CT: control target
= control target key end

     0   :  { %s2980_s15 = smov 0   ;;  %s2982_s16 = smov 0   ;;  %s4267_s0 = inlined_call_operand.vmem [shape: f32[2,18,18,8], index: 0, kind: input, shape index: {}]   ;;  %s4268_s1 = inlined_call_operand.vmem [shape: f32[4,32,4], index: 1, kind: input, shape index: {}]   ;;  %s4269_s2 = inlined_call_operand.vmem [shape: f32[1,4], index: 2, kind: input, shape index: {}]   ;;  %s4270_s3 = inlined_call_operand.vmem [shape: f32[2,4,16,16,4], index: 3, kind: output, shape index: {0}]   ;;  %s4271_s4 = inlined_call_operand.vmem [shape: f32[2,2,2,4], index: 4, kind: output, shape index: {1}]  }
   0x1   :  { %s2984_s17 = smov 0   ;;  %s2986_s18 = smov 0  }
   0x2   :  { %s2988_s19 = smov 0   ;;  %s2990_s20 = smov 0  }
   0x3   :  { %s2992_s21 = smov 0  }
   0x4 LB: > { %s24_s2 = sadd.s32 1, %s2942_s19  ;;  %s27_s22 = sadd.s32 1, %s2946_s20  ;;  %s2950_s21 = sphi %s2992_s21, %s15_s21   ;;  %s2946_s20 = sphi %s2990_s20, %s4278_s20   ;;  %s2942_s19 = sphi %s2988_s19, %s4277_s19   ;;  %s2938_s18 = sphi %s2986_s18, %s4276_s18   ;;  %s2934_s17 = sphi %s2984_s17, %s4275_s17   ;;  %s2930_s16 = sphi %s2982_s16, %s4274_s16   ;;  %s2926_s15 = sphi %s2980_s15, %s4273_s15  }
   0x5   : > { %p25_p0 = scmp.ge.s32.totalorder %s24_s2, 2  ;;  %s2453_s23 = sadd.s32 4294967295, %s2950_s21  }
   0x6   : > { %p114_p1 = scmp.ne.s32.totalorder %s2930_s16, %s2926_s15  ;;  %p115_p2 = scmp.eq.s32.totalorder %s2453_s23, 3 }
   0x7   : > { %s4280_s2 = smov (%p25_p0, %s24_s2), 0  ;;  %s4282_s22 = smov (!%p25_p0, %s27_s22), %s2946_s20 }
   0x8   : > { %s100_s24 = ssub.s32 %s2942_s19, %s4280_s2  ;;  %p29_p3 = scmp.ge.s32.totalorder %s4282_s22, 2 }
   0x9   : > { %p2457_p4 = scmp.ge.s32.totalorder %s2950_s21, 1  ;;  %p3026_p5 = por %p115_p2, %p114_p1 }
   0xa   : > { %p181_p6 = scmp.lt.s32.totalorder %s2950_s21, 5  ;;  %s4284_s22 = smov (%p29_p3, %s4282_s22), 0 }
   0xb   : > { %s99_s26 = ssub.s32 %s2946_s20, %s4284_s22  ;;  %s104_s28 = sadd.s32 1, %s2930_s16 }
   0xc   : > { %p182_p7 = pnand %p2457_p4, %p181_p6  ;;  %s101_s27 = sor.u32 %s100_s24, %s99_s26 }
   0xd   : > { %p102_p8 = scmp.eq.s32.totalorder %s101_s27, 0  ;;  %p214_p9 = scmp.lt.s32.totalorder (!%p182_p7), %s2938_s18, 1  ;;  %v654_v0 = vld [vmem:[%s4268_s1] sm:$0xff] (!%p182_p7)  ;;  %v655_v1 = vld [vmem:[%s4268_s1 + $0x8] sm:$0xff] (!%p182_p7)  ;;  %v656_v3 = vld [vmem:[%s4268_s1 + $0x10] sm:$0xff] (!%p182_p7)  ;;  %vm315_vm0 = vcmask (!%p182_p7), 1046528  }
   0xe   : > { %185 = sbr.rel (%p182_p7) target bundleno = 619 (0x26b), region = 32  ;;  %v2804_v2 = vpack.c.bf16 (!%p182_p7), %v655_v1, %v654_v0  ;;  %v657_v4 = vld [vmem:[%s4268_s1 + $0x18] sm:$0xff] (!%p182_p7)  ;;  %s2953_s30 = smov (!%p182_p7), 16   ;;  %vm356_vm1 = vcmask (!%p182_p7), 1045504   ;;  %v2480_v33 = vld [vmem:[%s4268_s1 + $0x20] sm:$0xff] (!%p182_p7)  ;;  %v2481_v34 = vld [vmem:[%s4268_s1 + $0x28] sm:$0xff] (!%p182_p7) }
   0xf   : > { %s3037_s29 = scalar_select %p102_p8, %s2930_s16, %s104_s28  }
  0x10   : > { %s2463_s9 = smul.u32 (!%p182_p7), 192, %s2934_s17  ;;  %2805 = vmatprep.subr.bf16.mxu0 (!%p182_p7), %v2804_v2  ;;  %v2808_v5 = vpack.c.bf16 (!%p182_p7), %v657_v4, %v656_v3  ;;  %s2952_s28 = smov (!%p182_p7), 8   ;;  %v2812_v36 = vpack.c.bf16 (!%p182_p7), %v2481_v34, %v2480_v33  ;;  %v2482_v37 = vld [vmem:[%s4268_s1 + $0x30] sm:$0xff] (!%p182_p7)  ;;  %v2483_v38 = vld [vmem:[%s4268_s1 + $0x38] sm:$0xff] (!%p182_p7)  ;;  %vm603_vm2 = vcmask (!%p182_p7), 64512   ;;  %vm620_vm3 = vcmask (!%p182_p7), 130048  }
  0x11   : > { %2807 = vmatpush3.bf16.msra.mxu0 (!%p182_p7), %v2804_v2  ;;  %s2954_s5 = smov (!%p182_p7), 24   ;;  %v2816_v41 = vpack.c.bf16 (!%p182_p7), %v2483_v38, %v2482_v37  ;;  %vm637_vm4 = vcmask (!%p182_p7), 195584   ;;  %vm658_vm5 = vcmask (!%p182_p7), 261120   ;;  %vm852_vm6 = vcmask (!%p182_p7), 31744   ;;  %p222_p10 = scmp.lt.s32.totalorder (!%p182_p7), %s2934_s17, 1 }
  0x12   : > { %2809 = vmatprep.subr.bf16.mxu0 (!%p182_p7), %v2808_v5  ;;  %2813 = vmatprep.subr.bf16.mxu1 (!%p182_p7), %v2812_v36  ;;  %vm2038_vm7 = vcmask (!%p182_p7), 1040384   ;;  %vm2040_vm8 = vcmask (!%p182_p7), 25600  }
  0x13   : > { %2815 = vmatpush3.bf16.msra.mxu1 (!%p182_p7), %v2812_v36 }
  0x14   : > { %2817 = vmatprep.subr.bf16.mxu1 (!%p182_p7), %v2816_v41 }
  0x15   : > { %s3047_s8 = scalar_select %p214_p9, %s2938_s18, 1  ;;  %2811 = vmatpush3.bf16.msra.mxu0 %v2808_v5 }
  0x16   : > { %s2591_s14 = sshll.u32 (%p3026_p5), %s2938_s18, 7 }
  0x17   : > { %s2836_s10 = smul.u32 432, %s3047_s8  ;;  %2819 = vmatpush3.bf16.msra.mxu1 %v2816_v41 }
  0x19   : > { %s218_s26 = scalar_lea.vmem %s4267_s0, %s2836_s10 }
  0x1a   : > { %s3060_s27 = scalar_lea.vmem %s218_s26, %s2463_s9 }
  0x1b   : > { %v234_v6 = vld [vmem:[%s3060_s27 + $0x18] sm:$0xff]  ;;  %v231_v7 = vld [vmem:[%s3060_s27] sm:$0xff]  ;;  %v232_v8 = vld [vmem:[%s3060_s27 + $0x8] sm:$0xff] }
  0x1c   : > { %v3065_v9 = vmax.f32 %v234_v6, 0.0  ;;  %v261_v10 = vmax.f32 %v231_v7, 0.0  ;;  %v262_v11 = vmax.f32 %v232_v8, 0.0  ;;  %v235_v12 = vld [vmem:[%s3060_s27 + $0x20] sm:$0xff]  ;;  %v233_v13 = vld [vmem:[%s3060_s27 + $0x10] sm:$0x3] }
  0x1d   : > { %v263_v14 = vmax.f32 %v233_v13, 0.0  ;;  %v3071_v17 = vmax.f32 %v235_v12, 0.0  ;;  %v236_v19 = vld [vmem:[%s3060_s27 + $0x28] sm:$0x3]  ;;  %v237_v30 = vld [vmem:[%s3060_s27 + $0x30] sm:$0xff]  ;;  %v238_v40 = vld [vmem:[%s3060_s27 + $0x38] sm:$0xff] }
  0x1e   : > { %459 = vrot.lane.b32.xlu0 %v3065_v9, %s2952_s28  ;;  %v316_v15 = vrot.slane %v261_v10, 1  ;;  %v317_v16 = vrot.slane %v262_v11, 1  ;;  %v321_v22 = vrot.slane %v3065_v9, 1  ;;  %v266_v24 = vmax.f32 %v236_v19, 0.0  ;;  %v239_v43 = vld [vmem:[%s3060_s27 + $0x40] sm:$0x3] }
  0x1f   : > { %v319_v18 = vrot.slane %v263_v14, 1  ;;  %v322_v23 = vrot.slane %v3071_v17, 1  ;;  %v357_v27 = vrot.slane %v261_v10, 2  ;;  %v358_v28 = vrot.slane %v262_v11, 2  ;;  %v240_v52 = vld [vmem:[%s3060_s27 + $0x48] sm:$0xff]  ;;  %v241_v57 = vld [vmem:[%s3060_s27 + $0x50] sm:$0xff] }
  0x20   : > { %v318_v20 = vsel %vm315_vm0, %v316_v15, %v317_v16  ;;  %v324_v26 = vrot.slane %v266_v24, 1  ;;  %v360_v32 = vrot.slane %v263_v14, 2  ;;  %v3102_v35 = vmax.f32 %v237_v30, 0.0  ;;  %v242_v59 = vld [vmem:[%s3060_s27 + $0x58] sm:$0x3]  ;;  %v243_v4 = vld [vmem:[%s3060_s27 + $0x60] sm:$0xff] }
  0x21   : > { %507 = vrot.lane.b32.xlu1 %v318_v20, %s2953_s30  ;;  %v320_v21 = vsel %vm315_vm0, %v317_v16, %v319_v18  ;;  %v3084_v25 = vsel %vm315_vm0, %v321_v22, %v322_v23  ;;  %v359_v31 = vsel %vm356_vm1, %v357_v27, %v358_v28  ;;  %v268_v42 = vmax.f32 %v238_v40, 0.0  ;;  %v249_v38 = vld [vmem:[%s3060_s27 + $0x90] sm:$0xff] }
  0x22   : > { %461 = vrot.lane.b32.xlu0 %v3071_v17, %s2952_s28  ;;  %v3090_v29 = vsel %vm315_vm0, %v322_v23, %v324_v26  ;;  %v361_v39 = vsel %vm356_vm1, %v358_v28, %v360_v32  ;;  %v326_v44 = vrot.slane %v3102_v35, 1  ;;  %v269_v46 = vmax.f32 %v239_v43, 0.0  ;;  %v247_v26 = vld [vmem:[%s3060_s27 + $0x80] sm:$0xff]  ;;  %v3236_v28 = vld [vmem:[%s3060_s27 + $0x88] sm:$0x3]  ;;  %v250_v43 = vld [vmem:[%s3060_s27 + $0x98] sm:$0xff] }
  0x23   : > { %v327_v45 = vrot.slane %v268_v42, 1  ;;  %v362_v49 = vrot.slane %v3065_v9, 2  ;;  %v363_v50 = vrot.slane %v3071_v17, 2  ;;  %v365_v54 = vrot.slane %v266_v24, 2 }
  0x24   : > { %v329_v48 = vrot.slane %v269_v46, 1  ;;  %v270_v55 = vmax.f32 %v240_v52, 0.0  ;;  %v271_v58 = vmax.f32 %v241_v57, 0.0  ;;  %v272_v62 = vmax.f32 %v242_v59, 0.0  ;;  %v3286_v52 = vld [vmem:[%s3060_s27 + $0xa0] sm:$0x3] }
  0x25   : > { %509 = vrot.lane.b32.xlu1 %v320_v21, %s2953_s30  ;;  %v3128_v47 = vsel %vm315_vm0, %v326_v44, %v327_v45  ;;  %v3141_v53 = vsel %vm356_vm1, %v362_v49, %v363_v50  ;;  %v3148_v56 = vsel %vm356_vm1, %v363_v50, %v365_v54  ;;  %v367_v1 = vrot.slane %v3102_v35, 2 }
  0x26   : > { %555 = vrot.lane.b32.xlu0 %v261_v10, %s2954_s5  ;;  %v3137_v51 = vsel %vm315_vm0, %v327_v45, %v329_v48  ;;  %v331_v60 = vrot.slane %v270_v55, 1  ;;  %v332_v61 = vrot.slane %v271_v58, 1  ;;  %v334_v0 = vrot.slane %v272_v62, 1 }
  0x27   : > { %v368_v2 = vrot.slane %v268_v42, 2  ;;  %v370_v6 = vrot.slane %v269_v46, 2  ;;  %v273_v7 = vmax.f32 %v243_v4, 0.0  ;;  %v373_v18 = vrot.slane %v271_v58, 2 }
  0x28   : > { %v3167_v63 = vsel %vm315_vm0, %v331_v60, %v332_v61  ;;  %v3174_v3 = vsel %vm315_vm0, %v332_v61, %v334_v0  ;;  %v375_v22 = vrot.slane %v272_v62, 2  ;;  %v3229_v27 = vmax.f32 %v247_v26, 0.0  ;;  %v253_v26 = vld [vmem:[%s3060_s27 + $0xb0] sm:$0xff] }
  0x29   : > { %961 = vrot.lane.b32.xlu1 %v3084_v25, %s2952_s28  ;;  %v3178_v5 = vsel %vm356_vm1, %v367_v1, %v368_v2  ;;  %v3185_v8 = vsel %vm356_vm1, %v368_v2, %v370_v6  ;;  %v336_v12 = vrot.slane %v273_v7, 1  ;;  %v278_v32 = vmax.f32 %v3236_v28, 0.0 }
  0x2a   : > { %557 = vrot.lane.b32.xlu0 %v262_v11, %s2954_s5  ;;  %v245_v11 = vld [vmem:[%s3060_s27 + $0x70] sm:$0x3]  ;;  %v3222_v24 = vsel %vm356_vm1, %v373_v18, %v375_v22  ;;  %v3265_v41 = vmax.f32 %v249_v38, 0.0  ;;  %v3277_v45 = vmax.f32 %v250_v43, 0.0  ;;  %v281_v60 = vmax.f32 %v3286_v52, 0.0  ;;  %v256_v52 = vld [vmem:[%s3060_s27 + $0xc8] sm:$0xff] }
  0x2b   : > { %v275_v14 = vmax.f32 %v245_v11, 0.0  ;;  %v344_v34 = vrot.slane %v278_v32, 1  ;;  %v252_v11 = vld [vmem:[%s3060_s27 + $0xa8] sm:$0xff] }
  0x2c   : > { %v347_v59 = vrot.slane %v3277_v45, 1  ;;  %v349_v2 = vrot.slane %v281_v60, 1 }
  0x2d   : > { %963 = vrot.lane.b32.xlu1 %v3090_v29, %s2952_s28  ;;  %v339_v16 = vrot.slane %v275_v14, 1  ;;  %v380_v40 = vrot.slane %v275_v14, 2  ;;  %v385_v14 = vrot.slane %v278_v32, 2 }
  0x2e   : > { %1009 = vrot.lane.b32.xlu0 %v359_v31, %s2953_s30  ;;  %v342_v31 = vrot.slane %v3229_v27, 1 }
  0x30   : > { %v3257_v37 = vsel %vm315_vm0, %v342_v31, %v344_v34 }
  0x31   : > { %463 = vrot.lane.b32.xlu1 %v3102_v35, %s2952_s28 }
  0x32   : > { %1011 = vrot.lane.b32.xlu0 %v361_v39, %s2953_s30 }
  0x35   : > { %1057 = vrot.lane.b32.xlu1 %v318_v20, %s2954_s5  ;;  %v246_v20 = vld [vmem:[%s3060_s27 + $0x78] sm:$0xff] }
  0x36   : > { %465 = vrot.lane.b32.xlu0 %v268_v42, %s2952_s28  ;;  %v3217_v23 = vmax.f32 %v246_v20, 0.0 }
  0x38   : > { %v341_v30 = vrot.slane %v3217_v23, 1  ;;  %v382_v6 = vrot.slane %v3217_v23, 2 }
  0x39   : > { %511 = vrot.lane.b32.xlu1 %v3084_v25, %s2953_s30 }
  0x3a   : > { %1059 = vrot.lane.b32.xlu0 %v320_v21, %s2954_s5  ;;  %v3249_v33 = vsel %vm315_vm0, %v341_v30, %v342_v31 }
  0x3d   : > { %513 = vrot.lane.b32.xlu1 %v3090_v29, %s2953_s30 }
  0x3e   : > { %559 = vrot.lane.b32.xlu0 %v3065_v9, %s2954_s5  ;;  %v244_v9 = vld [vmem:[%s3060_s27 + $0x68] sm:$0xff] }
  0x3f   : > { %v274_v10 = vmax.f32 %v244_v9, 0.0 }
  0x41   : > { %965 = vrot.lane.b32.xlu1 %v3128_v47, %s2952_s28  ;;  %v337_v13 = vrot.slane %v274_v10, 1  ;;  %v378_v36 = vrot.slane %v274_v10, 2 }
  0x42   : > { %561 = vrot.lane.b32.xlu0 %v3071_v17, %s2954_s5  ;;  %v372_v17 = vrot.slane %v270_v55, 2 }
  0x43   : > { %v3203_v15 = vsel %vm315_vm0, %v336_v12, %v337_v13  ;;  %v3209_v19 = vsel %vm315_vm0, %v337_v13, %v339_v16 }
  0x44   : > { %v3213_v21 = vsel %vm356_vm1, %v372_v17, %v373_v18  ;;  %v3329_v17 = vmax.f32 %v252_v11, 0.0  ;;  %v255_v11 = vld [vmem:[%s3060_s27 + $0xc0] sm:$0xff] }
  0x45   : > { %967 = vrot.lane.b32.xlu1 %v3137_v51, %s2952_s28 }
  0x46   : > { %1013 = vrot.lane.b32.xlu0 %v3141_v53, %s2953_s30 }
  0x49   : > { %467 = vrot.lane.b32.xlu1 %v270_v55, %s2952_s28 }
  0x4a   : > { %1015 = vrot.lane.b32.xlu0 %v3148_v56, %s2953_s30 }
  0x4d   : > { %1061 = vrot.lane.b32.xlu1 %v3084_v25, %s2954_s5 }
  0x4e   : > { %469 = vrot.lane.b32.xlu0 %v271_v58, %s2952_s28 }
  0x51   : > { %515 = vrot.lane.b32.xlu1 %v3128_v47, %s2953_s30 }
  0x52   : > { %1063 = vrot.lane.b32.xlu0 %v3090_v29, %s2954_s5 }
  0x55   : > { %517 = vrot.lane.b32.xlu1 %v3137_v51, %s2953_s30 }
  0x56   : > { %563 = vrot.lane.b32.xlu0 %v3102_v35, %s2954_s5  ;;  %v377_v35 = vrot.slane %v273_v7, 2 }
  0x58   : > { %v3261_v39 = vsel %vm356_vm1, %v377_v35, %v378_v36 }
  0x59   : > { %969 = vrot.lane.b32.xlu1 %v3167_v63, %s2952_s28 }
  0x5a   : > { %565 = vrot.lane.b32.xlu0 %v268_v42, %s2954_s5  ;;  %v3270_v42 = vsel %vm356_vm1, %v378_v36, %v380_v40  ;;  %v3360_v40 = vld [vmem:[%s3060_s27 + $0xb8] sm:$0x3] }
  0x5d   : > { %971 = vrot.lane.b32.xlu1 %v3174_v3, %s2952_s28 }
  0x5e   : > { %1017 = vrot.lane.b32.xlu0 %v3178_v5, %s2953_s30 }
  0x61   : > { %471 = vrot.lane.b32.xlu1 %v273_v7, %s2952_s28 }
  0x62   : > { %1019 = vrot.lane.b32.xlu0 %v3185_v8, %s2953_s30 }
  0x65   : > { %1065 = vrot.lane.b32.xlu1 %v3128_v47, %s2954_s5 }
  0x66   : > { %473 = vrot.lane.b32.xlu0 %v274_v10, %s2952_s28 }
  0x69   : > { %519 = vrot.lane.b32.xlu1 %v3167_v63, %s2953_s30 }
  0x6a   : > { %1067 = vrot.lane.b32.xlu0 %v3137_v51, %s2954_s5 }
  0x6d   : > { %521 = vrot.lane.b32.xlu1 %v3174_v3, %s2953_s30 }
  0x6e   : > { %567 = vrot.lane.b32.xlu0 %v270_v55, %s2954_s5 }
  0x71   : > { %973 = vrot.lane.b32.xlu1 %v3203_v15, %s2952_s28 }
  0x72   : > { %569 = vrot.lane.b32.xlu0 %v271_v58, %s2954_s5  ;;  %v346_v58 = vrot.slane %v3265_v41, 1 }
  0x74   : > { %v3308_v1 = vsel %vm315_vm0, %v346_v58, %v347_v59 }
  0x75   : > { %975 = vrot.lane.b32.xlu1 %v3209_v19, %s2952_s28 }
  0x76   : > { %1021 = vrot.lane.b32.xlu0 %v3213_v21, %s2953_s30 }
  0x79   : > { %475 = vrot.lane.b32.xlu1 %v3217_v23, %s2952_s28 }
  0x7a   : > { %1023 = vrot.lane.b32.xlu0 %v3222_v24, %s2953_s30 }
  0x7d   : > { %1069 = vrot.lane.b32.xlu1 %v3167_v63, %s2954_s5 }
  0x7e   : > { %477 = vrot.lane.b32.xlu0 %v3229_v27, %s2952_s28 }
  0x81   : > { %523 = vrot.lane.b32.xlu1 %v3203_v15, %s2953_s30 }
  0x82   : > { %1071 = vrot.lane.b32.xlu0 %v3174_v3, %s2954_s5 }
  0x85   : > { %525 = vrot.lane.b32.xlu1 %v3209_v19, %s2953_s30 }
  0x86   : > { %571 = vrot.lane.b32.xlu0 %v273_v7, %s2954_s5  ;;  %v383_v7 = vrot.slane %v3229_v27, 2 }
  0x88   : > { %v3323_v13 = vsel %vm356_vm1, %v382_v6, %v383_v7  ;;  %v388_v6 = vrot.slane %v3277_v45, 2 }
  0x89   : > { %977 = vrot.lane.b32.xlu1 %v3249_v33, %s2952_s28 }
  0x8a   : > { %573 = vrot.lane.b32.xlu0 %v274_v10, %s2954_s5  ;;  %v3319_v10 = vsel %vm315_vm0, %v347_v59, %v349_v2  ;;  %v2552_v59 = vld [vmem:[%s4268_s1 + $0x60] sm:$0xff] }
  0x8d   : > { %979 = vrot.lane.b32.xlu1 %v3257_v37, %s2952_s28 }
  0x8e   : > { %1025 = vrot.lane.b32.xlu0 %v3261_v39, %s2953_s30 }
  0x90   : > { %v460_v44 = vpop.permute.xlu0 %459 }
  0x91   : > { %479 = vrot.lane.b32.xlu1 %v3265_v41, %s2952_s28  ;;  %v604_v49 = vsel %vm603_vm2, %v3084_v25, %v460_v44 }
  0x92   : > { %1027 = vrot.lane.b32.xlu0 %v3270_v42, %s2953_s30 }
  0x93   : > { %v508_v46 = vpop.permute.xlu1 %507 }
  0x94   : > { %v462_v48 = vpop.permute.xlu0 %461  ;;  %v621_v54 = vsel %vm620_vm3, %v604_v49, %v508_v46  ;;  %v2516_v46 = vld [vmem:[%s4268_s1 + $0x40] sm:$0xff] }
  0x95   : > { %1073 = vrot.lane.b32.xlu1 %v3203_v15, %s2954_s5  ;;  %v605_v57 = vsel %vm603_vm2, %v3090_v29, %v462_v48  ;;  %v351_v48 = vrot.slane %v3329_v17, 1 }
  0x96   : > { %481 = vrot.lane.b32.xlu0 %v3277_v45, %s2952_s28 }
  0x97   : > { %v510_v50 = vpop.permute.xlu1 %509 }
  0x98   : > { %v556_v55 = vpop.permute.xlu0 %555  ;;  %v622_v29 = vsel %vm620_vm3, %v605_v57, %v510_v50  ;;  %v284_v50 = vmax.f32 %v3360_v40, 0.0 }
  0x99   : > { %527 = vrot.lane.b32.xlu1 %v3249_v33, %s2953_s30  ;;  %v638_v25 = vsel %vm637_vm4, %v621_v54, %v556_v55 }
  0x9a   : > { %1075 = vrot.lane.b32.xlu0 %v3209_v19, %s2954_s5  ;;  %2684 = vmatprep.mubr.msk.f32.mxu0 %vm658_vm5, %v638_v25 }
  0x9b   : > { %v962_v61 = vpop.permute.xlu1 %961 }
  0x9c   : > { %v558_v62 = vpop.permute.xlu0 %557  ;;  %v1105_v18 = vsel %vm603_vm2, %v3141_v53, %v962_v61  ;;  %v3346_v53 = vmax.f32 %v253_v26, 0.0  ;;  %v2553_v61 = vld [vmem:[%s4268_s1 + $0x68] sm:$0xff] }
  0x9d   : > { %v639_v0 = vsel %vm637_vm4, %v622_v29, %v558_v62  ;;  %529 = vrot.lane.b32.xlu1 %v3257_v37, %s2953_s30 }
  0x9e   : > { %575 = vrot.lane.b32.xlu0 %v3217_v23, %s2954_s5  ;;  %2685 = vmatmul.mubr.msk.f32.vlgmr.msra.gmra.mrb[0].mxu0 %vm658_vm5, %v639_v0  ;;  %v3337_v23 = vsel %vm356_vm1, %v383_v7, %v385_v14  ;;  %v352_v49 = vrot.slane %v3346_v53, 1  ;;  %v354_v0 = vrot.slane %v284_v50, 1 }
  0x9f   : > { %v964_v4 = vpop.permute.xlu1 %963 }
  0xa0   : > { %v1010_v9 = vpop.permute.xlu0 %1009  ;;  %v1106_v30 = vsel %vm603_vm2, %v3148_v56, %v964_v4  ;;  %v3400_v62 = vsel %vm315_vm0, %v351_v48, %v352_v49  ;;  %v387_v4 = vrot.slane %v3265_v41, 2  ;;  %v3470_v48 = vld [vmem:[%s3060_s27 + $0xd0] sm:$0x3] }
  0xa1   : > { %981 = vrot.lane.b32.xlu1 %v3308_v1, %s2952_s28  ;;  %v1121_v20 = vsel %vm620_vm3, %v1105_v18, %v1010_v9  ;;  %v3411_v9 = vsel %vm315_vm0, %v352_v49, %v354_v0  ;;  %v3421_v18 = vmax.f32 %v255_v11, 0.0 }
  0xa2   : > { %577 = vrot.lane.b32.xlu0 %v3229_v27, %s2954_s5  ;;  %v3415_v14 = vsel %vm356_vm1, %v387_v4, %v388_v6 }
  0xa3   : > { %v464_v12 = vpop.permute.xlu1 %463 }
  0xa4   : > { %v1012_v16 = vpop.permute.xlu0 %1011  ;;  %v606_v36 = vsel %vm603_vm2, %v3128_v47, %v464_v12  ;;  %v2517_v47 = vld [vmem:[%s4268_s1 + $0x48] sm:$0xff] }
  0xa5   : > { %983 = vrot.lane.b32.xlu1 %v3319_v10, %s2952_s28  ;;  %v1122_v32 = vsel %vm620_vm3, %v1106_v30, %v1012_v16  ;;  %v2820_v54 = vpack.c.bf16 %v2517_v47, %v2516_v46  ;;  %v2519_v30 = vld [vmem:[%s4268_s1 + $0x58] sm:$0xff] }
  0xa6   : > { %1029 = vrot.lane.b32.xlu0 %v3323_v13, %s2953_s30 }
  0xa7   : > { %v1058_v22 = vpop.permute.xlu1 %1057  ;;  %2821 = vmatprep.subr.bf16.mxu0 %v2820_v54 }
  0xa8   : > { %v466_v27 = vpop.permute.xlu0 %465  ;;  %v1137_v28 = vsel %vm637_vm4, %v1121_v20, %v1058_v22  ;;  %2823 = vmatpush3.bf16.msra.mxu0 %v2820_v54 }
  0xa9   : > { %483 = vrot.lane.b32.xlu1 %v3329_v17, %s2952_s28  ;;  %2716 = vmatprep.mubr.msk.f32.mxu1 %vm658_vm5, %v1137_v28  ;;  %v607_v55 = vsel %vm603_vm2, %v3137_v51, %v466_v27  ;;  %v2828_v51 = vpack.c.bf16 %v2553_v61, %v2552_v59  ;;  %v2518_v28 = vld [vmem:[%s4268_s1 + $0x50] sm:$0xff] }
  0xaa   : > { %1031 = vrot.lane.b32.xlu0 %v3337_v23, %s2953_s30 }
  0xab   : > { %v512_v31 = vpop.permute.xlu1 %511  ;;  %2829 = vmatprep.subr.bf16.mxu1 %v2828_v51 }
  0xac   : > { %v1060_v34 = vpop.permute.xlu0 %1059  ;;  %v623_v56 = vsel %vm620_vm3, %v606_v36, %v512_v31 }
  0xad   : > { %v1138_v35 = vsel %vm637_vm4, %v1122_v32, %v1060_v34  ;;  %1077 = vrot.lane.b32.xlu1 %v3249_v33, %s2954_s5  ;;  %v2824_v34 = vpack.c.bf16 %v2519_v30, %v2518_v28  ;;  %v259_v28 = vld [vmem:[%s3060_s27 + $0xe0] sm:$0xff] }
  0xae   : > { %485 = vrot.lane.b32.xlu0 %v3346_v53, %s2952_s28  ;;  %2717 = vmatmul.mubr.msk.f32.vlgmr.msra.gmra.mrb[0].mxu1 %vm658_vm5, %v1138_v35 }
  0xaf   : > { %v514_v38 = vpop.permute.xlu1 %513  ;;  %2831 = vmatpush3.bf16.msra.mxu1 %v2828_v51  ;;  %2825 = vmatprep.subr.bf16.mxu0 %v2824_v34 }
  0xb0   : > { %v560_v43 = vpop.permute.xlu0 %559  ;;  %v624_v25 = vsel %vm620_vm3, %v607_v55, %v514_v38  ;;  %2827 = vmatpush3.bf16.msra.mxu0 %v2824_v34 }
  0xb1   : > { %v3364_v44 = vsel %vm637_vm4, %v623_v56, %v560_v43  ;;  %531 = vrot.lane.b32.xlu1 %v3308_v1, %s2953_s30  ;;  %v2554_v56 = vld [vmem:[%s4268_s1 + $0x70] sm:$0xff] }
  0xb2   : > { %1079 = vrot.lane.b32.xlu0 %v3257_v37, %s2954_s5  ;;  %2687 = vmatprep.mubr.msk.f32.mxu0 %vm658_vm5, %v3364_v44 }
  0xb3   : > { %v966_v57 = vpop.permute.xlu1 %965 }
  0xb4   : > { %v562_v58 = vpop.permute.xlu0 %561 }
  0xb5   : > { %v3391_v29 = vsel %vm637_vm4, %v624_v25, %v562_v58  ;;  %533 = vrot.lane.b32.xlu1 %v3319_v10, %s2953_s30  ;;  %v287_v25 = vmax.f32 %v3470_v48, 0.0 }
  0xb6   : > { %579 = vrot.lane.b32.xlu0 %v3265_v41, %s2954_s5  ;;  %2688 = vmatmul.mubr.msk.f32.gmra.mrb[2].mxu0 %vm658_vm5, %v3391_v29  ;;  %v390_v41 = vrot.slane %v281_v60, 2 }
  0xb7   : > { %v968_v2 = vpop.permute.xlu1 %967 }
  0xb8   : > { %v1014_v7 = vpop.permute.xlu0 %1013  ;;  %v3429_v26 = vsel %vm356_vm1, %v388_v6, %v390_v41  ;;  %v1108_v31 = vsel %vm603_vm2, %v3185_v8, %v968_v2  ;;  %v2555_v8 = vld [vmem:[%s4268_s1 + $0x78] sm:$0xff]  ;;  %v392_v6 = vrot.slane %v3329_v17, 2  ;;  %v395_v41 = vrot.slane %v284_v50, 2 }
  0xb9   : > { %985 = vrot.lane.b32.xlu1 %v3400_v62, %s2952_s28  ;;  %v2832_v43 = vpack.c.bf16 %v2555_v8, %v2554_v56  ;;  %v3556_v8 = vld [vmem:[%s3060_s27 + $0xe8] sm:$0x3] }
  0xba   : > { %581 = vrot.lane.b32.xlu0 %v3277_v45, %s2954_s5  ;;  %v1107_v45 = vsel %vm603_vm2, %v3178_v5, %v966_v57  ;;  %v3441_v5 = vmax.f32 %v256_v52, 0.0 }
  0xbb   : > { %v468_v12 = vpop.permute.xlu1 %467  ;;  %v1123_v20 = vsel %vm620_vm3, %v1107_v45, %v1014_v7  ;;  %2833 = vmatprep.subr.bf16.mxu1 %v2832_v43  ;;  %v393_v7 = vrot.slane %v3346_v53, 2 }
  0xbc   : > { %v1016_v16 = vpop.permute.xlu0 %1015  ;;  %v608_v46 = vsel %vm603_vm2, %v3167_v63, %v468_v12  ;;  %2835 = vmatpush3.bf16.msra.mxu1 %v2832_v43  ;;  %v400_v63 = vrot.slane %v3421_v18, 1  ;;  %v401_v57 = vrot.slane %v3441_v5, 1 }
  0xbd   : > { %987 = vrot.lane.b32.xlu1 %v3411_v9, %s2952_s28  ;;  %v1124_v35 = vsel %vm620_vm3, %v1108_v31, %v1016_v16 }
  0xbe   : > { %1033 = vrot.lane.b32.xlu0 %v3415_v14, %s2953_s30  ;;  %v3498_v2 = vsel %vm315_vm0, %v400_v63, %v401_v57 }
  0xbf   : > { %v1062_v22 = vpop.permute.xlu1 %1061 }
  0xc0   : > { %v3433_v60 = vsel %vm637_vm4, %v1123_v20, %v1062_v22  ;;  %v470_v27 = vpop.permute.xlu0 %469  ;;  %v258_v22 = vld [vmem:[%s3060_s27 + $0xd8] sm:$0xff]  ;;  %s201_s27 = sand.u32 1, %s2926_s15  }
  0xc1   : > { %487 = vrot.lane.b32.xlu1 %v3421_v18, %s2952_s28  ;;  %2719 = vmatprep.mubr.msk.f32.mxu1 %vm658_vm5, %v3433_v60  ;;  %v609_v58 = vsel %vm603_vm2, %v3174_v3, %v470_v27  ;;  %v403_v3 = vrot.slane %v287_v25, 1 }
  0xc2   : > { %1035 = vrot.lane.b32.xlu0 %v3429_v26, %s2953_s30 }
  0xc3   : > { %v516_v32 = vpop.permute.xlu1 %515  ;;  %v3509_v12 = vsel %vm315_vm0, %v401_v57, %v403_v3 }
  0xc4   : > { %v1064_v36 = vpop.permute.xlu0 %1063  ;;  %v625_v49 = vsel %vm620_vm3, %v608_v46, %v516_v32 }
  0xc5   : > { %v3453_v38 = vsel %vm637_vm4, %v1124_v35, %v1064_v36  ;;  %1081 = vrot.lane.b32.xlu1 %v3308_v1, %s2954_s5  ;;  %v3547_v36 = vmax.f32 %v259_v28, 0.0 }
  0xc6   : > { %489 = vrot.lane.b32.xlu0 %v3441_v5, %s2952_s28  ;;  %2720 = vmatmul.mubr.msk.f32.gmra.mrb[2].mxu1 %vm658_vm5, %v3453_v38 }
  0xc7   : > { %v518_v47 = vpop.permute.xlu1 %517 }
  0xc8   : > { %v564_v54 = vpop.permute.xlu0 %563  ;;  %v626_v61 = vsel %vm620_vm3, %v609_v58, %v518_v47 }
  0xc9   : > { %v3474_v55 = vsel %vm637_vm4, %v625_v49, %v564_v54  ;;  %535 = vrot.lane.b32.xlu1 %v3400_v62, %s2953_s30  ;;  %v446_v49 = vrot.slane %v3547_v36, 1  ;;  %v290_v54 = vmax.f32 %v3556_v8, 0.0 }
  0xca   : > { %1083 = vrot.lane.b32.xlu0 %v3319_v10, %s2954_s5  ;;  %2690 = vmatprep.mubr.msk.f32.mxu0 %vm658_vm5, %v3474_v55 }
  0xcb   : > { %v970_v59 = vpop.permute.xlu1 %969 }
  0xcc   : > { %v566_v51 = vpop.permute.xlu0 %565  ;;  %v1109_v20 = vsel %vm603_vm2, %v3213_v21, %v970_v59  ;;  %v3536_v21 = vmax.f32 %v258_v22, 0.0 }
  0xcd   : > { %v3489_v0 = vsel %vm637_vm4, %v626_v61, %v566_v51  ;;  %537 = vrot.lane.b32.xlu1 %v3411_v9, %s2953_s30 }
  0xce   : > { %583 = vrot.lane.b32.xlu0 %v3329_v17, %s2954_s5  ;;  %2691 = vmatmul.mubr.msk.f32.gmra.mrb[4].mxu0 %vm658_vm5, %v3489_v0  ;;  %v3514_v17 = vsel %vm356_vm1, %v392_v6, %v393_v7  ;;  %v422_v6 = vrot.slane %v3441_v5, 2 }
  0xcf   : > { %v972_v4 = vpop.permute.xlu1 %971 }
  0xd0   : > { %v1018_v11 = vpop.permute.xlu0 %1017  ;;  %v1110_v30 = vsel %vm603_vm2, %v3222_v24, %v972_v4  ;;  %v421_v4 = vrot.slane %v3421_v18, 2 }
  0xd1   : > { %989 = vrot.lane.b32.xlu1 %v3498_v2, %s2952_s28  ;;  %v1125_v40 = vsel %vm620_vm3, %v1109_v20, %v1018_v11 }
  0xd2   : > { %585 = vrot.lane.b32.xlu0 %v3346_v53, %s2954_s5  ;;  %v3523_v53 = vsel %vm356_vm1, %v393_v7, %v395_v41  ;;  %v424_v41 = vrot.slane %v287_v25, 2 }
  0xd3   : > { %v472_v16 = vpop.permute.xlu1 %471 }
  0xd4   : > { %v1020_v45 = vpop.permute.xlu0 %1019  ;;  %v610_v24 = vsel %vm603_vm2, %v3203_v15, %v472_v16  ;;  %v445_v15 = vrot.slane %v3536_v21, 1 }
  0xd5   : > { %991 = vrot.lane.b32.xlu1 %v3509_v12, %s2952_s28  ;;  %v1126_v32 = vsel %vm620_vm3, %v1110_v30, %v1020_v45  ;;  %v3600_v45 = vsel %vm356_vm1, %v421_v4, %v422_v6 }
  0xd6   : > { %1037 = vrot.lane.b32.xlu0 %v3514_v17, %s2953_s30  ;;  %v3584_v51 = vsel %vm315_vm0, %v445_v15, %v446_v49 }
  0xd7   : > { %v1066_v50 = vpop.permute.xlu1 %1065 }
  0xd8   : > { %v3528_v52 = vsel %vm637_vm4, %v1125_v40, %v1066_v50  ;;  %v474_v27 = vpop.permute.xlu0 %473 }
  0xd9   : > { %1039 = vrot.lane.b32.xlu1 %v3523_v53, %s2953_s30  ;;  %2722 = vmatprep.mubr.msk.f32.mxu1 %vm658_vm5, %v3528_v52  ;;  %v611_v63 = vsel %vm603_vm2, %v3209_v19, %v474_v27  ;;  %v448_v19 = vrot.slane %v290_v54, 1 }
  0xda   : > { %1085 = vrot.lane.b32.xlu0 %v3400_v62, %s2954_s5 }
  0xdb   : > { %v520_v31 = vpop.permute.xlu1 %519  ;;  %v3595_v11 = vsel %vm315_vm0, %v446_v49, %v448_v19 }
  0xdc   : > { %v1068_v34 = vpop.permute.xlu0 %1067  ;;  %v627_v43 = vsel %vm620_vm3, %v610_v24, %v520_v31 }
  0xdd   : > { %v3543_v35 = vsel %vm637_vm4, %v1126_v32, %v1068_v34  ;;  %1087 = vrot.lane.b32.xlu1 %v3411_v9, %s2954_s5 }
  0xde   : > { %2723 = vmatmul.mubr.msk.f32.gmra.mrb[4].mxu1 %vm658_vm5, %v3543_v35  ;;  %1460 = vrot.lane.b32.xlu0 %v3536_v21, %s2952_s28 }
  0xdf   : > { %v522_v56 = vpop.permute.xlu1 %521 }
  0xe0   : > { %v568_v46 = vpop.permute.xlu0 %567  ;;  %v628_v58 = vsel %vm620_vm3, %v611_v63, %v522_v56 }
  0xe1   : > { %v3560_v47 = vsel %vm637_vm4, %v627_v43, %v568_v46  ;;  %1462 = vrot.lane.b32.xlu1 %v3547_v36, %s2952_s28 }
  0xe2   : > { %2693 = vmatprep.mubr.msk.f32.mxu0 %vm658_vm5, %v3560_v47  ;;  %1466 = vrot.lane.b32.xlu0 %v3498_v2, %s2953_s30 }
  0xe3   : > { %v974_v57 = vpop.permute.xlu1 %973 }
  0xe4   : > { %v570_v59 = vpop.permute.xlu0 %569  ;;  %v1111_v20 = vsel %vm603_vm2, %v3261_v39, %v974_v57 }
  0xe5   : > { %v3575_v61 = vsel %vm637_vm4, %v628_v58, %v570_v59  ;;  %1468 = vrot.lane.b32.xlu1 %v3509_v12, %s2953_s30 }
  0xe6   : > { %2694 = vmatmul.mubr.msk.f32.gmra.mrb[6].mxu0 %vm658_vm5, %v3575_v61  ;;  %1472 = vrot.lane.b32.xlu0 %v3421_v18, %s2954_s5 }
  0xe7   : > { %v976_v3 = vpop.permute.xlu1 %975 }
  0xe8   : > { %v1022_v7 = vpop.permute.xlu0 %1021  ;;  %v1112_v39 = vsel %vm603_vm2, %v3270_v42, %v976_v3 }
  0xe9   : > { %1749 = vrot.lane.b32.xlu1 %v3584_v51, %s2952_s28  ;;  %v1127_v48 = vsel %vm620_vm3, %v1111_v20, %v1022_v7 }
  0xea   : > { %1474 = vrot.lane.b32.xlu0 %v3441_v5, %s2954_s5  ;;  %v3609_v5 = vsel %vm356_vm1, %v422_v6, %v424_v41 }
  0xeb   : > { %v476_v16 = vpop.permute.xlu1 %475 }
  0xec   : > { %v1024_v18 = vpop.permute.xlu0 %1023  ;;  %v612_v31 = vsel %vm603_vm2, %v3249_v33, %v476_v16 }
  0xed   : > { %1751 = vrot.lane.b32.xlu1 %v3595_v11, %s2952_s28  ;;  %v1128_v27 = vsel %vm620_vm3, %v1112_v39, %v1024_v18  ;;  %s2458_s28 = sshll.u32 %s201_s27, 9 }
  0xee   : > { %1755 = vrot.lane.b32.xlu0 %v3600_v45, %s2953_s30  ;;  %s3825_s15 = scalar_lea.vmem [#allocation2], %s2458_s28 }
  0xef   : > { %v1070_v25 = vpop.permute.xlu1 %1069 }
  0xf0   : > { %v3613_v40 = vsel %vm637_vm4, %v1127_v48, %v1070_v25  ;;  %v478_v50 = vpop.permute.xlu0 %477 }
  0xf1   : > { %2725 = vmatprep.mubr.msk.f32.mxu1 %vm658_vm5, %v3613_v40  ;;  %1757 = vrot.lane.b32.xlu1 %v3609_v5, %s2953_s30  ;;  %v613_v56 = vsel %vm603_vm2, %v3257_v37, %v478_v50  ;;  %s223_s30 = scalar_select %p222_p10, %s2934_s17, 1 }
  0xf2   : > { %1761 = vrot.lane.b32.xlu0 %v3498_v2, %s2954_s5 }
  0xf3   : > { %v524_v22 = vpop.permute.xlu1 %523 }
  0xf4   : > { %v1072_v28 = vpop.permute.xlu0 %1071  ;;  %v629_v34 = vsel %vm620_vm3, %v612_v31, %v524_v22 }
  0xf5   : > { %v3625_v30 = vsel %vm637_vm4, %v1128_v27, %v1072_v28  ;;  %1763 = vrot.lane.b32.xlu1 %v3509_v12, %s2954_s5  ;;  %s2460_s5 = sshll.u32 %s3047_s8, 1  ;;  %s2595_s8 = sshll.u32 (%p3026_p5), %s2934_s17, 4 }
  0xf6   : > { %2726 = vmatmul.mubr.msk.f32.gmra.mrb[6].mxu1 %vm658_vm5, %v3625_v30  ;;  %s225_s9 = sadd.s32 %s2460_s5, %s223_s30  ;;  %s2060_s25 = sadd.s32 (%p3026_p5), %s2595_s8, %s2591_s14 }
  0xf7   : > { %v526_v32 = vpop.permute.xlu1 %525  ;;  %s2461_s10 = sshll.u32 %s225_s9, 1  ;;  %s2592_s23 = sshll.u32 (%p3026_p5), %s2060_s25, 3 }
  0xf8   : > { %v572_v42 = vpop.permute.xlu0 %571  ;;  %v630_v46 = vsel %vm620_vm3, %v613_v56, %v526_v32  ;;  %s227_s13 = scalar_lea.vmem %s4271_s4, %s2461_s10  ;;  %s4125_s6 = scalar_lea.vmem (%p3026_p5), %s4270_s3, %s2592_s23 }
  0xf9   : > { %v3635_v24 = vsel %vm637_vm4, %v629_v34, %v572_v42 }
  0xfa   : > { %2696 = vmatprep.mubr.msk.f32.mxu0 %vm658_vm5, %v3635_v24 }
  0xfb   : > { %v978_v43 = vpop.permute.xlu1 %977 }
  0xfc   : > { %v574_v15 = vpop.permute.xlu0 %573  ;;  %v1113_v59 = vsel %vm603_vm2, %v3323_v13, %v978_v43 }
  0xfd   : > { %v3643_v49 = vsel %vm637_vm4, %v630_v46, %v574_v15 }
  0xfe   : > { %2697 = vmatmul.mubr.msk.f32.gmra.mrb[8].mxu0 %vm658_vm5, %v3643_v49 }
  0xff   : > { %v980_v33 = vpop.permute.xlu1 %979 }
 0x100   : > { %v1026_v63 = vpop.permute.xlu0 %1025  ;;  %v1114_v6 = vsel %vm603_vm2, %v3337_v23, %v980_v33 }
 0x101   : > { %v1129_v19 = vsel %vm620_vm3, %v1113_v59, %v1026_v63 }
 0x103   : > { %v480_v57 = vpop.permute.xlu1 %479 }
 0x104   : > { %v1028_v58 = vpop.permute.xlu0 %1027  ;;  %v614_v13 = vsel %vm603_vm2, %v3308_v1, %v480_v57 }
 0x105   : > { %v1130_v41 = vsel %vm620_vm3, %v1114_v6, %v1028_v58 }
 0x107   : > { %v1074_v37 = vpop.permute.xlu1 %1073 }
 0x108   : > { %v3651_v3 = vsel %vm637_vm4, %v1129_v19, %v1074_v37  ;;  %v482_v4 = vpop.permute.xlu0 %481 }
 0x109   : > { %2728 = vmatprep.mubr.msk.f32.mxu1 %vm658_vm5, %v3651_v3  ;;  %v615_v23 = vsel %vm603_vm2, %v3319_v10, %v482_v4 }
 0x10b   : > { %v528_v7 = vpop.permute.xlu1 %527 }
 0x10c   : > { %v1076_v16 = vpop.permute.xlu0 %1075  ;;  %v631_v48 = vsel %vm620_vm3, %v614_v13, %v528_v7 }
 0x10d   : > { %v3659_v18 = vsel %vm637_vm4, %v1130_v41, %v1076_v16 }
 0x10e   : > { %2729 = vmatmul.mubr.msk.f32.gmra.mrb[8].mxu1 %vm658_vm5, %v3659_v18 }
 0x10f   : > { %v530_v20 = vpop.permute.xlu1 %529 }
 0x110   : > { %v576_v25 = vpop.permute.xlu0 %575  ;;  %v632_v22 = vsel %vm620_vm3, %v615_v23, %v530_v20 }
 0x111   : > { %v3667_v50 = vsel %vm637_vm4, %v631_v48, %v576_v25 }
 0x112   : > { %2699 = vmatprep.mubr.msk.f32.mxu0 %vm658_vm5, %v3667_v50 }
 0x113   : > { %v982_v39 = vpop.permute.xlu1 %981 }
 0x114   : > { %v578_v27 = vpop.permute.xlu0 %577  ;;  %v1115_v42 = vsel %vm603_vm2, %v3415_v14, %v982_v39 }
 0x115   : > { %v3675_v28 = vsel %vm637_vm4, %v632_v22, %v578_v27 }
 0x116   : > { %2700 = vmatmul.mubr.msk.f32.gmra.mrb[10].mxu0 %vm658_vm5, %v3675_v28 }
 0x117   : > { %v984_v1 = vpop.permute.xlu1 %983 }
 0x118   : > { %v1030_v31 = vpop.permute.xlu0 %1029  ;;  %v1116_v15 = vsel %vm603_vm2, %v3429_v26, %v984_v1 }
 0x119   : > { %v1131_v56 = vsel %vm620_vm3, %v1115_v42, %v1030_v31 }
 0x11b   : > { %v484_v32 = vpop.permute.xlu1 %483 }
 0x11c   : > { %v1032_v34 = vpop.permute.xlu0 %1031  ;;  %v616_v14 = vsel %vm603_vm2, %v3400_v62, %v484_v32 }
 0x11d   : > { %v1132_v63 = vsel %vm620_vm3, %v1116_v15, %v1032_v34 }
 0x11f   : > { %v1078_v10 = vpop.permute.xlu1 %1077 }
 0x120   : > { %v3683_v43 = vsel %vm637_vm4, %v1131_v56, %v1078_v10  ;;  %v486_v46 = vpop.permute.xlu0 %485 }
 0x121   : > { %2731 = vmatprep.mubr.msk.f32.mxu1 %vm658_vm5, %v3683_v43  ;;  %v617_v26 = vsel %vm603_vm2, %v3411_v9, %v486_v46 }
 0x123   : > { %v532_v33 = vpop.permute.xlu1 %531 }
 0x124   : > { %v1080_v57 = vpop.permute.xlu0 %1079  ;;  %v633_v19 = vsel %vm620_vm3, %v616_v14, %v532_v33 }
 0x125   : > { %v3691_v58 = vsel %vm637_vm4, %v1132_v63, %v1080_v57 }
 0x126   : > { %2732 = vmatmul.mubr.msk.f32.gmra.mrb[10].mxu1 %vm658_vm5, %v3691_v58 }
 0x127   : > { %v534_v59 = vpop.permute.xlu1 %533 }
 0x128   : > { %v580_v37 = vpop.permute.xlu0 %579  ;;  %v634_v7 = vsel %vm620_vm3, %v617_v26, %v534_v59 }
 0x129   : > { %v3699_v4 = vsel %vm637_vm4, %v633_v19, %v580_v37 }
 0x12a   : > { %2702 = vmatprep.mubr.msk.f32.mxu0 %vm658_vm5, %v3699_v4 }
 0x12b   : > { %v986_v6 = vpop.permute.xlu1 %985 }
 0x12c   : > { %v582_v41 = vpop.permute.xlu0 %581  ;;  %v1117_v25 = vsel %vm603_vm2, %v3514_v17, %v986_v6 }
 0x12d   : > { %v3707_v16 = vsel %vm637_vm4, %v634_v7, %v582_v41 }
 0x12e   : > { %2703 = vmatmul.mubr.msk.f32.gmra.mrb[12].mxu0 %vm658_vm5, %v3707_v16 }
 0x12f   : > { %v988_v62 = vpop.permute.xlu1 %987 }
 0x130   : > { %v1034_v13 = vpop.permute.xlu0 %1033  ;;  %v1118_v27 = vsel %vm603_vm2, %v3523_v53, %v988_v62 }
 0x131   : > { %v1133_v23 = vsel %vm620_vm3, %v1117_v25, %v1034_v13 }
 0x133   : > { %v488_v20 = vpop.permute.xlu1 %487 }
 0x134   : > { %v1036_v48 = vpop.permute.xlu0 %1035  ;;  %v618_v17 = vsel %vm603_vm2, %v3498_v2, %v488_v20 }
 0x135   : > { %v1134_v31 = vsel %vm620_vm3, %v1118_v27, %v1036_v48 }
 0x137   : > { %v1082_v9 = vpop.permute.xlu1 %1081 }
 0x138   : > { %v3715_v39 = vsel %vm637_vm4, %v1133_v23, %v1082_v9  ;;  %v490_v22 = vpop.permute.xlu0 %489 }
 0x139   : > { %2734 = vmatprep.mubr.msk.f32.mxu1 %vm658_vm5, %v3715_v39  ;;  %v619_v53 = vsel %vm603_vm2, %v3509_v12, %v490_v22 }
 0x13b   : > { %v536_v1 = vpop.permute.xlu1 %535 }
 0x13c   : > { %v1084_v32 = vpop.permute.xlu0 %1083  ;;  %v635_v56 = vsel %vm620_vm3, %v618_v17, %v536_v1 }
 0x13d   : > { %v3723_v34 = vsel %vm637_vm4, %v1134_v31, %v1084_v32 }
 0x13e   : > { %2735 = vmatmul.mubr.msk.f32.gmra.mrb[12].mxu1 %vm658_vm5, %v3723_v34 }
 0x13f   : > { %v538_v42 = vpop.permute.xlu1 %537 }
 0x140   : > { %v584_v10 = vpop.permute.xlu0 %583  ;;  %v636_v33 = vsel %vm620_vm3, %v619_v53, %v538_v42 }
 0x141   : > { %v652_v46 = vsel %vm637_vm4, %v635_v56, %v584_v10 }
 0x142   : > { %2705 = vmatprep.mubr.msk.f32.mxu0 %vm658_vm5, %v652_v46 }
 0x143   : > { %v990_v15 = vpop.permute.xlu1 %989 }
 0x144   : > { %v586_v63 = vpop.permute.xlu0 %585  ;;  %v1119_v59 = vsel %vm603_vm2, %v3600_v45, %v990_v15 }
 0x145   : > { %v653_v57 = vsel %vm637_vm4, %v636_v33, %v586_v63 }
 0x146   : > { %2706 = vmatmul.mubr.msk.f32.gmra.mrb[14].mxu0 %vm658_vm5, %v653_v57 }
 0x147   : > { %2748 = vmatprep.mubr.msk.f32.mxu0 %vm658_vm5, %v3364_v44  ;;  %v992_v2 = vpop.permute.xlu1 %991 }
 0x148   : > { %v1038_v14 = vpop.permute.xlu0 %1037  ;;  %v1120_v44 = vsel %vm603_vm2, %v3609_v5, %v992_v2 }
 0x149   : > { %v1135_v19 = vsel %vm620_vm3, %v1119_v59, %v1038_v14 }
 0x14a   : > { %2749 = vmatmul.mubr.msk.f32.vlgmr.msra.gmra.mrb[16].mxu0 %vm658_vm5, %v3391_v29 }
 0x14b   : > { %2751 = vmatprep.mubr.msk.f32.mxu0 %vm658_vm5, %v3474_v55  ;;  %v1040_v12 = vpop.permute.xlu1 %1039 }
 0x14c   : > { %v1086_v37 = vpop.permute.xlu0 %1085  ;;  %v1136_v29 = vsel %vm620_vm3, %v1120_v44, %v1040_v12 }
 0x14d   : > { %v1151_v26 = vsel %vm637_vm4, %v1135_v19, %v1086_v37 }
 0x14e   : > { %2737 = vmatprep.mubr.msk.f32.mxu1 %vm658_vm5, %v1151_v26  ;;  %2752 = vmatmul.mubr.msk.f32.gmra.mrb[18].mxu0 %vm658_vm5, %v3489_v0 }
 0x14f   : > { %2754 = vmatprep.mubr.msk.f32.mxu0 %vm658_vm5, %v3560_v47  ;;  %v1088_v55 = vpop.permute.xlu1 %1087 }
 0x150   : > { %v1152_v45 = vsel %vm637_vm4, %v1136_v29, %v1088_v55  ;;  %v1461_v6 = vpop.permute.xlu0 %1460 }
 0x151   : > { %2738 = vmatmul.mubr.msk.f32.gmra.mrb[14].mxu1 %vm658_vm5, %v1152_v45 }
 0x152   : > { %2755 = vmatmul.mubr.msk.f32.gmra.mrb[20].mxu0 %vm658_vm5, %v3575_v61  ;;  %2780 = vmatprep.mubr.msk.f32.mxu1 %vm658_vm5, %v3433_v60 }
 0x153   : > { %2757 = vmatprep.mubr.msk.f32.mxu0 %vm658_vm5, %v3635_v24  ;;  %v1463_v0 = vpop.permute.xlu1 %1462  ;;  %v452_v24 = vrot.slane %v3536_v21, 2 }
 0x154   : > { %v1467_v5 = vpop.permute.xlu0 %1466 }
 0x155   : > { %2781 = vmatmul.mubr.msk.f32.vlgmr.msra.gmra.mrb[16].mxu1 %vm658_vm5, %v3453_v38  ;;  %v1478_v38 = vsel %vm603_vm2, %v3584_v51, %v1461_v6  ;;  %v453_v51 = vrot.slane %v3547_v36, 2 }
 0x156   : > { %2758 = vmatmul.mubr.msk.f32.gmra.mrb[22].mxu0 %vm658_vm5, %v3643_v49  ;;  %2783 = vmatprep.mubr.msk.f32.mxu1 %vm658_vm5, %v3528_v52 }
 0x157   : > { %2760 = vmatprep.mubr.msk.f32.mxu0 %vm658_vm5, %v3667_v50  ;;  %v1469_v47 = vpop.permute.xlu1 %1468  ;;  %v454_v21 = vsel %vm356_vm1, %v452_v24, %v453_v51 }
 0x158   : > { %v1473_v61 = vpop.permute.xlu0 %1472 }
 0x159   : > { %2784 = vmatmul.mubr.msk.f32.gmra.mrb[18].mxu1 %vm658_vm5, %v3543_v35  ;;  %v1480_v35 = vsel %vm620_vm3, %v1478_v38, %v1467_v5 }
 0x15a   : > { %2761 = vmatmul.mubr.msk.f32.gmra.mrb[24].mxu0 %vm658_vm5, %v3675_v28  ;;  %2786 = vmatprep.mubr.msk.f32.mxu1 %vm658_vm5, %v3613_v40  ;;  %v1479_v40 = vsel %vm603_vm2, %v3595_v11, %v1463_v0  ;;  %v1482_v49 = vsel %vm637_vm4, %v1480_v35, %v1473_v61  ;;  %v455_v11 = vrot.slane %v290_v54, 2 }
 0x15b   : > { %2763 = vmatprep.mubr.msk.f32.mxu0 %vm658_vm5, %v3699_v4  ;;  %v1750_v60 = vpop.permute.xlu1 %1749 }
 0x15c   : > { %v1475_v52 = vpop.permute.xlu0 %1474  ;;  %v1767_v50 = vsel %vm603_vm2, %v454_v21, %v1750_v60  ;;  %v456_v8 = vsel %vm356_vm1, %v453_v51, %v455_v11 }
 0x15d   : > { %2787 = vmatmul.mubr.msk.f32.gmra.mrb[20].mxu1 %vm658_vm5, %v3625_v30 }
 0x15e   : > { %2764 = vmatmul.mubr.msk.f32.gmra.mrb[26].mxu0 %vm658_vm5, %v3707_v16  ;;  %2789 = vmatprep.mubr.msk.f32.mxu1 %vm658_vm5, %v3651_v3  ;;  %v1481_v3 = vsel %vm620_vm3, %v1479_v40, %v1469_v47 }
 0x15f   : > { %2766 = vmatprep.mubr.msk.f32.mxu0 %vm658_vm5, %v652_v46  ;;  %v1752_v30 = vpop.permute.xlu1 %1751 }
 0x160   : > { %v1756_v36 = vpop.permute.xlu0 %1755 }
 0x161   : > { %2790 = vmatmul.mubr.msk.f32.gmra.mrb[22].mxu1 %vm658_vm5, %v3659_v18  ;;  %v1483_v18 = vsel %vm637_vm4, %v1481_v3, %v1475_v52  ;;  %v1769_v28 = vsel %vm620_vm3, %v1767_v50, %v1756_v36 }
 0x162   : > { %2767 = vmatmul.mubr.msk.f32.gmra.mrb[28].mxu0 %vm658_vm5, %v653_v57  ;;  %2792 = vmatprep.mubr.msk.f32.mxu1 %vm658_vm5, %v3683_v43  ;;  %v1768_v43 = vsel %vm603_vm2, %v456_v8, %v1752_v30 }
 0x163   : > { %2769 = vmatprep.mubr.msk.f32.mxu0 %vm658_vm5, %v1482_v49  ;;  %v1758_v54 = vpop.permute.xlu1 %1757 }
 0x164   : > { %v1762_v4 = vpop.permute.xlu0 %1761  ;;  %v1770_v7 = vsel %vm620_vm3, %v1768_v43, %v1758_v54 }
 0x165   : > { %2793 = vmatmul.mubr.msk.f32.gmra.mrb[24].mxu1 %vm658_vm5, %v3691_v58  ;;  %v1771_v58 = vsel %vm637_vm4, %v1769_v28, %v1762_v4 }
 0x166   : > { %2770 = vmatmul.mubr.msk.f32.gmra.mrb[30].mxu0 %vm658_vm5, %v1483_v18  ;;  %2795 = vmatprep.mubr.msk.f32.mxu1 %vm658_vm5, %v3715_v39 }
 0x167   : > { %v1764_v41 = vpop.permute.xlu1 %1763 }
 0x168   : > { %v1772_v16 = vsel %vm637_vm4, %v1770_v7, %v1764_v41 }
 0x169   : > { %2796 = vmatmul.mubr.msk.f32.gmra.mrb[26].mxu1 %vm658_vm5, %v3723_v34 }
 0x16a   : > { %2798 = vmatprep.mubr.msk.f32.mxu1 %vm658_vm5, %v1151_v26 }
 0x16d   : > { %2799 = vmatmul.mubr.msk.f32.gmra.mrb[28].mxu1 %vm658_vm5, %v1152_v45 }
 0x16e   : > { %2801 = vmatprep.mubr.msk.f32.mxu1 %vm658_vm5, %v1771_v58 }
 0x171   : > { %v2686_v62 = vpop.f32.mrb[0].mxu0  ;;  %2802 = vmatmul.mubr.msk.f32.gmra.mrb[30].mxu1 %vm658_vm5, %v1772_v16 }
 0x172   : > { %v854_v13 = vsel %vm852_vm6, %v2686_v62, 0.0  ;;  %v892_v20 = vmul.f32 %v2686_v62, %v2686_v62  ;;  %946 = vst.msk [vmem:[%s3825_s15 + $0x8] sm:$0xff] %vm852_vm6, %v2686_v62  ;;  %v773_v48 = vpop.f32.mrb[1].mxu0 }
 0x173   : > { %v853_v25 = vsel %vm852_vm6, %v773_v48, 0.0  ;;  %v891_v23 = vmul.f32 %v773_v48, %v773_v48  ;;  %945 = vst.msk [vmem:[%s3825_s15] sm:$0xff] %vm852_vm6, %v773_v48 }
 0x174   : > { %v908_v9 = vsel %vm852_vm6, %v892_v20, 0.0  ;;  %v855_v39 = vadd.f32 %v854_v13, %v853_v25 }
 0x175   : > { %v907_v22 = vsel %vm852_vm6, %v891_v23, 0.0 }
 0x176   : > { %v909_v27 = vadd.f32 %v908_v9, %v907_v22 }
 0x181   : > { %v2718_v1 = vpop.f32.mrb[0].mxu1 }
 0x182   : > { %v1352_v31 = vsel %vm852_vm6, %v2718_v1, 0.0  ;;  %v1390_v32 = vmul.f32 %v2718_v1, %v2718_v1  ;;  %2501 = vst.msk [vmem:[%s3825_s15 + $0x88] sm:$0xff] %vm852_vm6, %v2718_v1  ;;  %v1272_v34 = vpop.f32.mrb[1].mxu1 }
 0x183   : > { %v1351_v17 = vsel %vm852_vm6, %v1272_v34, 0.0  ;;  %v1389_v42 = vmul.f32 %v1272_v34, %v1272_v34  ;;  %2500 = vst.msk [vmem:[%s3825_s15 + $0x80] sm:$0xff] %vm852_vm6, %v1272_v34 }
 0x184   : > { %v1406_v56 = vsel %vm852_vm6, %v1390_v32, 0.0  ;;  %v1353_v10 = vadd.f32 %v1352_v31, %v1351_v17 }
 0x185   : > { %v1405_v46 = vsel %vm852_vm6, %v1389_v42, 0.0 }
 0x186   : > { %v1407_v53 = vadd.f32 %v1406_v56, %v1405_v46 }
 0x189   : > { %v2689_v15 = vpop.f32.mrb[2].mxu0 }
 0x18a   : > { %948 = vst.msk [vmem:[%s3825_s15 + $0x18] sm:$0xff] %vm852_vm6, %v2689_v15  ;;  %v783_v33 = vpop.f32.mrb[3].mxu0  ;;  %v894_v63 = vmul.f32 %v2689_v15, %v2689_v15  ;;  %v858_v59 = vsel %vm852_vm6, %v2689_v15, 0.0 }
 0x18b   : > { %v856_v57 = vsel %vm852_vm6, %v783_v33, 0.0  ;;  %v893_v2 = vmul.f32 %v783_v33, %v783_v33  ;;  %947 = vst.msk [vmem:[%s3825_s15 + $0x10] sm:$0xff] %vm852_vm6, %v783_v33 }
 0x18c   : > { %v857_v14 = vadd.f32 %v856_v57, %v855_v39  ;;  %v912_v26 = vsel %vm852_vm6, %v894_v63, 0.0 }
 0x18d   : > { %v910_v12 = vsel %vm852_vm6, %v893_v2, 0.0 }
 0x18e   : > { %v911_v19 = vadd.f32 %v910_v12, %v909_v27  ;;  %v859_v37 = vadd.f32 %v858_v59, %v857_v14 }
 0x190   : > { %v913_v44 = vadd.f32 %v912_v26, %v911_v19 }
 0x199   : > { %v2721_v29 = vpop.f32.mrb[2].mxu1 }
 0x19a   : > { %2503 = vst.msk [vmem:[%s3825_s15 + $0x98] sm:$0xff] %vm852_vm6, %v2721_v29  ;;  %v1282_v55 = vpop.f32.mrb[3].mxu1  ;;  %v1392_v45 = vmul.f32 %v2721_v29, %v2721_v29  ;;  %v1356_v47 = vsel %vm852_vm6, %v2721_v29, 0.0 }
 0x19b   : > { %v1354_v6 = vsel %vm852_vm6, %v1282_v55, 0.0  ;;  %v1391_v0 = vmul.f32 %v1282_v55, %v1282_v55  ;;  %2502 = vst.msk [vmem:[%s3825_s15 + $0x90] sm:$0xff] %vm852_vm6, %v1282_v55 }
 0x19c   : > { %v1355_v5 = vadd.f32 %v1354_v6, %v1353_v10  ;;  %v1410_v52 = vsel %vm852_vm6, %v1392_v45, 0.0 }
 0x19d   : > { %v1408_v61 = vsel %vm852_vm6, %v1391_v0, 0.0 }
 0x19e   : > { %v1409_v60 = vadd.f32 %v1408_v61, %v1407_v53  ;;  %v1357_v38 = vadd.f32 %v1356_v47, %v1355_v5 }
 0x1a0   : > { %v1411_v35 = vadd.f32 %v1410_v52, %v1409_v60 }
 0x1a1   : > { %v2692_v40 = vpop.f32.mrb[4].mxu0 }
 0x1a2   : > { %950 = vst.msk [vmem:[%s3825_s15 + $0x28] sm:$0xff] %vm852_vm6, %v2692_v40  ;;  %v793_v24 = vpop.f32.mrb[5].mxu0  ;;  %v896_v51 = vmul.f32 %v2692_v40, %v2692_v40  ;;  %v862_v11 = vsel %vm852_vm6, %v2692_v40, 0.0 }
 0x1a3   : > { %v860_v30 = vsel %vm852_vm6, %v793_v24, 0.0  ;;  %v895_v49 = vmul.f32 %v793_v24, %v793_v24  ;;  %949 = vst.msk [vmem:[%s3825_s15 + $0x20] sm:$0xff] %vm852_vm6, %v793_v24 }
 0x1a4   : > { %v861_v3 = vadd.f32 %v860_v30, %v859_v37  ;;  %v916_v50 = vsel %vm852_vm6, %v896_v51, 0.0 }
 0x1a5   : > { %v914_v21 = vsel %vm852_vm6, %v895_v49, 0.0 }
 0x1a6   : > { %v915_v36 = vadd.f32 %v914_v21, %v913_v44  ;;  %v863_v18 = vadd.f32 %v862_v11, %v861_v3 }
 0x1a8   : > { %v917_v8 = vadd.f32 %v916_v50, %v915_v36 }
 0x1b1   : > { %v2724_v54 = vpop.f32.mrb[4].mxu1 }
 0x1b2   : > { %2505 = vst.msk [vmem:[%s3825_s15 + $0xa8] sm:$0xff] %vm852_vm6, %v2724_v54  ;;  %v1292_v28 = vpop.f32.mrb[5].mxu1  ;;  %v1394_v43 = vmul.f32 %v2724_v54, %v2724_v54  ;;  %v1360_v41 = vsel %vm852_vm6, %v2724_v54, 0.0 }
 0x1b3   : > { %v1358_v4 = vsel %vm852_vm6, %v1292_v28, 0.0  ;;  %v1393_v58 = vmul.f32 %v1292_v28, %v1292_v28  ;;  %2504 = vst.msk [vmem:[%s3825_s15 + $0xa0] sm:$0xff] %vm852_vm6, %v1292_v28 }
 0x1b4   : > { %v1359_v7 = vadd.f32 %v1358_v4, %v1357_v38  ;;  %v1414_v20 = vsel %vm852_vm6, %v1394_v43, 0.0 }
 0x1b5   : > { %v1412_v16 = vsel %vm852_vm6, %v1393_v58, 0.0 }
 0x1b6   : > { %v1413_v62 = vadd.f32 %v1412_v16, %v1411_v35  ;;  %v1361_v13 = vadd.f32 %v1360_v41, %v1359_v7 }
 0x1b8   : > { %v1415_v48 = vadd.f32 %v1414_v20, %v1413_v62 }
 0x1b9   : > { %v2695_v25 = vpop.f32.mrb[6].mxu0 }
 0x1ba   : > { %952 = vst.msk [vmem:[%s3825_s15 + $0x38] sm:$0xff] %vm852_vm6, %v2695_v25  ;;  %v803_v23 = vpop.f32.mrb[7].mxu0  ;;  %v898_v9 = vmul.f32 %v2695_v25, %v2695_v25  ;;  %v866_v1 = vsel %vm852_vm6, %v2695_v25, 0.0 }
 0x1bb   : > { %v864_v39 = vsel %vm852_vm6, %v803_v23, 0.0  ;;  %v897_v22 = vmul.f32 %v803_v23, %v803_v23  ;;  %951 = vst.msk [vmem:[%s3825_s15 + $0x30] sm:$0xff] %vm852_vm6, %v803_v23 }
 0x1bc   : > { %v865_v27 = vadd.f32 %v864_v39, %v863_v18  ;;  %v920_v17 = vsel %vm852_vm6, %v898_v9, 0.0 }
 0x1bd   : > { %v918_v31 = vsel %vm852_vm6, %v897_v22, 0.0 }
 0x1be   : > { %v919_v32 = vadd.f32 %v918_v31, %v917_v8  ;;  %v867_v34 = vadd.f32 %v866_v1, %v865_v27 }
 0x1c0   : > { %v921_v42 = vadd.f32 %v920_v17, %v919_v32 }
 0x1c9   : > { %v2727_v56 = vpop.f32.mrb[6].mxu1 }
 0x1ca   : > { %2507 = vst.msk [vmem:[%s3825_s15 + $0xb8] sm:$0xff] %vm852_vm6, %v2727_v56  ;;  %v1302_v10 = vpop.f32.mrb[7].mxu1  ;;  %v1396_v46 = vmul.f32 %v2727_v56, %v2727_v56  ;;  %v1364_v63 = vsel %vm852_vm6, %v2727_v56, 0.0 }
 0x1cb   : > { %v1362_v53 = vsel %vm852_vm6, %v1302_v10, 0.0  ;;  %v1395_v15 = vmul.f32 %v1302_v10, %v1302_v10  ;;  %2506 = vst.msk [vmem:[%s3825_s15 + $0xb0] sm:$0xff] %vm852_vm6, %v1302_v10 }
 0x1cc   : > { %v1363_v33 = vadd.f32 %v1362_v53, %v1361_v13  ;;  %v1418_v59 = vsel %vm852_vm6, %v1396_v46, 0.0 }
 0x1cd   : > { %v1416_v57 = vsel %vm852_vm6, %v1395_v15, 0.0 }
 0x1ce   : > { %v1417_v2 = vadd.f32 %v1416_v57, %v1415_v48  ;;  %v1365_v14 = vadd.f32 %v1364_v63, %v1363_v33 }
 0x1d0   : > { %v1419_v12 = vadd.f32 %v1418_v59, %v1417_v2 }
 0x1d1   : > { %v2698_v19 = vpop.f32.mrb[8].mxu0 }
 0x1d2   : > { %954 = vst.msk [vmem:[%s3825_s15 + $0x48] sm:$0xff] %vm852_vm6, %v2698_v19  ;;  %v813_v37 = vpop.f32.mrb[9].mxu0  ;;  %v900_v26 = vmul.f32 %v2698_v19, %v2698_v19  ;;  %v870_v45 = vsel %vm852_vm6, %v2698_v19, 0.0 }
 0x1d3   : > { %v868_v44 = vsel %vm852_vm6, %v813_v37, 0.0  ;;  %v899_v29 = vmul.f32 %v813_v37, %v813_v37  ;;  %953 = vst.msk [vmem:[%s3825_s15 + $0x40] sm:$0xff] %vm852_vm6, %v813_v37 }
 0x1d4   : > { %v869_v55 = vadd.f32 %v868_v44, %v867_v34  ;;  %v924_v47 = vsel %vm852_vm6, %v900_v26, 0.0 }
 0x1d5   : > { %v922_v6 = vsel %vm852_vm6, %v899_v29, 0.0 }
 0x1d6   : > { %v923_v0 = vadd.f32 %v922_v6, %v921_v42  ;;  %v871_v5 = vadd.f32 %v870_v45, %v869_v55 }
 0x1d8   : > { %v925_v61 = vadd.f32 %v924_v47, %v923_v0 }
 0x1e1   : > { %v2730_v60 = vpop.f32.mrb[8].mxu1 }
 0x1e2   : > { %2509 = vst.msk [vmem:[%s3825_s15 + $0xc8] sm:$0xff] %vm852_vm6, %v2730_v60  ;;  %v1312_v38 = vpop.f32.mrb[9].mxu1  ;;  %v1398_v52 = vmul.f32 %v2730_v60, %v2730_v60  ;;  %v1368_v51 = vsel %vm852_vm6, %v2730_v60, 0.0 }
 0x1e3   : > { %v1366_v35 = vsel %vm852_vm6, %v1312_v38, 0.0  ;;  %v1397_v40 = vmul.f32 %v1312_v38, %v1312_v38  ;;  %2508 = vst.msk [vmem:[%s3825_s15 + $0xc0] sm:$0xff] %vm852_vm6, %v1312_v38 }
 0x1e4   : > { %v1367_v24 = vadd.f32 %v1366_v35, %v1365_v14  ;;  %v1422_v11 = vsel %vm852_vm6, %v1398_v52, 0.0 }
 0x1e5   : > { %v1420_v30 = vsel %vm852_vm6, %v1397_v40, 0.0 }
 0x1e6   : > { %v1421_v49 = vadd.f32 %v1420_v30, %v1419_v12  ;;  %v1369_v3 = vadd.f32 %v1368_v51, %v1367_v24 }
 0x1e8   : > { %v1423_v21 = vadd.f32 %v1422_v11, %v1421_v49 }
 0x1e9   : > { %v2701_v36 = vpop.f32.mrb[10].mxu0 }
 0x1ea   : > { %956 = vst.msk [vmem:[%s3825_s15 + $0x58] sm:$0xff] %vm852_vm6, %v2701_v36  ;;  %v823_v18 = vpop.f32.mrb[11].mxu0  ;;  %v902_v50 = vmul.f32 %v2701_v36, %v2701_v36  ;;  %v874_v43 = vsel %vm852_vm6, %v2701_v36, 0.0 }
 0x1eb   : > { %v872_v8 = vsel %vm852_vm6, %v823_v18, 0.0  ;;  %v901_v54 = vmul.f32 %v823_v18, %v823_v18  ;;  %955 = vst.msk [vmem:[%s3825_s15 + $0x50] sm:$0xff] %vm852_vm6, %v823_v18 }
 0x1ec   : > { %v873_v28 = vadd.f32 %v872_v8, %v871_v5  ;;  %v928_v41 = vsel %vm852_vm6, %v902_v50, 0.0 }
 0x1ed   : > { %v926_v4 = vsel %vm852_vm6, %v901_v54, 0.0 }
 0x1ee   : > { %v927_v58 = vadd.f32 %v926_v4, %v925_v61  ;;  %v875_v7 = vadd.f32 %v874_v43, %v873_v28 }
 0x1f0   : > { %v929_v16 = vadd.f32 %v928_v41, %v927_v58 }
 0x1f9   : > { %v2733_v62 = vpop.f32.mrb[10].mxu1 }
 0x1fa   : > { %2511 = vst.msk [vmem:[%s3825_s15 + $0xd8] sm:$0xff] %vm852_vm6, %v2733_v62  ;;  %v1322_v13 = vpop.f32.mrb[11].mxu1  ;;  %v1400_v20 = vmul.f32 %v2733_v62, %v2733_v62  ;;  %v1372_v9 = vsel %vm852_vm6, %v2733_v62, 0.0 }
 0x1fb   : > { %v1370_v48 = vsel %vm852_vm6, %v1322_v13, 0.0  ;;  %v1399_v25 = vmul.f32 %v1322_v13, %v1322_v13  ;;  %2510 = vst.msk [vmem:[%s3825_s15 + $0xd0] sm:$0xff] %vm852_vm6, %v1322_v13 }
 0x1fc   : > { %v1371_v23 = vadd.f32 %v1370_v48, %v1369_v3  ;;  %v1426_v1 = vsel %vm852_vm6, %v1400_v20, 0.0 }
 0x1fd   : > { %v1424_v39 = vsel %vm852_vm6, %v1399_v25, 0.0 }
 0x1fe   : > { %v1425_v22 = vadd.f32 %v1424_v39, %v1423_v21  ;;  %v1373_v27 = vadd.f32 %v1372_v9, %v1371_v23 }
 0x200   : > { %v1427_v31 = vadd.f32 %v1426_v1, %v1425_v22 }
 0x201   : > { %v2704_v32 = vpop.f32.mrb[12].mxu0 }
 0x202   : > { %958 = vst.msk [vmem:[%s3825_s15 + $0x68] sm:$0xff] %vm852_vm6, %v2704_v32  ;;  %v833_v34 = vpop.f32.mrb[13].mxu0  ;;  %v904_v17 = vmul.f32 %v2704_v32, %v2704_v32  ;;  %v878_v46 = vsel %vm852_vm6, %v2704_v32, 0.0 }
 0x203   : > { %v876_v42 = vsel %vm852_vm6, %v833_v34, 0.0  ;;  %v903_v56 = vmul.f32 %v833_v34, %v833_v34  ;;  %957 = vst.msk [vmem:[%s3825_s15 + $0x60] sm:$0xff] %vm852_vm6, %v833_v34 }
 0x204   : > { %v877_v10 = vadd.f32 %v876_v42, %v875_v7  ;;  %v932_v63 = vsel %vm852_vm6, %v904_v17, 0.0 }
 0x205   : > { %v930_v53 = vsel %vm852_vm6, %v903_v56, 0.0 }
 0x206   : > { %v931_v15 = vadd.f32 %v930_v53, %v929_v16  ;;  %v879_v33 = vadd.f32 %v878_v46, %v877_v10 }
 0x208   : > { %v933_v57 = vadd.f32 %v932_v63, %v931_v15 }
 0x211   : > { %v2736_v2 = vpop.f32.mrb[12].mxu1 }
 0x212   : > { %2513 = vst.msk [vmem:[%s3825_s15 + $0xe8] sm:$0xff] %vm852_vm6, %v2736_v2  ;;  %v1332_v14 = vpop.f32.mrb[13].mxu1  ;;  %v1402_v59 = vmul.f32 %v2736_v2, %v2736_v2  ;;  %v1376_v26 = vsel %vm852_vm6, %v2736_v2, 0.0 }
 0x213   : > { %v1374_v12 = vsel %vm852_vm6, %v1332_v14, 0.0  ;;  %v1401_v19 = vmul.f32 %v1332_v14, %v1332_v14  ;;  %2512 = vst.msk [vmem:[%s3825_s15 + $0xe0] sm:$0xff] %vm852_vm6, %v1332_v14 }
 0x214   : > { %v1375_v37 = vadd.f32 %v1374_v12, %v1373_v27  ;;  %v1430_v45 = vsel %vm852_vm6, %v1402_v59, 0.0 }
 0x215   : > { %v1428_v44 = vsel %vm852_vm6, %v1401_v19, 0.0 }
 0x216   : > { %v1429_v29 = vadd.f32 %v1428_v44, %v1427_v31  ;;  %v1377_v55 = vadd.f32 %v1376_v26, %v1375_v37 }
 0x218   : > { %v3938_v6 = vadd.f32 %v1430_v45, %v1429_v29 }
 0x219   : > { %v2707_v0 = vpop.f32.mrb[14].mxu0 }
 0x21a   : > { %960 = vst.msk [vmem:[%s3825_s15 + $0x78] sm:$0xff] %vm852_vm6, %v2707_v0  ;;  %v843_v5 = vpop.f32.mrb[15].mxu0  ;;  %v906_v47 = vmul.f32 %v2707_v0, %v2707_v0  ;;  %v882_v52 = vsel %vm852_vm6, %v2707_v0, 0.0 }
 0x21b   : > { %v880_v61 = vsel %vm852_vm6, %v843_v5, 0.0  ;;  %v905_v60 = vmul.f32 %v843_v5, %v843_v5  ;;  %959 = vst.msk [vmem:[%s3825_s15 + $0x70] sm:$0xff] %vm852_vm6, %v843_v5 }
 0x21c   : > { %v881_v38 = vadd.f32 %v880_v61, %v879_v33  ;;  %v936_v11 = vsel %vm852_vm6, %v906_v47, 0.0 }
 0x21d   : > { %v934_v35 = vsel %vm852_vm6, %v905_v60, 0.0  ;;  %v2750_v40 = vpop.f32.mrb[16].mxu0 }
 0x21e   : > { %v883_v24 = vadd.f32 %v882_v52, %v881_v38  ;;  %v935_v51 = vadd.f32 %v934_v35, %v933_v57  ;;  %v1641_v30 = vsel %vm852_vm6, %v2750_v40, 0.0  ;;  %v1679_v49 = vmul.f32 %v2750_v40, %v2750_v40  ;;  %2537 = vst.msk [vmem:[%s3825_s15 + $0x108] sm:$0xff] %vm852_vm6, %v2750_v40  ;;  %v1561_v3 = vpop.f32.mrb[17].mxu0 }
 0x21f   : > { %v1640_v21 = vsel %vm852_vm6, %v1561_v3, 0.0  ;;  %v1678_v36 = vmul.f32 %v1561_v3, %v1561_v3  ;;  %2536 = vst.msk [vmem:[%s3825_s15 + $0x100] sm:$0xff] %vm852_vm6, %v1561_v3 }
 0x220   : > { %v884_v18 = vrot.slane %v883_v24, 4  ;;  %v937_v50 = vadd.f32 %v936_v11, %v935_v51  ;;  %v1695_v8 = vsel %vm852_vm6, %v1679_v49, 0.0  ;;  %v1642_v54 = vadd.f32 %v1641_v30, %v1640_v21 }
 0x221   : > { %v1694_v28 = vsel %vm852_vm6, %v1678_v36, 0.0  ;;  %v2753_v43 = vpop.f32.mrb[18].mxu0 }
 0x222   : > { %v885_v4 = vadd.f32 %v884_v18, %v883_v24  ;;  %v938_v58 = vrot.slane %v937_v50, 4  ;;  %v1696_v7 = vadd.f32 %v1695_v8, %v1694_v28  ;;  %2539 = vst.msk [vmem:[%s3825_s15 + $0x118] sm:$0xff] %vm852_vm6, %v2753_v43  ;;  %v1571_v41 = vpop.f32.mrb[19].mxu0  ;;  %v1681_v16 = vmul.f32 %v2753_v43, %v2753_v43 }
 0x223   : > { %v1643_v62 = vsel %vm852_vm6, %v1571_v41, 0.0  ;;  %v1680_v13 = vmul.f32 %v1571_v41, %v1571_v41  ;;  %2538 = vst.msk [vmem:[%s3825_s15 + $0x110] sm:$0xff] %vm852_vm6, %v1571_v41  ;;  %v1645_v9 = vsel %vm852_vm6, %v2753_v43, 0.0 }
 0x224   : > { %v886_v20 = vrot.slane %v885_v4, 2  ;;  %v939_v48 = vadd.f32 %v938_v58, %v937_v50  ;;  %v1644_v25 = vadd.f32 %v1643_v62, %v1642_v54  ;;  %v2739_v23 = vpop.f32.mrb[14].mxu1  ;;  %v1699_v56 = vsel %vm852_vm6, %v1681_v16, 0.0 }
 0x225   : > { %v1697_v39 = vsel %vm852_vm6, %v1680_v13, 0.0  ;;  %v1404_v22 = vmul.f32 %v2739_v23, %v2739_v23  ;;  %2515 = vst.msk [vmem:[%s3825_s15 + $0xf8] sm:$0xff] %vm852_vm6, %v2739_v23  ;;  %v1342_v27 = vpop.f32.mrb[15].mxu1  ;;  %v2756_v1 = vpop.f32.mrb[20].mxu0  ;;  %v1380_v10 = vsel %vm852_vm6, %v2739_v23, 0.0 }
 0x226   : > { %v887_v31 = vadd.f32 %v886_v20, %v885_v4  ;;  %v940_v32 = vrot.slane %v939_v48, 2  ;;  %v1698_v34 = vadd.f32 %v1697_v39, %v1696_v7  ;;  %v1378_v17 = vsel %vm852_vm6, %v1342_v27, 0.0  ;;  %2514 = vst.msk [vmem:[%s3825_s15 + $0xf0] sm:$0xff] %vm852_vm6, %v1342_v27  ;;  %2541 = vst.msk [vmem:[%s3825_s15 + $0x128] sm:$0xff] %vm852_vm6, %v2756_v1  ;;  %v1581_v42 = vpop.f32.mrb[21].mxu0 }
 0x227   : > { %v1379_v46 = vadd.f32 %v1378_v17, %v1377_v55  ;;  %v1403_v53 = vmul.f32 %v1342_v27, %v1342_v27  ;;  %2540 = vst.msk [vmem:[%s3825_s15 + $0x120] sm:$0xff] %vm852_vm6, %v1581_v42  ;;  %v1683_v63 = vmul.f32 %v2756_v1, %v2756_v1  ;;  %v1646_v57 = vadd.f32 %v1645_v9, %v1644_v25 }
 0x228   : > { %v888_v15 = vrot.slane %v887_v31, 1  ;;  %v941_v33 = vadd.f32 %v940_v32, %v939_v48  ;;  %v2782_v2 = vpop.f32.mrb[16].mxu1  ;;  %v1647_v12 = vsel %vm852_vm6, %v1581_v42, 0.0  ;;  %v1682_v19 = vmul.f32 %v1581_v42, %v1581_v42 }
 0x229   : > { %v1381_v14 = vadd.f32 %v1380_v10, %v1379_v46  ;;  %v1432_v59 = vsel %vm852_vm6, %v1403_v53, 0.0  ;;  %2573 = vst.msk [vmem:[%s3825_s15 + $0x188] sm:$0xff] %vm852_vm6, %v2782_v2  ;;  %v2759_v37 = vpop.f32.mrb[22].mxu0  ;;  %v1850_v26 = vpop.f32.mrb[17].mxu1  ;;  %v1434_v29 = vsel %vm852_vm6, %v1404_v22, 0.0  ;;  %v1649_v45 = vsel %vm852_vm6, %v2756_v1, 0.0 }
 0x22a   : > { %v942_v44 = vrot.slane %v941_v33, 1  ;;  %v1433_v55 = vadd.f32 %v1432_v59, %v3938_v6  ;;  %2543 = vst.msk [vmem:[%s3825_s15 + $0x138] sm:$0xff] %vm852_vm6, %v2759_v37  ;;  %2572 = vst.msk [vmem:[%s3825_s15 + $0x180] sm:$0xff] %vm852_vm6, %v1850_v26  ;;  %v1591_v0 = vpop.f32.mrb[23].mxu0  ;;  %v1648_v47 = vadd.f32 %v1647_v12, %v1646_v57  ;;  %v1700_v61 = vadd.f32 %v1699_v56, %v1698_v34 }
 0x22b   : > { %v1382_v5 = vrot.slane %v1381_v14, 4  ;;  %v1701_v60 = vsel %vm852_vm6, %v1682_v19, 0.0  ;;  %2542 = vst.msk [vmem:[%s3825_s15 + $0x130] sm:$0xff] %vm852_vm6, %v1591_v0  ;;  %v3988_v38 = vadd.f32 %v888_v15, %v887_v31  ;;  %v1930_v6 = vsel %vm852_vm6, %v2782_v2, 0.0 }
 0x22c   : > { %v1435_v52 = vadd.f32 %v1434_v29, %v1433_v55  ;;  %v1968_v35 = vmul.f32 %v2782_v2, %v2782_v2  ;;  %v2785_v40 = vpop.f32.mrb[18].mxu1  ;;  %v1703_v51 = vsel %vm852_vm6, %v1683_v63, 0.0  ;;  %v1702_v30 = vadd.f32 %v1701_v60, %v1700_v61 }
 0x22d   : > { %v1383_v24 = vadd.f32 %v1382_v5, %v1381_v14  ;;  %v1685_v49 = vmul.f32 %v2759_v37, %v2759_v37  ;;  %2575 = vst.msk [vmem:[%s3825_s15 + $0x198] sm:$0xff] %vm852_vm6, %v2785_v40  ;;  %v2762_v3 = vpop.f32.mrb[24].mxu0  ;;  %v1860_v11 = vpop.f32.mrb[19].mxu1  ;;  %v1929_v18 = vsel %vm852_vm6, %v1850_v26, 0.0  ;;  %v1967_v50 = vmul.f32 %v1850_v26, %v1850_v26 }
 0x22e   : > { %v1436_v21 = vrot.slane %v1435_v52, 4  ;;  %v1984_v36 = vsel %vm852_vm6, %v1968_v35, 0.0  ;;  %2545 = vst.msk [vmem:[%s3825_s15 + $0x148] sm:$0xff] %vm852_vm6, %v2762_v3  ;;  %2574 = vst.msk [vmem:[%s3825_s15 + $0x190] sm:$0xff] %vm852_vm6, %v1860_v11  ;;  %v1601_v8 = vpop.f32.mrb[25].mxu0  ;;  %v4000_v54 = vadd.f32 %v942_v44, %v941_v33  ;;  %v1931_v43 = vadd.f32 %v1930_v6, %v1929_v18 }
 0x22f   : > { %v1384_v28 = vrot.slane %v1383_v24, 2  ;;  %v1650_v4 = vadd.f32 %v1649_v45, %v1648_v47  ;;  %2544 = vst.msk [vmem:[%s3825_s15 + $0x140] sm:$0xff] %vm852_vm6, %v1601_v8  ;;  %v1983_v7 = vsel %vm852_vm6, %v1967_v50, 0.0  ;;  %v1651_v41 = vsel %vm852_vm6, %v1591_v0, 0.0 }
 0x230   : > { %v1437_v58 = vadd.f32 %v1436_v21, %v1435_v52  ;;  %v1684_v16 = vmul.f32 %v1591_v0, %v1591_v0  ;;  %v2788_v62 = vpop.f32.mrb[20].mxu1  ;;  %v1985_v20 = vadd.f32 %v1984_v36, %v1983_v7  ;;  %v1704_v25 = vadd.f32 %v1703_v51, %v1702_v30 }
 0x231   : > { %v1385_v13 = vadd.f32 %v1384_v28, %v1383_v24  ;;  %v1652_v48 = vadd.f32 %v1651_v41, %v1650_v4  ;;  %2577 = vst.msk [vmem:[%s3825_s15 + $0x1a8] sm:$0xff] %vm852_vm6, %v2788_v62  ;;  %v2765_v23 = vpop.f32.mrb[26].mxu0  ;;  %v1870_v9 = vpop.f32.mrb[21].mxu1  ;;  %v1653_v22 = vsel %vm852_vm6, %v2759_v37, 0.0  ;;  %v1707_v27 = vsel %vm852_vm6, %v1685_v49, 0.0 }
 0x232   : > { %v1438_v39 = vrot.slane %v1437_v58, 2  ;;  %v1705_v1 = vsel %vm852_vm6, %v1684_v16, 0.0  ;;  %2547 = vst.msk [vmem:[%s3825_s15 + $0x158] sm:$0xff] %vm852_vm6, %v2765_v23  ;;  %2576 = vst.msk [vmem:[%s3825_s15 + $0x1a0] sm:$0xff] %vm852_vm6, %v1870_v9  ;;  %v1611_v31 = vpop.f32.mrb[27].mxu0  ;;  %v1934_v17 = vsel %vm852_vm6, %v2785_v40, 0.0  ;;  %v1970_v42 = vmul.f32 %v2785_v40, %v2785_v40 }
 0x233   : > { %v1386_v32 = vrot.slane %v1385_v13, 1  ;;  %v1706_v34 = vadd.f32 %v1705_v1, %v1704_v25  ;;  %2546 = vst.msk [vmem:[%s3825_s15 + $0x150] sm:$0xff] %vm852_vm6, %v1611_v31  ;;  %v1687_v10 = vmul.f32 %v2762_v3, %v2762_v3  ;;  %v1932_v46 = vsel %vm852_vm6, %v1860_v11, 0.0 }
 0x234   : > { %v1439_v56 = vadd.f32 %v1438_v39, %v1437_v58  ;;  %v1969_v53 = vmul.f32 %v1860_v11, %v1860_v11  ;;  %v2791_v15 = vpop.f32.mrb[22].mxu1  ;;  %v1657_v63 = vsel %vm852_vm6, %v2762_v3, 0.0  ;;  %v1933_v57 = vadd.f32 %v1932_v46, %v1931_v43 }
 0x235   : > { %v1387_v33 = vadd.f32 %v1386_v32, %v1385_v13  ;;  %v1654_v2 = vadd.f32 %v1653_v22, %v1652_v48  ;;  %2579 = vst.msk [vmem:[%s3825_s15 + $0x1b8] sm:$0xff] %vm852_vm6, %v2791_v15  ;;  %v2768_v14 = vpop.f32.mrb[28].mxu0  ;;  %v1880_v59 = vpop.f32.mrb[23].mxu1  ;;  %v1655_v37 = vsel %vm852_vm6, %v1601_v8, 0.0  ;;  %v1686_v26 = vmul.f32 %v1601_v8, %v1601_v8 }
 0x236   : > { %v1440_v12 = vrot.slane %v1439_v56, 1  ;;  %v1986_v19 = vsel %vm852_vm6, %v1969_v53, 0.0  ;;  %2549 = vst.msk [vmem:[%s3825_s15 + $0x168] sm:$0xff] %vm852_vm6, %v2768_v14  ;;  %2578 = vst.msk [vmem:[%s3825_s15 + $0x1b0] sm:$0xff] %vm852_vm6, %v1880_v59  ;;  %v1621_v44 = vpop.f32.mrb[29].mxu0  ;;  %v1708_v0 = vadd.f32 %v1707_v27, %v1706_v34  ;;  %v1988_v47 = vsel %vm852_vm6, %v1970_v42, 0.0 }
 0x237   : > { %v4029_v29 = vadd.f32 %v1387_v33, %v3988_v38  ;;  %v1987_v55 = vadd.f32 %v1986_v19, %v1985_v20  ;;  %v1656_v45 = vadd.f32 %v1655_v37, %v1654_v2  ;;  %2548 = vst.msk [vmem:[%s3825_s15 + $0x160] sm:$0xff] %vm852_vm6, %v1621_v44  ;;  %v1711_v61 = vsel %vm852_vm6, %v1687_v10, 0.0 }
 0x238   : > { %v1441_v5 = vadd.f32 %v1440_v12, %v1439_v56  ;;  %v1709_v60 = vsel %vm852_vm6, %v1686_v26, 0.0  ;;  %v2794_v52 = vpop.f32.mrb[24].mxu1  ;;  %v1972_v35 = vmul.f32 %v2788_v62, %v2788_v62  ;;  %v1689_v40 = vmul.f32 %v2765_v23, %v2765_v23 }
 0x239   : > { %v1710_v6 = vadd.f32 %v1709_v60, %v1708_v0  ;;  %v1935_v38 = vadd.f32 %v1934_v17, %v1933_v57  ;;  %2581 = vst.msk [vmem:[%s3825_s15 + $0x1c8] sm:$0xff] %vm852_vm6, %v2794_v52  ;;  %v2771_v24 = vpop.f32.mrb[30].mxu0  ;;  %v1890_v51 = vpop.f32.mrb[25].mxu1  ;;  %v1938_v49 = vsel %vm852_vm6, %v2788_v62, 0.0  ;;  %v1936_v3 = vsel %vm852_vm6, %v1870_v9, 0.0 }
 0x23a   : > { %v4039_v30 = vadd.f32 %v1441_v5, %v4000_v54  ;;  %v1971_v11 = vmul.f32 %v1870_v9, %v1870_v9  ;;  %2551 = vst.msk [vmem:[%s3825_s15 + $0x178] sm:$0xff] %vm852_vm6, %v2771_v24  ;;  %2580 = vst.msk [vmem:[%s3825_s15 + $0x1c0] sm:$0xff] %vm852_vm6, %v1890_v51  ;;  %v1631_v21 = vpop.f32.mrb[31].mxu0  ;;  %v1661_v36 = vsel %vm852_vm6, %v2765_v23, 0.0  ;;  %v1989_v50 = vadd.f32 %v1988_v47, %v1987_v55 }
 0x23b   : > { %v1937_v18 = vadd.f32 %v1936_v3, %v1935_v38  ;;  %v1658_v8 = vadd.f32 %v1657_v63, %v1656_v45  ;;  %2550 = vst.msk [vmem:[%s3825_s15 + $0x170] sm:$0xff] %vm852_vm6, %v1631_v21  ;;  %v1659_v28 = vsel %vm852_vm6, %v1611_v31, 0.0  ;;  %v1688_v43 = vmul.f32 %v1611_v31, %v1611_v31 }
 0x23c   : > { %v1990_v54 = vsel %vm852_vm6, %v1971_v11, 0.0  ;;  %v1712_v4 = vadd.f32 %v1711_v61, %v1710_v6  ;;  %v4052_v58 = vpop.f32.mrb[26].mxu1  ;;  %v1992_v7 = vsel %vm852_vm6, %v1972_v35, 0.0  ;;  %v1715_v41 = vsel %vm852_vm6, %v1689_v40, 0.0 }
 0x23d   : > { %v1991_v16 = vadd.f32 %v1990_v54, %v1989_v50  ;;  %v1660_v62 = vadd.f32 %v1659_v28, %v1658_v8  ;;  %2583 = vst.msk [vmem:[%s3825_s15 + $0x1d8] sm:$0xff] %vm852_vm6, %v4052_v58  ;;  %v1900_v13 = vpop.f32.mrb[27].mxu1  ;;  %v1713_v20 = vsel %vm852_vm6, %v1688_v43, 0.0  ;;  %v1974_v48 = vmul.f32 %v2791_v15, %v2791_v15 }
 0x23e   : > { %v1691_v25 = vmul.f32 %v2768_v14, %v2768_v14  ;;  %v1939_v23 = vadd.f32 %v1938_v49, %v1937_v18  ;;  %2582 = vst.msk [vmem:[%s3825_s15 + $0x1d0] sm:$0xff] %vm852_vm6, %v1900_v13  ;;  %v1714_v9 = vadd.f32 %v1713_v20, %v1712_v4  ;;  %v1942_v39 = vsel %vm852_vm6, %v2791_v15, 0.0 }
 0x23f   : > { %v1940_v22 = vsel %vm852_vm6, %v1880_v59, 0.0  ;;  %v1973_v27 = vmul.f32 %v1880_v59, %v1880_v59  ;;  %v1665_v1 = vsel %vm852_vm6, %v2768_v14, 0.0  ;;  %v1993_v32 = vadd.f32 %v1992_v7, %v1991_v16 }
 0x240   : > { %v1941_v31 = vadd.f32 %v1940_v22, %v1939_v23  ;;  %v1662_v34 = vadd.f32 %v1661_v36, %v1660_v62  ;;  %v2800_v17 = vpop.f32.mrb[28].mxu1  ;;  %v1663_v56 = vsel %vm852_vm6, %v1621_v44, 0.0  ;;  %v1690_v10 = vmul.f32 %v1621_v44, %v1621_v44 }
 0x241   : > { %v1994_v42 = vsel %vm852_vm6, %v1973_v27, 0.0  ;;  %v1716_v46 = vadd.f32 %v1715_v41, %v1714_v9  ;;  %2585 = vst.msk [vmem:[%s3825_s15 + $0x1e8] sm:$0xff] %vm852_vm6, %v2800_v17  ;;  %v1910_v53 = vpop.f32.mrb[29].mxu1  ;;  %v1996_v15 = vsel %vm852_vm6, %v1974_v48, 0.0  ;;  %v1719_v33 = vsel %vm852_vm6, %v1691_v25, 0.0 }
 0x242   : > { %v1995_v63 = vadd.f32 %v1994_v42, %v1993_v32  ;;  %v1664_v57 = vadd.f32 %v1663_v56, %v1662_v34  ;;  %2584 = vst.msk [vmem:[%s3825_s15 + $0x1e0] sm:$0xff] %vm852_vm6, %v1910_v53  ;;  %v1717_v2 = vsel %vm852_vm6, %v1690_v10, 0.0  ;;  %v1946_v14 = vsel %vm852_vm6, %v2794_v52, 0.0 }
 0x243   : > { %v1976_v59 = vmul.f32 %v2794_v52, %v2794_v52  ;;  %v1943_v12 = vadd.f32 %v1942_v39, %v1941_v31  ;;  %v1718_v19 = vadd.f32 %v1717_v2, %v1716_v46  ;;  %v1669_v37 = vsel %vm852_vm6, %v2771_v24, 0.0 }
 0x244   : > { %v1944_v26 = vsel %vm852_vm6, %v1890_v51, 0.0  ;;  %v1975_v44 = vmul.f32 %v1890_v51, %v1890_v51  ;;  %v2803_v55 = vpop.f32.mrb[30].mxu1  ;;  %v1693_v45 = vmul.f32 %v2771_v24, %v2771_v24  ;;  %v1997_v5 = vadd.f32 %v1996_v15, %v1995_v63 }
 0x245   : > { %v1945_v0 = vadd.f32 %v1944_v26, %v1943_v12  ;;  %v1666_v47 = vadd.f32 %v1665_v1, %v1664_v57  ;;  %2587 = vst.msk [vmem:[%s3825_s15 + $0x1f8] sm:$0xff] %vm852_vm6, %v2803_v55  ;;  %v1920_v61 = vpop.f32.mrb[31].mxu1  ;;  %v1667_v52 = vsel %vm852_vm6, %v1631_v21, 0.0  ;;  %v1692_v6 = vmul.f32 %v1631_v21, %v1631_v21 }
 0x246   : > { %v1998_v60 = vsel %vm852_vm6, %v1975_v44, 0.0  ;;  %v1720_v35 = vadd.f32 %v1719_v33, %v1718_v19  ;;  %2586 = vst.msk [vmem:[%s3825_s15 + $0x1f0] sm:$0xff] %vm852_vm6, %v1920_v61  ;;  %v2000_v40 = vsel %vm852_vm6, %v1976_v59, 0.0  ;;  %v1978_v24 = vmul.f32 %v4052_v58, %v4052_v58 }
 0x247   : > { %v1999_v38 = vadd.f32 %v1998_v60, %v1997_v5  ;;  %v1668_v51 = vadd.f32 %v1667_v52, %v1666_v47  ;;  %v1721_v49 = vsel %vm852_vm6, %v1692_v6, 0.0  ;;  %v1947_v3 = vadd.f32 %v1946_v14, %v1945_v0 }
 0x248   : > { %v1948_v11 = vsel %vm852_vm6, %v1900_v13, 0.0  ;;  %v1977_v36 = vmul.f32 %v1900_v13, %v1900_v13  ;;  %v1722_v50 = vadd.f32 %v1721_v49, %v1720_v35  ;;  %v1723_v21 = vsel %vm852_vm6, %v1693_v45, 0.0 }
 0x249   : > { %v1670_v18 = vadd.f32 %v1669_v37, %v1668_v51  ;;  %v2001_v8 = vadd.f32 %v2000_v40, %v1999_v38  ;;  %v1950_v54 = vsel %vm852_vm6, %v4052_v58, 0.0  ;;  %v1949_v28 = vadd.f32 %v1948_v11, %v1947_v3  ;;  %v2216_v3 = vld [vmem:[%s3825_s15] sm:$0xff] (%p3026_p5)  ;;  %v2218_v11 = vld [vmem:[%s3825_s15 + $0x8] sm:$0xff] (%p3026_p5) }
 0x24a   : > { %v2002_v43 = vsel %vm852_vm6, %v1977_v36, 0.0  ;;  %v1724_v7 = vadd.f32 %v1723_v21, %v1722_v50  ;;  %v1952_v16 = vsel %vm852_vm6, %v1910_v53, 0.0  ;;  %v2004_v62 = vsel %vm852_vm6, %v1978_v24, 0.0  ;;  %v2220_v36 = vld [vmem:[%s3825_s15 + $0x10] sm:$0xff] (%p3026_p5)  ;;  %v2224_v50 = vld [vmem:[%s3825_s15 + $0x20] sm:$0xff] (%p3026_p5)  ;;  %2217 = vst [vmem:[%s4125_s6] sm:$0xff] (%p3026_p5), %v2216_v3  ;;  %2219 = vst [vmem:[%s4125_s6 + $0x8] sm:$0xff] (%p3026_p5), %v2218_v11 }
 0x24b   : > { %v1671_v4 = vrot.slane %v1670_v18, 4  ;;  %v2003_v41 = vadd.f32 %v2002_v43, %v2001_v8  ;;  %v1980_v20 = vmul.f32 %v2800_v17, %v2800_v17  ;;  %v1951_v13 = vadd.f32 %v1950_v54, %v1949_v28  ;;  %v2226_v8 = vld [vmem:[%s3825_s15 + $0x28] sm:$0xff] (%p3026_p5)  ;;  %v2228_v21 = vld [vmem:[%s3825_s15 + $0x30] sm:$0xff] (%p3026_p5)  ;;  %v2230_v54 = vld [vmem:[%s3825_s15 + $0x38] sm:$0xff] (%p3026_p5)  ;;  %2221 = vst [vmem:[%s4125_s6 + $0x10] sm:$0xff] (%p3026_p5), %v2220_v36 }
 0x24c   : > { %v1979_v48 = vmul.f32 %v1910_v53, %v1910_v53  ;;  %v1725_v23 = vrot.slane %v1724_v7, 4  ;;  %v1954_v39 = vsel %vm852_vm6, %v2800_v17, 0.0  ;;  %v1981_v27 = vmul.f32 %v1920_v61, %v1920_v61  ;;  %v2232_v28 = vld [vmem:[%s3825_s15 + $0x40] sm:$0xff] (%p3026_p5)  ;;  %v2234_v43 = vld [vmem:[%s3825_s15 + $0x48] sm:$0xff] (%p3026_p5)  ;;  %2225 = vst [vmem:[%s4125_s6 + $0x20] sm:$0xff] (%p3026_p5), %v2224_v50  ;;  %2227 = vst [vmem:[%s4125_s6 + $0x28] sm:$0xff] (%p3026_p5), %v2226_v8 }
 0x24d   : > { %v1672_v25 = vadd.f32 %v1671_v4, %v1670_v18  ;;  %v2005_v9 = vadd.f32 %v2004_v62, %v2003_v41  ;;  %v1953_v22 = vadd.f32 %v1952_v16, %v1951_v13  ;;  %v1956_v34 = vsel %vm852_vm6, %v1920_v61, 0.0  ;;  %v2222_v18 = vld [vmem:[%s3825_s15 + $0x18] sm:$0xff] (%p3026_p5)  ;;  %v2236_v4 = vld [vmem:[%s3825_s15 + $0x50] sm:$0xff] (%p3026_p5)  ;;  %2229 = vst [vmem:[%s4125_s6 + $0x30] sm:$0xff] (%p3026_p5), %v2228_v21  ;;  %2231 = vst [vmem:[%s4125_s6 + $0x38] sm:$0xff] (%p3026_p5), %v2230_v54 }
 0x24e   : > { %v2006_v58 = vsel %vm852_vm6, %v1979_v48, 0.0  ;;  %v1726_v31 = vadd.f32 %v1725_v23, %v1724_v7  ;;  %v2008_v42 = vsel %vm852_vm6, %v1980_v20, 0.0  ;;  %v1982_v56 = vmul.f32 %v2803_v55, %v2803_v55  ;;  %v2238_v7 = vld [vmem:[%s3825_s15 + $0x58] sm:$0xff] (%p3026_p5)  ;;  %2223 = vst [vmem:[%s4125_s6 + $0x18] sm:$0xff] (%p3026_p5), %v2222_v18  ;;  %2233 = vst [vmem:[%s4125_s6 + $0x40] sm:$0xff] (%p3026_p5), %v2232_v28  ;;  %v2240_v41 = vld [vmem:[%s3825_s15 + $0x60] sm:$0xff] (%p3026_p5) }
 0x24f   : > { %v1673_v1 = vrot.slane %v1672_v25, 2  ;;  %v2007_v32 = vadd.f32 %v2006_v58, %v2005_v9  ;;  %v1955_v10 = vadd.f32 %v1954_v39, %v1953_v22  ;;  %v2010_v46 = vsel %vm852_vm6, %v1981_v27, 0.0  ;;  %2235 = vst [vmem:[%s4125_s6 + $0x48] sm:$0xff] (%p3026_p5), %v2234_v43  ;;  %2237 = vst [vmem:[%s4125_s6 + $0x50] sm:$0xff] (%p3026_p5), %v2236_v4  ;;  %v2242_v16 = vld [vmem:[%s3825_s15 + $0x68] sm:$0xff] (%p3026_p5)  ;;  %v2244_v62 = vld [vmem:[%s3825_s15 + $0x70] sm:$0xff] (%p3026_p5) }
 0x250   : > { %v1727_v15 = vrot.slane %v1726_v31, 2  ;;  %v1958_v2 = vsel %vm852_vm6, %v2803_v55, 0.0  ;;  %v2012_v59 = vsel %vm852_vm6, %v1982_v56, 0.0  ;;  %2239 = vst [vmem:[%s4125_s6 + $0x58] sm:$0xff] (%p3026_p5), %v2238_v7  ;;  %2241 = vst [vmem:[%s4125_s6 + $0x60] sm:$0xff] (%p3026_p5), %v2240_v41  ;;  %v2246_v20 = vld [vmem:[%s3825_s15 + $0x78] sm:$0xff] (%p3026_p5) }
 0x251   : > { %v1674_v53 = vadd.f32 %v1673_v1, %v1672_v25  ;;  %v2009_v33 = vadd.f32 %v2008_v42, %v2007_v32  ;;  %v1957_v17 = vadd.f32 %v1956_v34, %v1955_v10  ;;  %2243 = vst [vmem:[%s4125_s6 + $0x68] sm:$0xff] (%p3026_p5), %v2242_v16  ;;  %2245 = vst [vmem:[%s4125_s6 + $0x70] sm:$0xff] (%p3026_p5), %v2244_v62  ;;  %v2248_v13 = vld [vmem:[%s3825_s15 + $0x80] sm:$0xff] (%p3026_p5)  ;;  %v2250_v48 = vld [vmem:[%s3825_s15 + $0x88] sm:$0xff] (%p3026_p5) }
 0x252   : > { %v1728_v57 = vadd.f32 %v1727_v15, %v1726_v31  ;;  %2247 = vst [vmem:[%s4125_s6 + $0x78] sm:$0xff] (%p3026_p5), %v2246_v20  ;;  %2249 = vst [vmem:[%s4125_s6 + $0x100] sm:$0xff] (%p3026_p5), %v2248_v13  ;;  %v2252_v25 = vld [vmem:[%s3825_s15 + $0x90] sm:$0xff] (%p3026_p5)  ;;  %v2254_v23 = vld [vmem:[%s3825_s15 + $0x98] sm:$0xff] (%p3026_p5) }
 0x253   : > { %v1675_v63 = vrot.slane %v1674_v53, 1  ;;  %v2011_v14 = vadd.f32 %v2010_v46, %v2009_v33  ;;  %v1959_v12 = vadd.f32 %v1958_v2, %v1957_v17  ;;  %2251 = vst [vmem:[%s4125_s6 + $0x108] sm:$0xff] (%p3026_p5), %v2250_v48  ;;  %v2256_v9 = vld [vmem:[%s3825_s15 + $0xa0] sm:$0xff] (%p3026_p5)  ;;  %2253 = vst [vmem:[%s4125_s6 + $0x110] sm:$0xff] (%p3026_p5), %v2252_v25  ;;  %v2258_v39 = vld [vmem:[%s3825_s15 + $0xa8] sm:$0xff] (%p3026_p5) }
 0x254   : > { %v1729_v37 = vrot.slane %v1728_v57, 1  ;;  %2255 = vst [vmem:[%s4125_s6 + $0x118] sm:$0xff] (%p3026_p5), %v2254_v23  ;;  %2257 = vst [vmem:[%s4125_s6 + $0x120] sm:$0xff] (%p3026_p5), %v2256_v9  ;;  %v2260_v22 = vld [vmem:[%s3825_s15 + $0xb0] sm:$0xff] (%p3026_p5)  ;;  %v2262_v58 = vld [vmem:[%s3825_s15 + $0xb8] sm:$0xff] (%p3026_p5) }
 0x255   : > { %v1676_v19 = vadd.f32 %v1675_v63, %v1674_v53  ;;  %v2013_v26 = vadd.f32 %v2012_v59, %v2011_v14  ;;  %v1960_v44 = vrot.slane %v1959_v12, 4  ;;  %2259 = vst [vmem:[%s4125_s6 + $0x128] sm:$0xff] (%p3026_p5), %v2258_v39  ;;  %2261 = vst [vmem:[%s4125_s6 + $0x130] sm:$0xff] (%p3026_p5), %v2260_v22  ;;  %v2264_v27 = vld [vmem:[%s3825_s15 + $0xc0] sm:$0xff] (%p3026_p5)  ;;  %v2266_v1 = vld [vmem:[%s3825_s15 + $0xc8] sm:$0xff] (%p3026_p5) }
 0x256   : > { %v1730_v0 = vadd.f32 %v1729_v37, %v1728_v57  ;;  %2263 = vst [vmem:[%s4125_s6 + $0x138] sm:$0xff] (%p3026_p5), %v2262_v58  ;;  %v2268_v31 = vld [vmem:[%s3825_s15 + $0xd0] sm:$0xff] (%p3026_p5)  ;;  %2265 = vst [vmem:[%s4125_s6 + $0x140] sm:$0xff] (%p3026_p5), %v2264_v27  ;;  %v2270_v32 = vld [vmem:[%s3825_s15 + $0xd8] sm:$0xff] (%p3026_p5) }
 0x257   : > { %v1677_v45 = vadd.f32 %v1676_v19, %v4029_v29  ;;  %v2014_v5 = vrot.slane %v2013_v26, 4  ;;  %v1961_v47 = vadd.f32 %v1960_v44, %v1959_v12  ;;  %2267 = vst [vmem:[%s4125_s6 + $0x148] sm:$0xff] (%p3026_p5), %v2266_v1  ;;  %2269 = vst [vmem:[%s4125_s6 + $0x150] sm:$0xff] (%p3026_p5), %v2268_v31  ;;  %v2272_v34 = vld [vmem:[%s3825_s15 + $0xe0] sm:$0xff] (%p3026_p5)  ;;  %v2274_v42 = vld [vmem:[%s3825_s15 + $0xe8] sm:$0xff] (%p3026_p5) }
 0x258   : > { %v1731_v61 = vadd.f32 %v1730_v0, %v4039_v30  ;;  %2271 = vst [vmem:[%s4125_s6 + $0x158] sm:$0xff] (%p3026_p5), %v2270_v32  ;;  %2273 = vst [vmem:[%s4125_s6 + $0x160] sm:$0xff] (%p3026_p5), %v2272_v34  ;;  %v2276_v56 = vld [vmem:[%s3825_s15 + $0xf0] sm:$0xff] (%p3026_p5)  ;;  %v2278_v10 = vld [vmem:[%s3825_s15 + $0xf8] sm:$0xff] (%p3026_p5) }
 0x259   : > { %v2015_v60 = vadd.f32 %v2014_v5, %v2013_v26  ;;  %v1962_v55 = vrot.slane %v1961_v47, 2  ;;  %2275 = vst [vmem:[%s4125_s6 + $0x168] sm:$0xff] (%p3026_p5), %v2274_v42  ;;  %v2280_v46 = vld [vmem:[%s3825_s15 + $0x100] sm:$0xff] (%p3026_p5)  ;;  %2277 = vst [vmem:[%s4125_s6 + $0x170] sm:$0xff] (%p3026_p5), %v2276_v56  ;;  %v2282_v53 = vld [vmem:[%s3825_s15 + $0x108] sm:$0xff] (%p3026_p5) }
 0x25a   : > { %2279 = vst [vmem:[%s4125_s6 + $0x178] sm:$0xff] (%p3026_p5), %v2278_v10  ;;  %2281 = vst [vmem:[%s4125_s6 + $0x200] sm:$0xff] (%p3026_p5), %v2280_v46  ;;  %v2284_v15 = vld [vmem:[%s3825_s15 + $0x110] sm:$0xff] (%p3026_p5)  ;;  %v2286_v33 = vld [vmem:[%s3825_s15 + $0x118] sm:$0xff] (%p3026_p5) }
 0x25b   : > { %v2016_v52 = vrot.slane %v2015_v60, 2  ;;  %v1963_v6 = vadd.f32 %v1962_v55, %v1961_v47  ;;  %2283 = vst [vmem:[%s4125_s6 + $0x208] sm:$0xff] (%p3026_p5), %v2282_v53  ;;  %2285 = vst [vmem:[%s4125_s6 + $0x210] sm:$0xff] (%p3026_p5), %v2284_v15  ;;  %v2288_v17 = vld [vmem:[%s3825_s15 + $0x120] sm:$0xff] (%p3026_p5)  ;;  %v2290_v63 = vld [vmem:[%s3825_s15 + $0x128] sm:$0xff] (%p3026_p5) }
 0x25c   : > { %2287 = vst [vmem:[%s4125_s6 + $0x218] sm:$0xff] (%p3026_p5), %v2286_v33  ;;  %v2292_v57 = vld [vmem:[%s3825_s15 + $0x130] sm:$0xff] (%p3026_p5)  ;;  %2289 = vst [vmem:[%s4125_s6 + $0x220] sm:$0xff] (%p3026_p5), %v2288_v17  ;;  %v2294_v2 = vld [vmem:[%s3825_s15 + $0x138] sm:$0xff] (%p3026_p5) }
 0x25d   : > { %v2017_v35 = vadd.f32 %v2016_v52, %v2015_v60  ;;  %v1964_v40 = vrot.slane %v1963_v6, 1  ;;  %2291 = vst [vmem:[%s4125_s6 + $0x228] sm:$0xff] (%p3026_p5), %v2290_v63  ;;  %2293 = vst [vmem:[%s4125_s6 + $0x230] sm:$0xff] (%p3026_p5), %v2292_v57  ;;  %v2296_v14 = vld [vmem:[%s3825_s15 + $0x140] sm:$0xff] (%p3026_p5)  ;;  %v2298_v59 = vld [vmem:[%s3825_s15 + $0x148] sm:$0xff] (%p3026_p5) }
 0x25e   : > { %2295 = vst [vmem:[%s4125_s6 + $0x238] sm:$0xff] (%p3026_p5), %v2294_v2  ;;  %2297 = vst [vmem:[%s4125_s6 + $0x240] sm:$0xff] (%p3026_p5), %v2296_v14  ;;  %v2300_v12 = vld [vmem:[%s3825_s15 + $0x150] sm:$0xff] (%p3026_p5)  ;;  %v2302_v19 = vld [vmem:[%s3825_s15 + $0x158] sm:$0xff] (%p3026_p5) }
 0x25f   : > { %v2018_v38 = vrot.slane %v2017_v35, 1  ;;  %v1965_v51 = vadd.f32 %v1964_v40, %v1963_v6  ;;  %2299 = vst [vmem:[%s4125_s6 + $0x248] sm:$0xff] (%p3026_p5), %v2298_v59  ;;  %v2304_v37 = vld [vmem:[%s3825_s15 + $0x160] sm:$0xff] (%p3026_p5)  ;;  %2301 = vst [vmem:[%s4125_s6 + $0x250] sm:$0xff] (%p3026_p5), %v2300_v12  ;;  %v2306_v26 = vld [vmem:[%s3825_s15 + $0x168] sm:$0xff] (%p3026_p5) }
 0x260   : > { %2056 = sbr.rel (!%p3026_p5) target bundleno = 619 (0x26b), region = 36  ;;  %2303 = vst [vmem:[%s4125_s6 + $0x258] sm:$0xff] (%p3026_p5), %v2302_v19  ;;  %2305 = vst [vmem:[%s4125_s6 + $0x260] sm:$0xff] (%p3026_p5), %v2304_v37  ;;  %v2308_v44 = vld [vmem:[%s3825_s15 + $0x170] sm:$0xff] (%p3026_p5)  ;;  %v2312_v0 = vld [vmem:[%s3825_s15 + $0x180] sm:$0xff] (%p3026_p5) }
 0x261   : > { %v2019_v24 = vadd.f32 %v2018_v38, %v2017_v35  ;;  %v1966_v49 = vadd.f32 %v1965_v51, %v1677_v45  ;;  %v2310_v45 = vld [vmem:[%s3825_s15 + $0x178] sm:$0xff] (%p3026_p5)  ;;  %2307 = vst [vmem:[%s4125_s6 + $0x268] sm:$0xff] (%p3026_p5), %v2306_v26  ;;  %2309 = vst [vmem:[%s4125_s6 + $0x270] sm:$0xff] (%p3026_p5), %v2308_v44  ;;  %v2314_v5 = vld [vmem:[%s3825_s15 + $0x188] sm:$0xff] (%p3026_p5) }
 0x262   : > { %2311 = vst [vmem:[%s4125_s6 + $0x278] sm:$0xff] (%p3026_p5), %v2310_v45  ;;  %v2316_v47 = vld [vmem:[%s3825_s15 + $0x190] sm:$0xff] (%p3026_p5)  ;;  %2313 = vst [vmem:[%s4125_s6 + $0x300] sm:$0xff] (%p3026_p5), %v2312_v0  ;;  %v2320_v60 = vld [vmem:[%s3825_s15 + $0x1a0] sm:$0xff] (%p3026_p5) }
 0x263   : > { %v2020_v29 = vadd.f32 %v2019_v24, %v1731_v61  ;;  %2315 = vst [vmem:[%s4125_s6 + $0x308] sm:$0xff] (%p3026_p5), %v2314_v5  ;;  %2317 = vst [vmem:[%s4125_s6 + $0x310] sm:$0xff] (%p3026_p5), %v2316_v47  ;;  %v2318_v61 = vld [vmem:[%s3825_s15 + $0x198] sm:$0xff] (%p3026_p5)  ;;  %v2322_v55 = vld [vmem:[%s3825_s15 + $0x1a8] sm:$0xff] (%p3026_p5) }
 0x264   : > { %2319 = vst [vmem:[%s4125_s6 + $0x318] sm:$0xff] (%p3026_p5), %v2318_v61  ;;  %2321 = vst [vmem:[%s4125_s6 + $0x320] sm:$0xff] (%p3026_p5), %v2320_v60  ;;  %v2324_v52 = vld [vmem:[%s3825_s15 + $0x1b0] sm:$0xff] (%p3026_p5)  ;;  %v2326_v6 = vld [vmem:[%s3825_s15 + $0x1b8] sm:$0xff] (%p3026_p5) }
 0x265   : > { %v2039_v30 = vsel %vm2038_vm7, %v1966_v49, %v2020_v29  ;;  %2323 = vst [vmem:[%s4125_s6 + $0x328] sm:$0xff] (%p3026_p5), %v2322_v55  ;;  %v2328_v35 = vld [vmem:[%s3825_s15 + $0x1c0] sm:$0xff] (%p3026_p5)  ;;  %2325 = vst [vmem:[%s4125_s6 + $0x330] sm:$0xff] (%p3026_p5), %v2324_v52  ;;  %v2330_v40 = vld [vmem:[%s3825_s15 + $0x1c8] sm:$0xff] (%p3026_p5) }
 0x266   : > { %2041 = vst.msk [vmem:[%s227_s13] sm:$0x3] %vm2040_vm8, %v2039_v30  ;;  %2327 = vst [vmem:[%s4125_s6 + $0x338] sm:$0xff] (%p3026_p5), %v2326_v6  ;;  %v2332_v38 = vld [vmem:[%s3825_s15 + $0x1d0] sm:$0xff] (%p3026_p5)  ;;  %v2334_v51 = vld [vmem:[%s3825_s15 + $0x1d8] sm:$0xff] (%p3026_p5) }
 0x267   : > { %2329 = vst [vmem:[%s4125_s6 + $0x340] sm:$0xff] %v2328_v35  ;;  %2331 = vst [vmem:[%s4125_s6 + $0x348] sm:$0xff] %v2330_v40  ;;  %v2336_v24 = vld [vmem:[%s3825_s15 + $0x1e0] sm:$0xff]  ;;  %v2338_v49 = vld [vmem:[%s3825_s15 + $0x1e8] sm:$0xff] }
 0x268   : > { %2333 = vst [vmem:[%s4125_s6 + $0x350] sm:$0xff] %v2332_v38  ;;  %2335 = vst [vmem:[%s4125_s6 + $0x358] sm:$0xff] %v2334_v51  ;;  %v2340_v29 = vld [vmem:[%s3825_s15 + $0x1f0] sm:$0xff]  ;;  %v2342_v30 = vld [vmem:[%s3825_s15 + $0x1f8] sm:$0xff] }
 0x269   : > { %2337 = vst [vmem:[%s4125_s6 + $0x360] sm:$0xff] %v2336_v24  ;;  %2339 = vst [vmem:[%s4125_s6 + $0x368] sm:$0xff] %v2338_v49 }
 0x26a   : > { %2341 = vst [vmem:[%s4125_s6 + $0x370] sm:$0xff] %v2340_v29  ;;  %2343 = vst [vmem:[%s4125_s6 + $0x378] sm:$0xff] %v2342_v30 }
 0x26b PF: > { %s15_s21 = sadd.s32 1, %s2950_s21   ;;  %s4273_s15 = smov %s2930_s16 }
 0x26c   : > { %p12_p11 = scmp.ge.s32.totalorder %s15_s21, 6   ;;  %s4274_s16 = smov %s3037_s29 }
 0x26d   : > { %s4275_s17 = smov %s2942_s19  ;;  %s4276_s18 = smov %s2946_s20 }
 0x26e   : > { %s4277_s19 = smov %s4280_s2  ;;  %s4278_s20 = smov %s4284_s22 }
 0x26f   :  { %14 = sbr.rel (!%p12_p11) target bundleno = 4 (0x4), region = 119 }

</bundles_post_ra>
